<compile_context>
chip_gen: v7x
topology: tpu7x:2x2x1
jax: 0.10.0
libtpu: 0.0.40
codegen_flags: <defaults>
</compile_context>

<pallas_src>
import functools

import jax
import jax.numpy as jnp
from jax.experimental import pallas as pl
from jax.experimental.pallas import tpu as pltpu

EPS = 1e-5
_VMEM_LIMIT = 32 * 1024 * 1024  # explicit scoped-VMEM budget; safe on v5e/v6e/v7x


# -----------------------------------------------------------------------------
# Pallas kernel 1: fused fc1 -> BN -> ReLU -> fc2 -> BN -> ReLU   (bf16 out)
# -----------------------------------------------------------------------------
def _fc_fused_kernel(x_ref, w1_ref, s1_ref, b1_ref, w2_ref, s2_ref, b2_ref, o_ref):
    # h1 is tiny (N x 1024) and recomputed per fc2 column tile: keeps the grid axis
    # fully "parallel" (megacore-friendly) at negligible extra FLOP cost.
    h1 = jnp.dot(x_ref[...], w1_ref[...], preferred_element_type=jnp.float32)
    h1 = jnp.maximum(h1 * s1_ref[...] + b1_ref[...], 0.0)
    h2 = jnp.dot(h1.astype(jnp.bfloat16), w2_ref[...],
                 preferred_element_type=jnp.float32)
    o_ref[...] = jnp.maximum(h2 * s2_ref[...] + b2_ref[...], 0.0).astype(o_ref.dtype)


def _pick_tile(m, candidates=(1024, 512, 256, 128)):
    # M2 = 128*(s/4)^2 is always a multiple of 128, so the fallback is never reached.
    for t in candidates:
        if m % t == 0:
            return t
    return m


def fc_fused(x, w1, s1, b1, w2, s2, b2):
    """x:(N,K) f32; w1:(K,M1) bf16; w2:(M1,M2) bf16; s*/b*:(1,M*) f32 -> (N,M2) bf16."""
    N, K = x.shape
    M1 = w1.shape[1]
    M2 = w2.shape[1]
    tn = _pick_tile(M2)
    return pl.pallas_call(
        _fc_fused_kernel,
        out_shape=jax.ShapeDtypeStruct((N, M2), jnp.bfloat16),
        grid=(M2 // tn,),
        in_specs=[
            pl.BlockSpec((N, K), lambda j: (0, 0)),
            pl.BlockSpec((K, M1), lambda j: (0, 0)),
            pl.BlockSpec((1, M1), lambda j: (0, 0)),
            pl.BlockSpec((1, M1), lambda j: (0, 0)),
            pl.BlockSpec((M1, tn), lambda j: (0, j)),
            pl.BlockSpec((1, tn), lambda j: (0, j)),
            pl.BlockSpec((1, tn), lambda j: (0, j)),
        ],
        out_specs=pl.BlockSpec((N, tn), lambda j: (0, j)),
        compiler_params=pltpu.CompilerParams(
            dimension_semantics=("parallel",),
            vmem_limit_bytes=_VMEM_LIMIT),
    )(x.astype(jnp.bfloat16), w1, s1, b1, w2, s2, b2)


# -----------------------------------------------------------------------------
# Pallas kernel 2: fused deconv1(4,2,1)+BN+ReLU -> deconv2(4,2,1)+bias+tanh
#
# Sub-pixel decomposition for both layers; the intermediate activation lives in a
# halo-padded VMEM scratch and never hits HBM.
#   deconv1: per py phase, one (BB*H1*W1, 6*128) x (6*128, 2*64) dot
#            (K = (dy, s=px+dx, cin) concat; columns = (px, cout)).
#   deconv2: one (BB*H2*W2, 9*64) x (9*64, 4*cpad) dot
#            (K = (r=py+dy, s=px+dx, cin) concat; columns = (py, px, cout pad 32)).
# -----------------------------------------------------------------------------
def _make_fused_deconv_kernel(BB, H1, W1, Cin1, Cmid, Cp2):
    H2, W2 = 2 * H1, 2 * W1

    def kernel(x_ref, w1_ref, sc1_ref, sh1_ref, w2_ref, sh2_ref, o_ref,
               xp_ref, d1p_ref):
        # ---- halo-pad the 128-channel feature map into VMEM scratch ----
        xp_ref[...] = jnp.zeros_like(xp_ref)
        xp_ref[:, 1:1 + H1, 1:1 + W1, :] = x_ref[...]
        d1p_ref[...] = jnp.zeros_like(d1p_ref)

        # ---- deconv1 + BN + ReLU (two py phases, px folded into columns) ----
        rows = []
        for py in range(2):
            slabs = [xp_ref[:, py + dy:py + dy + H1, s:s + W1, :]
                     for dy in range(2) for s in range(3)]
            patch = jnp.concatenate(slabs, axis=-1).reshape(BB * H1 * W1, 6 * Cin1)
            h = jnp.dot(patch, w1_ref[py], preferred_element_type=jnp.float32)
            h = jnp.maximum(h * sc1_ref[...] + sh1_ref[...], 0.0)
            h = h.astype(jnp.bfloat16).reshape(BB, H1, W1, 2 * Cmid)
            # Interleave the px phase into the W axis (keeps the 64-lane minor dim).
            row = jnp.stack([h[..., :Cmid], h[..., Cmid:]], axis=3)
            rows.append(row.reshape(BB, H1, W2, Cmid))
        d1 = jnp.stack(rows, axis=2).reshape(BB, H2, W2, Cmid)
        d1p_ref[:, 1:1 + H2, 1:1 + W2, :] = d1       # halo stays zero

        # ---- deconv2 + bias + tanh (all four (py,px) phases folded into columns) ----
        slabs2 = [d1p_ref[:, r:r + H2, s:s + W2, :]
                  for r in range(3) for s in range(3)]
        patch2 = jnp.concatenate(slabs2, axis=-1).reshape(BB * H2 * W2, 9 * Cmid)
        h2 = jnp.dot(patch2, w2_ref[...], preferred_element_type=jnp.float32)
        o_ref[...] = jnp.tanh(h2 + sh2_ref[...]).reshape(BB, H2, W2, Cp2)

    return kernel


def _pick_batch_block(n, h2w2):
    """Images per deconv grid step: enough rows to fill the MXU, bounded so the fused
    patch buffers stay small in VMEM, and >=2 grid steps when possible (v7x: 2 TCs)."""
    cap = max(1, 4096 // h2w2)
    bb = 1
    for c in range(min(n, cap, 8), 0, -1):
        if n % c == 0:
            bb = c
            break
    if n // bb == 1 and n > 1:
        for c in range(bb // 2, 0, -1):
            if n % c == 0:
                return c
    return bb


def fused_deconv(feat, w1f, sc1, sh1, w2f, sh2, output_dim):
    """feat:(N,H1,W1,128) bf16 NHWC -> (N, output_dim, 4*H1, 4*W1) f32 NCHW."""
    N, H1, W1, Cin1 = feat.shape
    Cmid = w1f.shape[-1] // 2
    Cp2 = w2f.shape[-1]
    H2, W2 = 2 * H1, 2 * W1
    BB = _pick_batch_block(N, H2 * W2)
    out = pl.pallas_call(
        _make_fused_deconv_kernel(BB, H1, W1, Cin1, Cmid, Cp2),
        out_shape=jax.ShapeDtypeStruct((N, H2, W2, Cp2), jnp.float32),
        grid=(N // BB,),
        in_specs=[
            pl.BlockSpec((BB, H1, W1, Cin1), lambda n: (n, 0, 0, 0)),
            pl.BlockSpec((2, 6 * Cin1, 2 * Cmid), lambda n: (0, 0, 0)),
            pl.BlockSpec((1, 2 * Cmid), lambda n: (0, 0)),
            pl.BlockSpec((1, 2 * Cmid), lambda n: (0, 0)),
            pl.BlockSpec((9 * Cmid, Cp2), lambda n: (0, 0)),
            pl.BlockSpec((1, Cp2), lambda n: (0, 0)),
        ],
        out_specs=pl.BlockSpec((BB, H2, W2, Cp2), lambda n: (n, 0, 0, 0)),
        scratch_shapes=[
            pltpu.VMEM((BB, H1 + 2, W1 + 2, Cin1), jnp.bfloat16),   # padded feat
            pltpu.VMEM((BB, H2 + 2, W2 + 2, Cmid), jnp.bfloat16),   # padded d1
        ],
        compiler_params=pltpu.CompilerParams(
            dimension_semantics=("parallel",),
            vmem_limit_bytes=_VMEM_LIMIT),
    )(feat, w1f, sc1, sh1, w2f, sh2)
    # Un-fold the four output phases and go to NCHW in a single XLA transpose.
    cpad = Cp2 // 4
    out = out.reshape(N, H2, W2, 2, 2, cpad)[..., :output_dim]
    out = jnp.transpose(out, (0, 5, 1, 3, 2, 4))
    return out.reshape(N, output_dim, 2 * H2, 2 * W2)


# -----------------------------------------------------------------------------
# Parameter folding / preparation (done once, outside the jitted forward)
# -----------------------------------------------------------------------------
def fold_bn(bias, gamma, beta, mean, var):
    scale = gamma / jnp.sqrt(var + EPS)
    shift = (bias - mean) * scale + beta
    return scale, shift


def _fold_deconv1_weights(wt):
    """(Cin,Cout,4,4) ConvTranspose2d weight -> (2, 6*Cin, 2*Cout) bf16.
    Axis 0: output py phase.  K axis: (dy, s=px+dx, cin).  Columns: (px, cout)."""
    cin, cout = wt.shape[0], wt.shape[1]
    w = jnp.zeros((2, 2, 3, cin, 2, cout), jnp.float32)
    for py in range(2):
        for dy in range(2):
            ky = 2 * (1 - dy) + (1 - py)
            for px in range(2):
                for dx in range(2):
                    s = px + dx
                    kx = 2 * (1 - dx) + (1 - px)
                    w = w.at[py, dy, s, :, px, :].set(wt[:, :, ky, kx])
    return w.reshape(2, 6 * cin, 2 * cout).astype(jnp.bfloat16)


def _fold_deconv2_weights(wt, cpad):
    """(Cin,Cout,4,4) -> (9*Cin, 4*cpad) bf16.
    K axis: (r=py+dy, s=px+dx, cin).  Columns: (py, px, cout padded to cpad)."""
    cin, cout = wt.shape[0], wt.shape[1]
    w = jnp.zeros((3, 3, cin, 2, 2, cpad), jnp.float32)
    for py in range(2):
        for dy in range(2):
            r = py + dy
            ky = 2 * (1 - dy) + (1 - py)
            for px in range(2):
                for dx in range(2):
                    s = px + dx
                    kx = 2 * (1 - dx) + (1 - px)
                    w = w.at[r, s, :, py, px, :cout].set(wt[:, :, ky, kx])
    return w.reshape(9 * cin, 4 * cpad).astype(jnp.bfloat16)


def prepare_params(p, input_size, output_dim):
    s4 = input_size // 4
    m2 = 128 * s4 * s4

    sc1, sh1 = fold_bn(p["b1"], p["g1"], p["be1"], p["m1"], p["v1"])
    sc2, sh2 = fold_bn(p["b2"], p["g2"], p["be2"], p["m2"], p["v2"])
    scc1, shc1 = fold_bn(p["bt1"], p["gc1"], p["bec1"], p["mc1"], p["vc1"])

    # Permute fc2 columns from (c, y, x) to (y, x, c) so the FC kernel writes NHWC.
    w2p = p["w2"].reshape(1024, 128, s4, s4).transpose(0, 2, 3, 1).reshape(1024, m2)
    sc2p = sc2.reshape(128, s4, s4).transpose(1, 2, 0).reshape(m2)
    sh2p = sh2.reshape(128, s4, s4).transpose(1, 2, 0).reshape(m2)

    # deconv2 columns: 4 (py,px) phases x cout padded to a multiple of 32 lanes.
    # TODO(synk): output_dim > 32 would be better served by folding only the px phase.
    cpad2 = 32 * ((output_dim + 31) // 32)
    bias2 = jnp.zeros((cpad2,), jnp.float32).at[:output_dim].set(p["bt2"])

    return {
        "w1": p["w1"].astype(jnp.bfloat16),
        "sc1": sc1.reshape(1, -1), "sh1": sh1.reshape(1, -1),
        "w2": w2p.astype(jnp.bfloat16),
        "sc2": sc2p.reshape(1, -1), "sh2": sh2p.reshape(1, -1),
        "wf1": _fold_deconv1_weights(p["wt1"]),
        "scc1": jnp.tile(scc1, 2).reshape(1, -1),
        "shc1": jnp.tile(shc1, 2).reshape(1, -1),
        "wf2": _fold_deconv2_weights(p["wt2"], cpad2),
        "shc2": jnp.tile(bias2, 4).reshape(1, -1),
    }


def init_params(key, input_dim, output_dim, input_size):
    s4 = input_size // 4
    fc2_out = 128 * s4 * s4
    ks = jax.random.split(key, 16)

    def nrm(k, shape, sc=0.05):
        return sc * jax.random.normal(k, shape, dtype=jnp.float32)

    p = {}
    p["w1"] = nrm(ks[0], (input_dim, 1024))
    p["b1"] = nrm(ks[1], (1024,))
    p["g1"] = 1.0 + 0.1 * jax.random.normal(ks[2], (1024,), jnp.float32)
    p["be1"] = nrm(ks[3], (1024,), 0.1)
    p["m1"] = nrm(ks[4], (1024,), 0.1)
    p["v1"] = 1.0 + 0.1 * jnp.abs(jax.random.normal(ks[5], (1024,), jnp.float32))
    p["w2"] = nrm(ks[6], (1024, fc2_out), 0.02)
    p["b2"] = nrm(ks[7], (fc2_out,))
    p["g2"] = 1.0 + 0.1 * jax.random.normal(ks[8], (fc2_out,), jnp.float32)
    p["be2"] = nrm(ks[9], (fc2_out,), 0.1)
    p["m2"] = nrm(ks[10], (fc2_out,), 0.1)
    p["v2"] = 1.0 + 0.1 * jnp.abs(jax.random.normal(ks[11], (fc2_out,), jnp.float32))
    p["wt1"] = nrm(ks[12], (128, 64, 4, 4), 0.05)
    p["bt1"] = nrm(ks[13], (64,))
    p["gc1"] = jnp.linspace(0.9, 1.1, 64, dtype=jnp.float32)
    p["bec1"] = jnp.linspace(-0.05, 0.05, 64, dtype=jnp.float32)
    p["mc1"] = jnp.linspace(-0.02, 0.02, 64, dtype=jnp.float32)
    p["vc1"] = jnp.linspace(0.9, 1.2, 64, dtype=jnp.float32)
    p["wt2"] = nrm(ks[14], (64, output_dim, 4, 4), 0.05)
    p["bt2"] = nrm(ks[15], (output_dim,))
    return p


# -----------------------------------------------------------------------------
# Full forward (Pallas) and a matched-precision pure-JAX reference
# -----------------------------------------------------------------------------
def generator_forward_pallas(x, prep, input_size, output_dim):
    N = x.shape[0]
    s4 = input_size // 4
    h = fc_fused(x, prep["w1"], prep["sc1"], prep["sh1"],
                 prep["w2"], prep["sc2"], prep["sh2"])
    feat = h.reshape(N, s4, s4, 128)   # bf16, already NHWC (fc2 columns permuted)
    return fused_deconv(feat, prep["wf1"], prep["scc1"], prep["shc1"],
                        prep["wf2"], prep["shc2"], output_dim)


def generator_forward_ref(x, p, input_size, output_dim):
    N = x.shape[0]
    s4 = input_size // 4
    bf = jnp.bfloat16
    sc1, sh1 = fold_bn(p["b1"], p["g1"], p["be1"], p["m1"], p["v1"])
    sc2, sh2 = fold_bn(p["b2"], p["g2"], p["be2"], p["m2"], p["v2"])
    scc1, shc1 = fold_bn(p["bt1"], p["gc1"], p["bec1"], p["mc1"], p["vc1"])

    h1 = jnp.maximum(jnp.dot(x.astype(bf), p["w1"].astype(bf),
                             preferred_element_type=jnp.float32) * sc1 + sh1, 0.0)
    h2 = jnp.maximum(jnp.dot(h1.astype(bf), p["w2"].astype(bf),
                             preferred_element_type=jnp.float32) * sc2 + sh2, 0.0)
    feat = jnp.transpose(h2.reshape(N, 128, s4, s4), (0, 2, 3, 1))

    def ct(xin, wt, scale, shift, act):
        w_hwio = jnp.transpose(wt[:, :, ::-1, ::-1], (2, 3, 0, 1)).astype(bf)
        y = jax.lax.conv_general_dilated(
            xin.astype(bf), w_hwio, window_strides=(1, 1),
            padding=((2, 2), (2, 2)), lhs_dilation=(2, 2),
            dimension_numbers=("NHWC", "HWIO", "NHWC"),
            preferred_element_type=jnp.float32)
        return act(y * scale + shift)

    d1 = ct(feat, p["wt1"], scc1, shc1, lambda v: jnp.maximum(v, 0.0))
    d2 = ct(d1, p["wt2"], jnp.ones((output_dim,), jnp.float32), p["bt2"], jnp.tanh)
    return jnp.transpose(d2, (0, 3, 1, 2))


if __name__ == "__main__":
    # Small, forward-consistent shapes: batch=2, input_dim=32, output_dim=1, size=16
    BATCH, INPUT_DIM, OUTPUT_DIM, INPUT_SIZE = 2, 32, 1, 16

    key = jax.random.PRNGKey(0)
    k_x, k_p = jax.random.split(key)
    x = jax.random.normal(k_x, (BATCH, INPUT_DIM), dtype=jnp.float32)
    params = init_params(k_p, INPUT_DIM, OUTPUT_DIM, INPUT_SIZE)

    prep = prepare_params(params, INPUT_SIZE, OUTPUT_DIM)  # one-time weight prep
    fwd = jax.jit(functools.partial(generator_forward_pallas,
                                    input_size=INPUT_SIZE, output_dim=OUTPUT_DIM))
    out = jax.block_until_ready(fwd(x, prep))
    assert out.shape == (BATCH, OUTPUT_DIM, INPUT_SIZE, INPUT_SIZE), out.shape

    ref = jax.block_until_ready(
        generator_forward_ref(x, params, INPUT_SIZE, OUTPUT_DIM))
    max_err = float(jnp.max(jnp.abs(out - ref)))
    assert jnp.allclose(out, ref, rtol=5e-3, atol=5e-3), max_err

    print("KERNEL_OK")
</pallas_src>

<mosaic_0001>
module attributes {stable_mosaic.version = 11 : i64} {
  func.func @kernel(%arg0: i32, %arg1: memref<1x4x4x128xbf16, #tpu.memory_space<vmem>>, %arg2: memref<2x768x128xbf16, #tpu.memory_space<vmem>>, %arg3: memref<1x128xf32, #tpu.memory_space<vmem>>, %arg4: memref<1x128xf32, #tpu.memory_space<vmem>>, %arg5: memref<576x128xbf16, #tpu.memory_space<vmem>>, %arg6: memref<1x128xf32, #tpu.memory_space<vmem>>, %arg7: memref<1x8x8x128xf32, #tpu.memory_space<vmem>>, %arg8: memref<1x6x6x128xbf16, #tpu.memory_space<vmem>>, %arg9: memref<1x10x10x64xbf16, #tpu.memory_space<vmem>>) attributes {dimension_semantics = [#tpu.dimension_semantics<parallel>], iteration_bounds = array<i64: 2>, scalar_prefetch = 0 : i64, scratch_operands = 2 : i64, tpu.core_type = #tpu.core_type<tc>, window_params = [{transform_indices = @transform_0, window_bounds = array<i64: 1, 4, 4, 128>}, {pipeline_mode = #tpu.pipeline_mode<synchronous>, transform_indices = @transform_1, window_bounds = array<i64: 2, 768, 128>}, {pipeline_mode = #tpu.pipeline_mode<synchronous>, transform_indices = @transform_2, window_bounds = array<i64: 1, 128>}, {pipeline_mode = #tpu.pipeline_mode<synchronous>, transform_indices = @transform_3, window_bounds = array<i64: 1, 128>}, {pipeline_mode = #tpu.pipeline_mode<synchronous>, transform_indices = @transform_4, window_bounds = array<i64: 576, 128>}, {pipeline_mode = #tpu.pipeline_mode<synchronous>, transform_indices = @transform_5, window_bounds = array<i64: 1, 128>}, {transform_indices = @transform_6, window_bounds = array<i64: 1, 8, 8, 128>}]} {
    %cst = arith.constant 0.000000e+00 : bf16
    %0 = vector.broadcast %cst : bf16 to vector<1x6x6x128xbf16>
    %c0 = arith.constant 0 : index
    %c0_0 = arith.constant 0 : index
    %c0_1 = arith.constant 0 : index
    %c0_2 = arith.constant 0 : index
    %1 = vector.load %arg8[%c0, %c0_0, %c0_1, %c0_2] : memref<1x6x6x128xbf16, #tpu.memory_space<vmem>>, vector<1x6x6x128xbf16>
    tpu.vector_store %arg8[%c0, %c0_0, %c0_1, %c0_2], %0 {strides = array<i32>} : memref<1x6x6x128xbf16, #tpu.memory_space<vmem>>, vector<1x6x6x128xbf16>,
    %c0_3 = arith.constant 0 : index
    %c0_4 = arith.constant 0 : index
    %c0_5 = arith.constant 0 : index
    %c0_6 = arith.constant 0 : index
    %2 = vector.load %arg1[%c0_3, %c0_4, %c0_5, %c0_6] : memref<1x4x4x128xbf16, #tpu.memory_space<vmem>>, vector<1x4x4x128xbf16>
    %c0_7 = arith.constant 0 : index
    %c1 = arith.constant 1 : index
    %c1_8 = arith.constant 1 : index
    %c0_9 = arith.constant 0 : index
    %3 = vector.load %arg8[%c0_7, %c1, %c1_8, %c0_9] : memref<1x6x6x128xbf16, #tpu.memory_space<vmem>>, vector<1x4x4x128xbf16>
    tpu.vector_store %arg8[%c0_7, %c1, %c1_8, %c0_9], %2 {strides = array<i32>} : memref<1x6x6x128xbf16, #tpu.memory_space<vmem>>, vector<1x4x4x128xbf16>,
    %cst_10 = arith.constant 0.000000e+00 : bf16
    %4 = vector.broadcast %cst_10 : bf16 to vector<1x10x10x64xbf16>
    %c0_11 = arith.constant 0 : index
    %c0_12 = arith.constant 0 : index
    %c0_13 = arith.constant 0 : index
    %c0_14 = arith.constant 0 : index
    %5 = vector.load %arg9[%c0_11, %c0_12, %c0_13, %c0_14] : memref<1x10x10x64xbf16, #tpu.memory_space<vmem>>, vector<1x10x10x64xbf16>
    tpu.vector_store %arg9[%c0_11, %c0_12, %c0_13, %c0_14], %4 {strides = array<i32>} : memref<1x10x10x64xbf16, #tpu.memory_space<vmem>>, vector<1x10x10x64xbf16>,
    %c0_15 = arith.constant 0 : index
    %c0_16 = arith.constant 0 : index
    %c0_17 = arith.constant 0 : index
    %c0_18 = arith.constant 0 : index
    %6 = vector.load %arg8[%c0_15, %c0_16, %c0_17, %c0_18] : memref<1x6x6x128xbf16, #tpu.memory_space<vmem>>, vector<1x4x4x128xbf16>
    %c0_19 = arith.constant 0 : index
    %c0_20 = arith.constant 0 : index
    %c1_21 = arith.constant 1 : index
    %c0_22 = arith.constant 0 : index
    %7 = vector.load %arg8[%c0_19, %c0_20, %c1_21, %c0_22] : memref<1x6x6x128xbf16, #tpu.memory_space<vmem>>, vector<1x4x4x128xbf16>
    %c0_23 = arith.constant 0 : index
    %c0_24 = arith.constant 0 : index
    %c2 = arith.constant 2 : index
    %c0_25 = arith.constant 0 : index
    %8 = vector.load %arg8[%c0_23, %c0_24, %c2, %c0_25] : memref<1x6x6x128xbf16, #tpu.memory_space<vmem>>, vector<1x4x4x128xbf16>
    %c0_26 = arith.constant 0 : index
    %c1_27 = arith.constant 1 : index
    %c0_28 = arith.constant 0 : index
    %c0_29 = arith.constant 0 : index
    %9 = vector.load %arg8[%c0_26, %c1_27, %c0_28, %c0_29] : memref<1x6x6x128xbf16, #tpu.memory_space<vmem>>, vector<1x4x4x128xbf16>
    %c0_30 = arith.constant 0 : index
    %c1_31 = arith.constant 1 : index
    %c1_32 = arith.constant 1 : index
    %c0_33 = arith.constant 0 : index
    %10 = vector.load %arg8[%c0_30, %c1_31, %c1_32, %c0_33] : memref<1x6x6x128xbf16, #tpu.memory_space<vmem>>, vector<1x4x4x128xbf16>
    %c0_34 = arith.constant 0 : index
    %c1_35 = arith.constant 1 : index
    %c2_36 = arith.constant 2 : index
    %c0_37 = arith.constant 0 : index
    %11 = vector.load %arg8[%c0_34, %c1_35, %c2_36, %c0_37] : memref<1x6x6x128xbf16, #tpu.memory_space<vmem>>, vector<1x4x4x128xbf16>
    %12 = tpu.concatenate %6, %7, %8, %9, %10, %11 in 3 : vector<1x4x4x128xbf16>, vector<1x4x4x128xbf16>, vector<1x4x4x128xbf16>, vector<1x4x4x128xbf16>, vector<1x4x4x128xbf16>, vector<1x4x4x128xbf16> -> vector<1x4x4x768xbf16>
    %13 = vector.shape_cast %12 : vector<1x4x4x768xbf16> to vector<16x768xbf16>
    %c0_38 = arith.constant 0 : index
    %c0_39 = arith.constant 0 : index
    %c0_40 = arith.constant 0 : index
    %14 = vector.load %arg2[%c0_38, %c0_39, %c0_40] : memref<2x768x128xbf16, #tpu.memory_space<vmem>>, vector<1x768x128xbf16>
    %15 = vector.shape_cast %14 : vector<1x768x128xbf16> to vector<768x128xbf16>
    %cst_41 = arith.constant dense<0.000000e+00> : vector<16x128xf32>
    %16 = tpu.matmul %13, %15, %cst_41 {dimension_numbers = #tpu.dot_dimension_numbers<[1], [0], [0], [1], [0, 0, 1, 1], [], []>} : vector<16x768xbf16>, vector<768x128xbf16>, vector<16x128xf32> -> vector<16x128xf32>
    %c0_42 = arith.constant 0 : index
    %c0_43 = arith.constant 0 : index
    %17 = vector.load %arg3[%c0_42, %c0_43] : memref<1x128xf32, #tpu.memory_space<vmem>>, vector<1x128xf32>
    %18 = vector.broadcast %17 : vector<1x128xf32> to vector<16x128xf32>
    %19 = arith.mulf %16, %18 : vector<16x128xf32>
    %c0_44 = arith.constant 0 : index
    %c0_45 = arith.constant 0 : index
    %20 = vector.load %arg4[%c0_44, %c0_45] : memref<1x128xf32, #tpu.memory_space<vmem>>, vector<1x128xf32>
    %21 = vector.broadcast %20 : vector<1x128xf32> to vector<16x128xf32>
    %22 = arith.addf %19, %21 : vector<16x128xf32>
    %cst_46 = arith.constant 0.000000e+00 : f32
    %23 = vector.broadcast %cst_46 : f32 to vector<16x128xf32>
    %24 = arith.maximumf %22, %23 : vector<16x128xf32>
    %25 = arith.truncf %24 : vector<16x128xf32> to vector<16x128xbf16>
    %26 = vector.shape_cast %25 : vector<16x128xbf16> to vector<1x4x4x128xbf16>
    %27 = vector.extract_strided_slice %26 {offsets = [0, 0, 0, 0], sizes = [1, 4, 4, 64], strides = [1, 1, 1, 1]} : vector<1x4x4x128xbf16> to vector<1x4x4x64xbf16>
    %28 = vector.extract_strided_slice %26 {offsets = [0, 0, 0, 64], sizes = [1, 4, 4, 64], strides = [1, 1, 1, 1]} : vector<1x4x4x128xbf16> to vector<1x4x4x64xbf16>
    %29 = vector.shape_cast %27 : vector<1x4x4x64xbf16> to vector<1x4x4x1x64xbf16>
    %30 = vector.shape_cast %28 : vector<1x4x4x64xbf16> to vector<1x4x4x1x64xbf16>
    %31 = tpu.concatenate %29, %30 in 3 : vector<1x4x4x1x64xbf16>, vector<1x4x4x1x64xbf16> -> vector<1x4x4x2x64xbf16>
    %32 = vector.shape_cast %31 : vector<1x4x4x2x64xbf16> to vector<1x4x8x64xbf16>
    %c0_47 = arith.constant 0 : index
    %c1_48 = arith.constant 1 : index
    %c0_49 = arith.constant 0 : index
    %c0_50 = arith.constant 0 : index
    %33 = vector.load %arg8[%c0_47, %c1_48, %c0_49, %c0_50] : memref<1x6x6x128xbf16, #tpu.memory_space<vmem>>, vector<1x4x4x128xbf16>
    %c0_51 = arith.constant 0 : index
    %c1_52 = arith.constant 1 : index
    %c1_53 = arith.constant 1 : index
    %c0_54 = arith.constant 0 : index
    %34 = vector.load %arg8[%c0_51, %c1_52, %c1_53, %c0_54] : memref<1x6x6x128xbf16, #tpu.memory_space<vmem>>, vector<1x4x4x128xbf16>
    %c0_55 = arith.constant 0 : index
    %c1_56 = arith.constant 1 : index
    %c2_57 = arith.constant 2 : index
    %c0_58 = arith.constant 0 : index
    %35 = vector.load %arg8[%c0_55, %c1_56, %c2_57, %c0_58] : memref<1x6x6x128xbf16, #tpu.memory_space<vmem>>, vector<1x4x4x128xbf16>
    %c0_59 = arith.constant 0 : index
    %c2_60 = arith.constant 2 : index
    %c0_61 = arith.constant 0 : index
    %c0_62 = arith.constant 0 : index
    %36 = vector.load %arg8[%c0_59, %c2_60, %c0_61, %c0_62] : memref<1x6x6x128xbf16, #tpu.memory_space<vmem>>, vector<1x4x4x128xbf16>
    %c0_63 = arith.constant 0 : index
    %c2_64 = arith.constant 2 : index
    %c1_65 = arith.constant 1 : index
    %c0_66 = arith.constant 0 : index
    %37 = vector.load %arg8[%c0_63, %c2_64, %c1_65, %c0_66] : memref<1x6x6x128xbf16, #tpu.memory_space<vmem>>, vector<1x4x4x128xbf16>
    %c0_67 = arith.constant 0 : index
    %c2_68 = arith.constant 2 : index
    %c2_69 = arith.constant 2 : index
    %c0_70 = arith.constant 0 : index
    %38 = vector.load %arg8[%c0_67, %c2_68, %c2_69, %c0_70] : memref<1x6x6x128xbf16, #tpu.memory_space<vmem>>, vector<1x4x4x128xbf16>
    %39 = tpu.concatenate %33, %34, %35, %36, %37, %38 in 3 : vector<1x4x4x128xbf16>, vector<1x4x4x128xbf16>, vector<1x4x4x128xbf16>, vector<1x4x4x128xbf16>, vector<1x4x4x128xbf16>, vector<1x4x4x128xbf16> -> vector<1x4x4x768xbf16>
    %40 = vector.shape_cast %39 : vector<1x4x4x768xbf16> to vector<16x768xbf16>
    %c1_71 = arith.constant 1 : index
    %c0_72 = arith.constant 0 : index
    %c0_73 = arith.constant 0 : index
    %41 = vector.load %arg2[%c1_71, %c0_72, %c0_73] : memref<2x768x128xbf16, #tpu.memory_space<vmem>>, vector<1x768x128xbf16>
    %42 = vector.shape_cast %41 : vector<1x768x128xbf16> to vector<768x128xbf16>
    %cst_74 = arith.constant dense<0.000000e+00> : vector<16x128xf32>
    %43 = tpu.matmul %40, %42, %cst_74 {dimension_numbers = #tpu.dot_dimension_numbers<[1], [0], [0], [1], [0, 0, 1, 1], [], []>} : vector<16x768xbf16>, vector<768x128xbf16>, vector<16x128xf32> -> vector<16x128xf32>
    %c0_75 = arith.constant 0 : index
    %c0_76 = arith.constant 0 : index
    %44 = vector.load %arg3[%c0_75, %c0_76] : memref<1x128xf32, #tpu.memory_space<vmem>>, vector<1x128xf32>
    %45 = vector.broadcast %44 : vector<1x128xf32> to vector<16x128xf32>
    %46 = arith.mulf %43, %45 : vector<16x128xf32>
    %c0_77 = arith.constant 0 : index
    %c0_78 = arith.constant 0 : index
    %47 = vector.load %arg4[%c0_77, %c0_78] : memref<1x128xf32, #tpu.memory_space<vmem>>, vector<1x128xf32>
    %48 = vector.broadcast %47 : vector<1x128xf32> to vector<16x128xf32>
    %49 = arith.addf %46, %48 : vector<16x128xf32>
    %cst_79 = arith.constant 0.000000e+00 : f32
    %50 = vector.broadcast %cst_79 : f32 to vector<16x128xf32>
    %51 = arith.maximumf %49, %50 : vector<16x128xf32>
    %52 = arith.truncf %51 : vector<16x128xf32> to vector<16x128xbf16>
    %53 = vector.shape_cast %52 : vector<16x128xbf16> to vector<1x4x4x128xbf16>
    %54 = vector.extract_strided_slice %53 {offsets = [0, 0, 0, 0], sizes = [1, 4, 4, 64], strides = [1, 1, 1, 1]} : vector<1x4x4x128xbf16> to vector<1x4x4x64xbf16>
    %55 = vector.extract_strided_slice %53 {offsets = [0, 0, 0, 64], sizes = [1, 4, 4, 64], strides = [1, 1, 1, 1]} : vector<1x4x4x128xbf16> to vector<1x4x4x64xbf16>
    %56 = vector.shape_cast %54 : vector<1x4x4x64xbf16> to vector<1x4x4x1x64xbf16>
    %57 = vector.shape_cast %55 : vector<1x4x4x64xbf16> to vector<1x4x4x1x64xbf16>
    %58 = tpu.concatenate %56, %57 in 3 : vector<1x4x4x1x64xbf16>, vector<1x4x4x1x64xbf16> -> vector<1x4x4x2x64xbf16>
    %59 = vector.shape_cast %58 : vector<1x4x4x2x64xbf16> to vector<1x4x8x64xbf16>
    %60 = vector.shape_cast %32 : vector<1x4x8x64xbf16> to vector<1x4x1x8x64xbf16>
    %61 = vector.shape_cast %59 : vector<1x4x8x64xbf16> to vector<1x4x1x8x64xbf16>
    %62 = tpu.concatenate %60, %61 in 2 : vector<1x4x1x8x64xbf16>, vector<1x4x1x8x64xbf16> -> vector<1x4x2x8x64xbf16>
    %63 = vector.shape_cast %62 : vector<1x4x2x8x64xbf16> to vector<1x8x8x64xbf16>
    %c0_80 = arith.constant 0 : index
    %c1_81 = arith.constant 1 : index
    %c1_82 = arith.constant 1 : index
    %c0_83 = arith.constant 0 : index
    %64 = vector.load %arg9[%c0_80, %c1_81, %c1_82, %c0_83] : memref<1x10x10x64xbf16, #tpu.memory_space<vmem>>, vector<1x8x8x64xbf16>
    tpu.vector_store %arg9[%c0_80, %c1_81, %c1_82, %c0_83], %63 {strides = array<i32>} : memref<1x10x10x64xbf16, #tpu.memory_space<vmem>>, vector<1x8x8x64xbf16>,
    %c0_84 = arith.constant 0 : index
    %c0_85 = arith.constant 0 : index
    %c0_86 = arith.constant 0 : index
    %c0_87 = arith.constant 0 : index
    %65 = vector.load %arg9[%c0_84, %c0_85, %c0_86, %c0_87] : memref<1x10x10x64xbf16, #tpu.memory_space<vmem>>, vector<1x8x8x64xbf16>
    %c0_88 = arith.constant 0 : index
    %c0_89 = arith.constant 0 : index
    %c1_90 = arith.constant 1 : index
    %c0_91 = arith.constant 0 : index
    %66 = vector.load %arg9[%c0_88, %c0_89, %c1_90, %c0_91] : memref<1x10x10x64xbf16, #tpu.memory_space<vmem>>, vector<1x8x8x64xbf16>
    %c0_92 = arith.constant 0 : index
    %c0_93 = arith.constant 0 : index
    %c2_94 = arith.constant 2 : index
    %c0_95 = arith.constant 0 : index
    %67 = vector.load %arg9[%c0_92, %c0_93, %c2_94, %c0_95] : memref<1x10x10x64xbf16, #tpu.memory_space<vmem>>, vector<1x8x8x64xbf16>
    %c0_96 = arith.constant 0 : index
    %c1_97 = arith.constant 1 : index
    %c0_98 = arith.constant 0 : index
    %c0_99 = arith.constant 0 : index
    %68 = vector.load %arg9[%c0_96, %c1_97, %c0_98, %c0_99] : memref<1x10x10x64xbf16, #tpu.memory_space<vmem>>, vector<1x8x8x64xbf16>
    %c0_100 = arith.constant 0 : index
    %c1_101 = arith.constant 1 : index
    %c1_102 = arith.constant 1 : index
    %c0_103 = arith.constant 0 : index
    %69 = vector.load %arg9[%c0_100, %c1_101, %c1_102, %c0_103] : memref<1x10x10x64xbf16, #tpu.memory_space<vmem>>, vector<1x8x8x64xbf16>
    %c0_104 = arith.constant 0 : index
    %c1_105 = arith.constant 1 : index
    %c2_106 = arith.constant 2 : index
    %c0_107 = arith.constant 0 : index
    %70 = vector.load %arg9[%c0_104, %c1_105, %c2_106, %c0_107] : memref<1x10x10x64xbf16, #tpu.memory_space<vmem>>, vector<1x8x8x64xbf16>
    %c0_108 = arith.constant 0 : index
    %c2_109 = arith.constant 2 : index
    %c0_110 = arith.constant 0 : index
    %c0_111 = arith.constant 0 : index
    %71 = vector.load %arg9[%c0_108, %c2_109, %c0_110, %c0_111] : memref<1x10x10x64xbf16, #tpu.memory_space<vmem>>, vector<1x8x8x64xbf16>
    %c0_112 = arith.constant 0 : index
    %c2_113 = arith.constant 2 : index
    %c1_114 = arith.constant 1 : index
    %c0_115 = arith.constant 0 : index
    %72 = vector.load %arg9[%c0_112, %c2_113, %c1_114, %c0_115] : memref<1x10x10x64xbf16, #tpu.memory_space<vmem>>, vector<1x8x8x64xbf16>
    %c0_116 = arith.constant 0 : index
    %c2_117 = arith.constant 2 : index
    %c2_118 = arith.constant 2 : index
    %c0_119 = arith.constant 0 : index
    %73 = vector.load %arg9[%c0_116, %c2_117, %c2_118, %c0_119] : memref<1x10x10x64xbf16, #tpu.memory_space<vmem>>, vector<1x8x8x64xbf16>
    %74 = tpu.concatenate %65, %66, %67, %68, %69, %70, %71, %72, %73 in 3 : vector<1x8x8x64xbf16>, vector<1x8x8x64xbf16>, vector<1x8x8x64xbf16>, vector<1x8x8x64xbf16>, vector<1x8x8x64xbf16>, vector<1x8x8x64xbf16>, vector<1x8x8x64xbf16>, vector<1x8x8x64xbf16>, vector<1x8x8x64xbf16> -> vector<1x8x8x576xbf16>
    %75 = vector.shape_cast %74 : vector<1x8x8x576xbf16> to vector<64x576xbf16>
    %c0_120 = arith.constant 0 : index
    %c0_121 = arith.constant 0 : index
    %76 = vector.load %arg5[%c0_120, %c0_121] : memref<576x128xbf16, #tpu.memory_space<vmem>>, vector<576x128xbf16>
    %cst_122 = arith.constant dense<0.000000e+00> : vector<64x128xf32>
    %77 = tpu.matmul %75, %76, %cst_122 {dimension_numbers = #tpu.dot_dimension_numbers<[1], [0], [0], [1], [0, 0, 1, 1], [], []>} : vector<64x576xbf16>, vector<576x128xbf16>, vector<64x128xf32> -> vector<64x128xf32>
    %c0_123 = arith.constant 0 : index
    %c0_124 = arith.constant 0 : index
    %78 = vector.load %arg6[%c0_123, %c0_124] : memref<1x128xf32, #tpu.memory_space<vmem>>, vector<1x128xf32>
    %79 = vector.broadcast %78 : vector<1x128xf32> to vector<64x128xf32>
    %80 = arith.addf %77, %79 : vector<64x128xf32>
    %81 = math.tanh %80 : vector<64x128xf32>
    %82 = vector.shape_cast %81 : vector<64x128xf32> to vector<1x8x8x128xf32>
    %c0_125 = arith.constant 0 : index
    %c0_126 = arith.constant 0 : index
    %c0_127 = arith.constant 0 : index
    %c0_128 = arith.constant 0 : index
    %83 = vector.load %arg7[%c0_125, %c0_126, %c0_127, %c0_128] : memref<1x8x8x128xf32, #tpu.memory_space<vmem>>, vector<1x8x8x128xf32>
    tpu.vector_store %arg7[%c0_125, %c0_126, %c0_127, %c0_128], %82 {strides = array<i32>} : memref<1x8x8x128xf32, #tpu.memory_space<vmem>>, vector<1x8x8x128xf32>,
    return
  }
  func.func @transform_0(%arg0: i32) -> (i32, i32, i32, i32) {
    %c0_i32 = arith.constant 0 : i32
    %c0_i32_0 = arith.constant 0 : i32
    %c0_i32_1 = arith.constant 0 : i32
    %c0_i32_2 = arith.constant 0 : i32
    return %arg0, %c0_i32, %c0_i32_0, %c0_i32_1 : i32, i32, i32, i32
  }
  func.func @transform_1(%arg0: i32) -> (i32, i32, i32) {
    %c0_i32 = arith.constant 0 : i32
    %c0_i32_0 = arith.constant 0 : i32
    %c0_i32_1 = arith.constant 0 : i32
    %c0_i32_2 = arith.constant 0 : i32
    return %c0_i32, %c0_i32_0, %c0_i32_1 : i32, i32, i32
  }
  func.func @transform_2(%arg0: i32) -> (i32, i32) {
    %c0_i32 = arith.constant 0 : i32
    %c0_i32_0 = arith.constant 0 : i32
    %c0_i32_1 = arith.constant 0 : i32
    return %c0_i32, %c0_i32_0 : i32, i32
  }
  func.func @transform_3(%arg0: i32) -> (i32, i32) {
    %c0_i32 = arith.constant 0 : i32
    %c0_i32_0 = arith.constant 0 : i32
    %c0_i32_1 = arith.constant 0 : i32
    return %c0_i32, %c0_i32_0 : i32, i32
  }
  func.func @transform_4(%arg0: i32) -> (i32, i32) {
    %c0_i32 = arith.constant 0 : i32
    %c0_i32_0 = arith.constant 0 : i32
    %c0_i32_1 = arith.constant 0 : i32
    return %c0_i32, %c0_i32_0 : i32, i32
  }
  func.func @transform_5(%arg0: i32) -> (i32, i32) {
    %c0_i32 = arith.constant 0 : i32
    %c0_i32_0 = arith.constant 0 : i32
    %c0_i32_1 = arith.constant 0 : i32
    return %c0_i32, %c0_i32_0 : i32, i32
  }
  func.func @transform_6(%arg0: i32) -> (i32, i32, i32, i32) {
    %c0_i32 = arith.constant 0 : i32
    %c0_i32_0 = arith.constant 0 : i32
    %c0_i32_1 = arith.constant 0 : i32
    %c0_i32_2 = arith.constant 0 : i32
    return %arg0, %c0_i32, %c0_i32_0, %c0_i32_1 : i32, i32, i32, i32
  }
}

module attributes {stable_mosaic.version = 11 : i64} {
  func.func @_fc_fused_kernel(%arg0: i32, %arg1: memref<2x32xbf16, #tpu.memory_space<vmem>>, %arg2: memref<32x1024xbf16, #tpu.memory_space<vmem>>, %arg3: memref<1x1024xf32, #tpu.memory_space<vmem>>, %arg4: memref<1x1024xf32, #tpu.memory_space<vmem>>, %arg5: memref<1024x1024xbf16, #tpu.memory_space<vmem>>, %arg6: memref<1x1024xf32, #tpu.memory_space<vmem>>, %arg7: memref<1x1024xf32, #tpu.memory_space<vmem>>, %arg8: memref<2x1024xbf16, #tpu.memory_space<vmem>>) attributes {dimension_semantics = [#tpu.dimension_semantics<parallel>], iteration_bounds = array<i64: 2>, scalar_prefetch = 0 : i64, scratch_operands = 0 : i64, tpu.core_type = #tpu.core_type<tc>, window_params = [{pipeline_mode = #tpu.pipeline_mode<synchronous>, transform_indices = @transform_0, window_bounds = array<i64: 2, 32>}, {pipeline_mode = #tpu.pipeline_mode<synchronous>, transform_indices = @transform_1, window_bounds = array<i64: 32, 1024>}, {pipeline_mode = #tpu.pipeline_mode<synchronous>, transform_indices = @transform_2, window_bounds = array<i64: 1, 1024>}, {pipeline_mode = #tpu.pipeline_mode<synchronous>, transform_indices = @transform_3, window_bounds = array<i64: 1, 1024>}, {transform_indices = @transform_4, window_bounds = array<i64: 1024, 1024>}, {transform_indices = @transform_5, window_bounds = array<i64: 1, 1024>}, {transform_indices = @transform_6, window_bounds = array<i64: 1, 1024>}, {transform_indices = @transform_7, window_bounds = array<i64: 2, 1024>}]} {
    %c0 = arith.constant 0 : index
    %c0_0 = arith.constant 0 : index
    %0 = vector.load %arg1[%c0, %c0_0] : memref<2x32xbf16, #tpu.memory_space<vmem>>, vector<2x32xbf16>
    %c0_1 = arith.constant 0 : index
    %c0_2 = arith.constant 0 : index
    %1 = vector.load %arg2[%c0_1, %c0_2] : memref<32x1024xbf16, #tpu.memory_space<vmem>>, vector<32x1024xbf16>
    %cst = arith.constant dense<0.000000e+00> : vector<2x1024xf32>
    %2 = tpu.matmul %0, %1, %cst {dimension_numbers = #tpu.dot_dimension_numbers<[1], [0], [0], [1], [0, 0, 1, 1], [], []>} : vector<2x32xbf16>, vector<32x1024xbf16>, vector<2x1024xf32> -> vector<2x1024xf32>
    %c0_3 = arith.constant 0 : index
    %c0_4 = arith.constant 0 : index
    %3 = vector.load %arg3[%c0_3, %c0_4] : memref<1x1024xf32, #tpu.memory_space<vmem>>, vector<1x1024xf32>
    %4 = vector.broadcast %3 : vector<1x1024xf32> to vector<2x1024xf32>
    %5 = arith.mulf %2, %4 : vector<2x1024xf32>
    %c0_5 = arith.constant 0 : index
    %c0_6 = arith.constant 0 : index
    %6 = vector.load %arg4[%c0_5, %c0_6] : memref<1x1024xf32, #tpu.memory_space<vmem>>, vector<1x1024xf32>
    %7 = vector.broadcast %6 : vector<1x1024xf32> to vector<2x1024xf32>
    %8 = arith.addf %5, %7 : vector<2x1024xf32>
    %cst_7 = arith.constant 0.000000e+00 : f32
    %9 = vector.broadcast %cst_7 : f32 to vector<2x1024xf32>
    %10 = arith.maximumf %8, %9 : vector<2x1024xf32>
    %11 = arith.truncf %10 : vector<2x1024xf32> to vector<2x1024xbf16>
    %c0_8 = arith.constant 0 : index
    %c0_9 = arith.constant 0 : index
    %12 = vector.load %arg5[%c0_8, %c0_9] : memref<1024x1024xbf16, #tpu.memory_space<vmem>>, vector<1024x1024xbf16>
    %cst_10 = arith.constant dense<0.000000e+00> : vector<2x1024xf32>
    %13 = tpu.matmul %11, %12, %cst_10 {dimension_numbers = #tpu.dot_dimension_numbers<[1], [0], [0], [1], [0, 0, 1, 1], [], []>} : vector<2x1024xbf16>, vector<1024x1024xbf16>, vector<2x1024xf32> -> vector<2x1024xf32>
    %c0_11 = arith.constant 0 : index
    %c0_12 = arith.constant 0 : index
    %14 = vector.load %arg6[%c0_11, %c0_12] : memref<1x1024xf32, #tpu.memory_space<vmem>>, vector<1x1024xf32>
    %15 = vector.broadcast %14 : vector<1x1024xf32> to vector<2x1024xf32>
    %16 = arith.mulf %13, %15 : vector<2x1024xf32>
    %c0_13 = arith.constant 0 : index
    %c0_14 = arith.constant 0 : index
    %17 = vector.load %arg7[%c0_13, %c0_14] : memref<1x1024xf32, #tpu.memory_space<vmem>>, vector<1x1024xf32>
    %18 = vector.broadcast %17 : vector<1x1024xf32> to vector<2x1024xf32>
    %19 = arith.addf %16, %18 : vector<2x1024xf32>
    %cst_15 = arith.constant 0.000000e+00 : f32
    %20 = vector.broadcast %cst_15 : f32 to vector<2x1024xf32>
    %21 = arith.maximumf %19, %20 : vector<2x1024xf32>
    %22 = arith.truncf %21 : vector<2x1024xf32> to vector<2x1024xbf16>
    %c0_16 = arith.constant 0 : index
    %c0_17 = arith.constant 0 : index
    %23 = vector.load %arg8[%c0_16, %c0_17] : memref<2x1024xbf16, #tpu.memory_space<vmem>>, vector<2x1024xbf16>
    tpu.vector_store %arg8[%c0_16, %c0_17], %22 {strides = array<i32>} : memref<2x1024xbf16, #tpu.memory_space<vmem>>, vector<2x1024xbf16>,
    return
  }
  func.func @transform_0(%arg0: i32) -> (i32, i32) {
    %c0_i32 = arith.constant 0 : i32
    %c0_i32_0 = arith.constant 0 : i32
    %c0_i32_1 = arith.constant 0 : i32
    return %c0_i32, %c0_i32_0 : i32, i32
  }
  func.func @transform_1(%arg0: i32) -> (i32, i32) {
    %c0_i32 = arith.constant 0 : i32
    %c0_i32_0 = arith.constant 0 : i32
    %c0_i32_1 = arith.constant 0 : i32
    return %c0_i32, %c0_i32_0 : i32, i32
  }
  func.func @transform_2(%arg0: i32) -> (i32, i32) {
    %c0_i32 = arith.constant 0 : i32
    %c0_i32_0 = arith.constant 0 : i32
    %c0_i32_1 = arith.constant 0 : i32
    return %c0_i32, %c0_i32_0 : i32, i32
  }
  func.func @transform_3(%arg0: i32) -> (i32, i32) {
    %c0_i32 = arith.constant 0 : i32
    %c0_i32_0 = arith.constant 0 : i32
    %c0_i32_1 = arith.constant 0 : i32
    return %c0_i32, %c0_i32_0 : i32, i32
  }
  func.func @transform_4(%arg0: i32) -> (i32, i32) {
    %c0_i32 = arith.constant 0 : i32
    %c0_i32_0 = arith.constant 0 : i32
    return %c0_i32, %arg0 : i32, i32
  }
  func.func @transform_5(%arg0: i32) -> (i32, i32) {
    %c0_i32 = arith.constant 0 : i32
    %c0_i32_0 = arith.constant 0 : i32
    return %c0_i32, %arg0 : i32, i32
  }
  func.func @transform_6(%arg0: i32) -> (i32, i32) {
    %c0_i32 = arith.constant 0 : i32
    %c0_i32_0 = arith.constant 0 : i32
    return %c0_i32, %arg0 : i32, i32
  }
  func.func @transform_7(%arg0: i32) -> (i32, i32) {
    %c0_i32 = arith.constant 0 : i32
    %c0_i32_0 = arith.constant 0 : i32
    return %c0_i32, %arg0 : i32, i32
  }
}

</mosaic_0001>

<bundles_post_ra>
// kernel: generator_forward_pallas.3
= control target key start
LH: loop header
LB: loop body
LE: loop exit
PB: predicated region body
PF: predicated region fallthrough
CT: control target
= control target key end

     0   :  { %s4978_s21 = smov 0   ;;  %s6290_s0 = inlined_call_operand.vmem [shape: bf16[2,4,4,128], index: 0, kind: input, shape index: {}]   ;;  %s6291_s1 = inlined_call_operand.vmem [shape: bf16[2,768,128], index: 1, kind: input, shape index: {}]   ;;  %s6292_s2 = inlined_call_operand.vmem [shape: f32[1,128], index: 2, kind: input, shape index: {}]   ;;  %s6293_s3 = inlined_call_operand.vmem [shape: f32[1,128], index: 3, kind: input, shape index: {}]   ;;  %s6294_s4 = inlined_call_operand.vmem [shape: bf16[576,128], index: 4, kind: input, shape index: {}]   ;;  %s6295_s5 = inlined_call_operand.vmem [shape: f32[1,128], index: 5, kind: input, shape index: {}]   ;;  %s6296_s6 = inlined_call_operand.vmem [shape: f32[2,8,8,128], index: 6, kind: output, shape index: {}]  }
   0x1 LB: > { %s4065_s22 = sadd.s32 4294967295, %s4936_s21   ;;  %p4069_p0 = scmp.ge.s32.totalorder %s4936_s21, 1  ;;  %s4936_s21 = sphi %s4978_s21, %s16_s21  }
   0x2   : > { %p212_p1 = scmp.lt.s32.totalorder %s4936_s21, 3 }
   0x4   : > { %p213_p2 = pnand %p4069_p0, %p212_p1 }
   0x6   : > { %216 = sbr.rel (%p213_p2) target bundleno = 923 (0x39b), region = 44 }
   0xd   : > { %v4700_v0 = vld [vmem:[%s6291_s1 + $0xc0] sm:$0xff]   ;;  %v4938_v3 = vmov 0   ;;  %v4704_v5 = vld [vmem:[%s6291_s1 + $0xc8] sm:$0xff]   ;;  %v4708_v9 = vld [vmem:[%s6291_s1 + $0xd0] sm:$0xff]   ;;  %p242_p3 = scmp.lt.s32.totalorder %s4065_s22, 1  ;;  %vm328_vm0 = vcmask 1042432  }
   0xe   : > { %v4701_v1 = vld [vmem:[%s6291_s1 + $0x40] sm:$0xff]   ;;  %4465 = vmatprep.subr.bf16.mxu1 %v4700_v0  ;;  %253 = vst [vmem:[#allocation2] sm:$0x7] %v4938_v3  ;;  %254 = vst [vmem:[#allocation2 + $0x4] sm:$0x7] %v4938_v3  ;;  %v4705_v6 = vld [vmem:[%s6291_s1 + $0x48] sm:$0xff]  }
   0xf   : > { %v4702_v2 = vld [vmem:[%s6291_s1 + $0x80] sm:$0xff]   ;;  %255 = vst [vmem:[#allocation2 + $0x8] sm:$0x7] %v4938_v3  ;;  %256 = vst [vmem:[#allocation2 + $0xc] sm:$0x7] %v4938_v3  ;;  %4443 = vmatprep.subr.bf16.mxu0 %v4701_v1  ;;  %v4706_v7 = vld [vmem:[%s6291_s1 + $0x88] sm:$0xff]  }
  0x10   : > { %257 = vst [vmem:[#allocation2 + $0x10] sm:$0x7] %v4938_v3  ;;  %258 = vst [vmem:[#allocation2 + $0x14] sm:$0x7] %v4938_v3  ;;  %v4703_v4 = vld [vmem:[%s6291_s1] sm:$0xff]   ;;  %4466 = vmatpush3.bf16.msra.mxu1 %v4702_v2  ;;  %v4707_v8 = vld [vmem:[%s6291_s1 + $0x8] sm:$0xff]  }
  0x11   : > { %4444 = vmatpush3.bf16.msra.mxu0 %v4703_v4  ;;  %4467 = vmatprep.subr.bf16.mxu1 %v4704_v5  ;;  %v4709_v10 = vld [vmem:[%s6291_s1 + $0x50] sm:$0xff]   ;;  %v4712_v13 = vld [vmem:[%s6291_s1 + $0xd8] sm:$0xff]   ;;  %v4716_v17 = vld [vmem:[%s6291_s1 + $0xe0] sm:$0xff]   ;;  %s6319_s22 = smov (!%p242_p3, %s4065_s22), 1  ;;  %vm329_vm1 = vsmask.f32 2306  ;;  %v514_v5 = vlaneseq }
  0x12   : > { %4445 = vmatprep.subr.bf16.mxu0 %v4705_v6  ;;  %v4710_v11 = vld [vmem:[%s6291_s1 + $0x90] sm:$0xff]   ;;  %v4713_v14 = vld [vmem:[%s6291_s1 + $0x58] sm:$0xff]   ;;  %v4717_v18 = vld [vmem:[%s6291_s1 + $0x60] sm:$0xff]   ;;  %s4441_s9 = sshll.u32 %s6319_s22, 3  ;;  %v4939_v2 = vmov 1983009808  }
  0x13   : > { %v4711_v12 = vld [vmem:[%s6291_s1 + $0x10] sm:$0xff]   ;;  %v4714_v15 = vld [vmem:[%s6291_s1 + $0x98] sm:$0xff]   ;;  %v4718_v19 = vld [vmem:[%s6291_s1 + $0xa0] sm:$0xff]   ;;  %s246_s18 = scalar_lea.vmem %s6290_s0, %s4441_s9  ;;  %v512_v4 = vunpack.c.l.s4 %v4939_v2  ;;  %s4941_s25 = smov 64   ;;  %vm343_vm3 = vcmask 519168   ;;  %vm345_vm4 = vcmask 516096  }
  0x14   : > { %4468 = vmatpush3.bf16.msra.mxu1 %v4706_v7  ;;  %v4715_v16 = vld [vmem:[%s6291_s1 + $0x18] sm:$0xff]   ;;  %v4719_v20 = vld [vmem:[%s6291_s1 + $0x20] sm:$0xff]   ;;  %v4720_v21 = vld [vmem:[%s6291_s1 + $0xe8] sm:$0xff]   ;;  %347 = vst.msk [vmem:[#allocation3 + $0x8] sm:$0xf] %vm343_vm3, %v4938_v3  ;;  %vm1407_vm5 = vcmask 1040384  }
  0x15   : > { %4446 = vmatpush3.bf16.msra.mxu0 %v4707_v8  ;;  %4469 = vmatprep.subr.bf16.mxu1 %v4708_v9  ;;  %v4721_v22 = vld [vmem:[%s6291_s1 + $0x68] sm:$0xff]   ;;  %v4724_v25 = vld [vmem:[%s6291_s1 + $0xf0] sm:$0xff]   ;;  %v4728_v29 = vld [vmem:[%s6291_s1 + $0xf8] sm:$0xff]   ;;  %v513_v8 = vunpack.c.0.s8 %v512_v4  ;;  %v5118_v9 = vshrl.u32 %v514_v5, 7  ;;  %344 = vst.msk [vmem:[#allocation3] sm:$0xf] %vm343_vm3, %v4938_v3 }
  0x16   : > { %4447 = vmatprep.subr.bf16.mxu0 %v4709_v10  ;;  %v4722_v23 = vld [vmem:[%s6291_s1 + $0xa8] sm:$0xff]   ;;  %v4725_v26 = vld [vmem:[%s6291_s1 + $0x70] sm:$0xff]   ;;  %v4729_v30 = vld [vmem:[%s6291_s1 + $0x78] sm:$0xff]   ;;  %349 = vst.msk [vmem:[#allocation3 + $0x10] sm:$0xf] %vm343_vm3, %v4938_v3  ;;  %vm3287_vm11 = vcmask 523264  }
  0x17   : > { %v4723_v24 = vld [vmem:[%s6291_s1 + $0x28] sm:$0xff]   ;;  %v4726_v27 = vld [vmem:[%s6291_s1 + $0xb0] sm:$0xff]   ;;  %v4730_v31 = vld [vmem:[%s6291_s1 + $0xb8] sm:$0xff]   ;;  %351 = vst.msk [vmem:[#allocation3 + $0x18] sm:$0xf] %vm343_vm3, %v4938_v3  ;;  %s4442_s12 = sshll.u32 %s6319_s22, 6 }
  0x18   : > { %4470 = vmatpush3.bf16.msra.mxu1 %v4710_v11  ;;  %v4727_v28 = vld [vmem:[%s6291_s1 + $0x30] sm:$0xff]   ;;  %v4731_v32 = vld [vmem:[%s6291_s1 + $0x38] sm:$0xff]   ;;  %v4074_v33 = vld.sshfl [vmem:[%s246_s18] sm:$0x3 pattern:$0x76325410]  ;;  %s251_s15 = scalar_lea.vmem %s6296_s6, %s4442_s12 }
  0x19   : > { %4448 = vmatpush3.bf16.msra.mxu0 %v4711_v12  ;;  %4471 = vmatprep.subr.bf16.mxu1 %v4712_v13  ;;  %v4075_v34 = vld.sshfl [vmem:[%s246_s18 + $0x2] sm:$0x3 pattern:$0x76325410]  ;;  %v296_v35 = vshrl.u32 %v4074_v33, 16  ;;  %v299_v36 = vshll.u32 %v4074_v33, 16  ;;  %vm5100_vm2 = vmand %vm328_vm0, %vm329_vm1 }
  0x1a   : > { %4449 = vmatprep.subr.bf16.mxu0 %v4713_v14  ;;  %v4076_v37 = vld.sshfl [vmem:[%s246_s18 + $0x4] sm:$0x3 pattern:$0x76325410]  ;;  %v303_v38 = vshrl.u32 %v4075_v34, 16  ;;  %v306_v39 = vshll.u32 %v4075_v34, 16 }
  0x1b   : > { %v4077_v40 = vld.sshfl [vmem:[%s246_s18 + $0x6] sm:$0x3 pattern:$0x76325410]  ;;  %v298_v41 = vrot.slane %v296_v35, 7  ;;  %v310_v42 = vshrl.u32 %v4076_v37, 16 }
  0x1c   : > { %4472 = vmatpush3.bf16.msra.mxu1 %v4714_v15  ;;  %v305_v43 = vrot.slane %v303_v38, 7  ;;  %v313_v44 = vshll.u32 %v4076_v37, 16  ;;  %v317_v45 = vshrl.u32 %v4077_v40, 16  ;;  %v320_v46 = vshll.u32 %v4077_v40, 16  ;;  %v331_v48 = vld [vmem:[#allocation2 + $0x4] sm:$0x7] }
  0x1d   : > { %4450 = vmatpush3.bf16.msra.mxu0 %v4715_v16  ;;  %4473 = vmatprep.subr.bf16.mxu1 %v4716_v17  ;;  %v301_v49 = vor.u32 %v299_v36, %v298_v41  ;;  %v312_v50 = vrot.slane %v310_v42, 7  ;;  %v334_v51 = vld [vmem:[#allocation2 + $0x8] sm:$0x7]  ;;  %v4740_v52 = vld [vmem:[%s6291_s1 + $0x1c0] sm:$0xff]   ;;  %v337_v55 = vld [vmem:[#allocation2 + $0xc] sm:$0x7]  ;;  %v5128_v16 = vsub.s32 %v513_v8, %v5118_v9 }
  0x1e   : > { %4451 = vmatprep.subr.bf16.mxu0 %v4717_v18  ;;  %v308_v53 = vor.u32 %v306_v39, %v305_v43  ;;  %v319_v54 = vrot.slane %v317_v45, 7  ;;  %v4745_v56 = vld [vmem:[%s6291_s1 + $0x140] sm:$0xff]   ;;  %v4732_v62 = vld [vmem:[#allocation2] ss:$0 sps:$4 sm:$0x66]  }
  0x1f   : > { %v315_v57 = vor.u32 %v313_v44, %v312_v50  ;;  %v332_v58 = vsel %vm5100_vm2, %v301_v49, %v331_v48  ;;  %v340_v59 = vld [vmem:[#allocation2 + $0x10] sm:$0x7]  ;;  %v4741_v0 = vld [vmem:[#allocation2] ss:$0 sps:$4 sm:$0x77]   ;;  %v441_v7 = vrot.slane %v4732_v62, 1 }
  0x20   : > { %4474 = vmatpush3.bf16.msra.mxu1 %v4718_v19  ;;  %v322_v60 = vor.u32 %v320_v46, %v319_v54  ;;  %333 = vst [vmem:[#allocation2 + $0x4] sm:$0x7] %v332_v58  ;;  %v335_v61 = vsel %vm5100_vm2, %v308_v53, %v334_v51  ;;  %v404_v6 = vshll.u32 %v4741_v0, 16  ;;  %v402_v11 = vshrl.u32 %v4741_v0, 16  ;;  %v365_v44 = vld [vmem:[#allocation2] sm:$0x3] }
  0x21   : > { %4452 = vmatpush3.bf16.msra.mxu0 %v4719_v20  ;;  %4475 = vmatprep.subr.bf16.mxu1 %v4720_v21  ;;  %336 = vst [vmem:[#allocation2 + $0x8] sm:$0x7] %v335_v61  ;;  %v338_v63 = vsel %vm5100_vm2, %v315_v57, %v337_v55  ;;  %353 = vst.msk [vmem:[#allocation3 + $0x20] sm:$0xf] %vm343_vm3, %v4938_v3  ;;  %vm1408_vm6 = vsmask.f32 256 }
  0x22   : > { %4453 = vmatprep.subr.bf16.mxu0 %v4721_v22  ;;  %339 = vst [vmem:[#allocation2 + $0xc] sm:$0x7] %v338_v63  ;;  %v341_v1 = vsel %vm5100_vm2, %v322_v60, %v340_v59  ;;  %v406_v12 = vrot.slane %v404_v6, 1  ;;  %355 = vst.msk [vmem:[#allocation3 + $0x28] sm:$0xf] %vm343_vm3, %v4938_v3 }
  0x23   : > { %342 = vst [vmem:[#allocation2 + $0x10] sm:$0x7] %v341_v1  ;;  %357 = vst.msk [vmem:[#allocation3 + $0x30] sm:$0xf] %vm343_vm3, %v4938_v3  ;;  %vm2706_vm8 = vsmask.f32 7938 }
  0x24   : > { %4476 = vmatpush3.bf16.msra.mxu1 %v4722_v23  ;;  %359 = vst.msk [vmem:[#allocation3 + $0x38] sm:$0xf] %vm343_vm3, %v4938_v3  ;;  %361 = vst.msk [vmem:[#allocation3 + $0x40] sm:$0xf] %vm343_vm3, %v4938_v3 }
  0x25   : > { %4454 = vmatpush3.bf16.msra.mxu0 %v4723_v24  ;;  %4477 = vmatprep.subr.bf16.mxu1 %v4724_v25  ;;  %v5132_v25 = vor.u32 %v406_v12, %v402_v11  ;;  %363 = vst.msk [vmem:[#allocation3 + $0x48] sm:$0xf] %vm343_vm3, %v4938_v3  ;;  %vm5672_vm7 = vmand %vm1407_vm5, %vm1408_vm6 }
  0x26   : > { %4455 = vmatprep.subr.bf16.mxu0 %v4725_v26  ;;  %348 = vst.msk [vmem:[#allocation3 + $0xc] sm:$0x1] %vm345_vm4, %v4938_v3  ;;  %346 = vst.msk [vmem:[#allocation3 + $0x4] sm:$0x1] %vm345_vm4, %v4938_v3 }
  0x27   : > { %v5120_v10 = vld [vmem:[#allocation2 + $0x4] sm:$0x3]  ;;  %v509_v58 = vcombine.low %v365_v44, %v5132_v25  ;;  %v4756_v44 = vld [vmem:[%s6291_s1 + $0x1d8] sm:$0xff]   ;;  %350 = vst.msk [vmem:[#allocation3 + $0x14] sm:$0x1] %vm345_vm4, %v4938_v3  ;;  %vm5716_vm9 = vmand %vm345_vm4, %vm1408_vm6 }
  0x28   : > { %4478 = vmatpush3.bf16.msra.mxu1 %v4726_v27  ;;  %v5122_v13 = vld [vmem:[#allocation2 + $0x8] sm:$0x3]  ;;  %v510_v15 = vcombine.low %v441_v7, %v5120_v10  ;;  %v4733_v18 = vld [vmem:[#allocation2 + $0x4] ss:$0 sps:$4 sm:$0x66]   ;;  %vm5722_vm10 = vmand %vm343_vm3, %vm2706_vm8 }
  0x29   : > { %4456 = vmatpush3.bf16.msra.mxu0 %v4727_v28  ;;  %4479 = vmatprep.subr.bf16.mxu1 %v4728_v29  ;;  %v5124_v14 = vld [vmem:[#allocation2 + $0xc] sm:$0x3]  ;;  %v4734_v19 = vld [vmem:[#allocation2 + $0x8] ss:$0 sps:$4 sm:$0x66]   ;;  %v442_v22 = vrot.slane %v4733_v18, 1 }
  0x2a   : > { %4457 = vmatprep.subr.bf16.mxu0 %v4729_v30  ;;  %v5130_v17 = vld [vmem:[#allocation2 + $0x10] sm:$0x3]  ;;  %v4735_v20 = vld [vmem:[#allocation2 + $0xc] ss:$0 sps:$4 sm:$0x66]   ;;  %v443_v23 = vrot.slane %v4734_v19, 1  ;;  %v524_v30 = vrot.slane %v510_v15, %v5128_v16 }
  0x2b   : > { %v4736_v21 = vld [vmem:[#allocation2 + $0x4] ss:$0 sps:$4 sm:$0x77]   ;;  %v4737_v24 = vld [vmem:[#allocation2 + $0x8] ss:$0 sps:$4 sm:$0x77]   ;;  %v535_v34 = vcombine.low %v442_v22, %v5122_v13 }
  0x2c   : > { %4480 = vmatpush3.bf16.msra.mxu1 %v4730_v31  ;;  %v444_v26 = vrot.slane %v4735_v20, 1  ;;  %v4738_v27 = vld [vmem:[#allocation2 + $0xc] ss:$0 sps:$4 sm:$0x77]   ;;  %v458_v28 = vshrl.u32 %v4736_v21, 16  ;;  %v460_v29 = vshll.u32 %v4736_v21, 16  ;;  %v560_v35 = vcombine.low %v443_v23, %v5124_v14 }
  0x2d   : > { %4458 = vmatpush3.bf16.msra.mxu0 %v4731_v32  ;;  %4509 = vmatprep.subr.bf16.mxu1 %v4740_v52  ;;  %v4739_v31 = vld [vmem:[#allocation2 + $0x10] ss:$0 sps:$4 sm:$0x77]   ;;  %v465_v32 = vshrl.u32 %v4737_v24, 16  ;;  %v467_v33 = vshll.u32 %v4737_v24, 16  ;;  %v472_v37 = vshrl.u32 %v4738_v27, 16  ;;  %v549_v43 = vrot.slane %v535_v34, %v5128_v16 }
  0x2e   : > { %4487 = vmatprep.subr.bf16.mxu0 %v4745_v56  ;;  %v462_v36 = vrot.slane %v460_v29, 1  ;;  %v474_v38 = vshll.u32 %v4738_v27, 16  ;;  %v585_v39 = vcombine.low %v444_v26, %v5130_v17  ;;  %v479_v41 = vshrl.u32 %v4739_v31, 16  ;;  %v4742_v52 = vld [vmem:[#allocation2 + $0x4] ss:$0 sps:$4 sm:$0x77]  }
  0x2f   : > { %v469_v40 = vrot.slane %v467_v33, 1  ;;  %v481_v42 = vshll.u32 %v4739_v31, 16  ;;  %v574_v47 = vrot.slane %v560_v35, %v5128_v16  ;;  %v4095_v51 = vcombine.low %v524_v30, %v549_v43  ;;  %v4743_v56 = vld [vmem:[#allocation2 + $0x8] ss:$0 sps:$4 sm:$0x77]   ;;  %v4750_v30 = vld [vmem:[%s6291_s1 + $0x188] sm:$0xff]  }
  0x30   : > { %v5139_v45 = vor.u32 %v462_v36, %v458_v28  ;;  %v476_v46 = vrot.slane %v474_v38, 1  ;;  %v599_v48 = vrot.slane %v585_v39, %v5128_v16  ;;  %v4744_v57 = vld [vmem:[#allocation2 + $0xc] ss:$0 sps:$4 sm:$0x77]   ;;  %v409_v62 = vshrl.u32 %v4742_v52, 16  ;;  %v4752_v34 = vld [vmem:[%s6291_s1 + $0x1d0] sm:$0xff]  }
  0x31   : > { %v5143_v49 = vor.u32 %v469_v40, %v465_v32  ;;  %v483_v50 = vrot.slane %v481_v42, 1  ;;  %v722_v60 = vrot.slane %v4095_v51, %v5128_v16  ;;  %v411_v1 = vshll.u32 %v4742_v52, 16  ;;  %v366_v5 = vld [vmem:[#allocation2 + $0x4] sm:$0x3]  ;;  %v367_v12 = vld [vmem:[#allocation2 + $0x8] sm:$0x3] }
  0x32   : > { %v5145_v53 = vor.u32 %v476_v46, %v472_v37  ;;  %v4097_v54 = vcombine.low %v574_v47, %v599_v48  ;;  %v1499_v55 = vcombine.low %v5120_v10, %v5139_v45  ;;  %v416_v2 = vshrl.u32 %v4743_v56, 16  ;;  %v4746_v10 = vld [vmem:[%s6291_s1 + $0x180] sm:$0xff]   ;;  %352 = vst.msk [vmem:[#allocation3 + $0x1c] sm:$0x1] %vm345_vm4, %v4938_v3  ;;  %354 = vst.msk [vmem:[#allocation3 + $0x24] sm:$0x1] %vm345_vm4, %v4938_v3 }
  0x33   : > { %v5150_v59 = vor.u32 %v483_v50, %v479_v41  ;;  %v1524_v61 = vcombine.low %v5122_v13, %v5143_v49  ;;  %v418_v6 = vshll.u32 %v4743_v56, 16  ;;  %v423_v7 = vshrl.u32 %v4744_v57, 16  ;;  %v368_v13 = vld [vmem:[#allocation2 + $0xc] sm:$0x3]  ;;  %v4754_v41 = vld [vmem:[%s6291_s1 + $0x190] sm:$0xff]   ;;  %v4747_v48 = vld [vmem:[%s6291_s1 + $0x100] sm:$0xff]  }
  0x34   : > { %v736_v63 = vrot.slane %v4097_v54, %v5128_v16  ;;  %v1549_v0 = vcombine.low %v5124_v14, %v5145_v53  ;;  %v425_v8 = vshll.u32 %v4744_v57, 16  ;;  %v413_v15 = vrot.slane %v411_v1, 1  ;;  %v4748_v14 = vld [vmem:[%s6291_s1 + $0x1c8] sm:$0xff]   ;;  %v4758_v50 = vld [vmem:[%s6291_s1 + $0x198] sm:$0xff]   ;;  %v4760_v54 = vld [vmem:[%s6291_s1 + $0x1e0] sm:$0xff]  }
  0x35   : > { %v1574_v4 = vcombine.low %v5130_v17, %v5150_v59  ;;  %v1507_v19 = vrot.slane %v1499_v55, %v5128_v16  ;;  %v420_v17 = vrot.slane %v418_v6, 1  ;;  %v1532_v21 = vrot.slane %v1524_v61, %v5128_v16  ;;  %v4749_v55 = vld [vmem:[%s6291_s1 + $0x148] sm:$0xff]   ;;  %v4762_v57 = vld [vmem:[%s6291_s1 + $0x1a0] sm:$0xff]   ;;  %v4755_v61 = vld [vmem:[%s6291_s1 + $0x110] sm:$0xff]   ;;  %356 = vst.msk [vmem:[#allocation3 + $0x2c] sm:$0x1] %vm345_vm4, %v4938_v3 }
  0x36   : > { %v740_v11 = vcombine.high %v722_v60, %v736_v63  ;;  %v739_v18 = vcombine.low %v722_v60, %v736_v63  ;;  %v427_v20 = vrot.slane %v425_v8, 1  ;;  %v1557_v22 = vrot.slane %v1549_v0, %v5128_v16  ;;  %v4751_v56 = vld [vmem:[%s6291_s1 + $0x108] sm:$0xff]   ;;  %v4753_v60 = vld [vmem:[%s6291_s1 + $0x150] sm:$0xff]   ;;  %v4761_v6 = vld [vmem:[%s6291_s1 + $0x160] sm:$0xff]   ;;  %358 = vst.msk [vmem:[#allocation3 + $0x34] sm:$0x1] %vm345_vm4, %v4938_v3 }
  0x37   : > { %v414_v23 = vor.u32 %v413_v15, %v409_v62  ;;  %v1582_v24 = vrot.slane %v1574_v4, %v5128_v16  ;;  %v421_v25 = vor.u32 %v420_v17, %v416_v2  ;;  %v4261_v27 = vcombine.low %v1507_v19, %v1532_v21  ;;  %v4757_v62 = vld [vmem:[%s6291_s1 + $0x158] sm:$0xff]   ;;  %v4766_v63 = vld [vmem:[%s6291_s1 + $0x1a8] sm:$0xff]   ;;  %v4768_v0 = vld [vmem:[%s6291_s1 + $0x1f0] sm:$0xff]   ;;  %360 = vst.msk [vmem:[#allocation3 + $0x3c] sm:$0x1] %vm345_vm4, %v4938_v3 }
  0x38   : > { %1126 = vmatprep.mubr.bf16.mxu1 %v740_v11  ;;  %v428_v26 = vor.u32 %v427_v20, %v423_v7  ;;  %v517_v28 = vrot.slane %v509_v58, %v5128_v16  ;;  %v4764_v58 = vld [vmem:[%s6291_s1 + $0x1e8] sm:$0xff]   ;;  %v4770_v1 = vld [vmem:[%s6291_s1 + $0x1b0] sm:$0xff]   ;;  %v4759_v2 = vld [vmem:[%s6291_s1 + $0x118] sm:$0xff]   ;;  %362 = vst.msk [vmem:[#allocation3 + $0x44] sm:$0x1] %vm345_vm4, %v4938_v3 }
  0x39   : > { %1127 = vmatmul.mubr.bf16.vlgmr.msra.gmra.mrb[0].mxu1 %v739_v18  ;;  %v534_v29 = vcombine.low %v366_v5, %v414_v23  ;;  %v4263_v31 = vcombine.low %v1557_v22, %v1582_v24  ;;  %v559_v32 = vcombine.low %v367_v12, %v421_v25  ;;  %v5178_v35 = vrot.slane %v4261_v27, %v5128_v16  ;;  %v4772_v4 = vld [vmem:[%s6291_s1 + $0x1f8] sm:$0xff]   ;;  %v5241_v5 = vld [vmem:[#allocation2 + $0x4] ss:$0 sps:$4 sm:$0x66]   ;;  %v4763_v15 = vld [vmem:[%s6291_s1 + $0x120] sm:$0xff]  }
  0x3a   : > { %4510 = vmatpush3.bf16.msra.mxu1 %v4746_v10  ;;  %v584_v33 = vcombine.low %v368_v13, %v428_v26  ;;  %v5246_v7 = vld [vmem:[#allocation2 + $0x8] ss:$0 sps:$4 sm:$0x66]   ;;  %v5248_v8 = vld [vmem:[#allocation2 + $0xc] ss:$0 sps:$4 sm:$0x66]  }
  0x3b   : > { %4511 = vmatprep.subr.bf16.mxu1 %v4748_v14  ;;  %v542_v36 = vrot.slane %v534_v29, %v5128_v16  ;;  %v5182_v37 = vrot.slane %v4263_v31, %v5128_v16  ;;  %v567_v38 = vrot.slane %v559_v32, %v5128_v16  ;;  %v5250_v10 = vld [vmem:[#allocation2 + $0x10] ss:$0 sps:$4 sm:$0x66]   ;;  %v497_v11 = vrot.slane %v5241_v5, 1  ;;  %v4774_v19 = vld [vmem:[%s6291_s1 + $0x1b8] sm:$0xff]   ;;  %v4767_v24 = vld [vmem:[%s6291_s1 + $0x128] sm:$0xff]  }
  0x3c   : > { %v592_v39 = vrot.slane %v584_v33, %v5128_v16  ;;  %v498_v12 = vrot.slane %v5246_v7, 1  ;;  %v499_v13 = vrot.slane %v5248_v8, 1  ;;  %v500_v18 = vrot.slane %v5250_v10, 1  ;;  %v4780_v22 = vld [vmem:[%s6291_s1 + $0x2c0] sm:$0xff]   ;;  %v4784_v29 = vld [vmem:[%s6291_s1 + $0x2c8] sm:$0xff]   ;;  %v4771_v32 = vld [vmem:[%s6291_s1 + $0x130] sm:$0xff]  }
  0x3d   : > { %v4094_v40 = vcombine.low %v517_v28, %v542_v36  ;;  %v1729_v42 = vcombine.high %v5178_v35, %v5182_v37  ;;  %v526_v14 = vcombine.low %v5139_v45, %v497_v11  ;;  %v4782_v27 = vld [vmem:[%s6291_s1 + $0x280] sm:$0xff]   ;;  %v4788_v36 = vld [vmem:[%s6291_s1 + $0x2d0] sm:$0xff]   ;;  %364 = vst.msk [vmem:[#allocation3 + $0x4c] sm:$0x1] %vm345_vm4, %v4938_v3 }
  0x3e   : > { %4512 = vmatpush3.bf16.msra.mxu1 %v4750_v30  ;;  %v4096_v43 = vcombine.low %v567_v38, %v592_v39  ;;  %v551_v17 = vcombine.low %v5143_v49, %v498_v12  ;;  %v576_v20 = vcombine.low %v5145_v53, %v499_v13  ;;  %v601_v45 = vcombine.low %v5150_v59, %v500_v18  ;;  %v4765_v49 = vld [vmem:[%s6291_s1 + $0x168] sm:$0xff]   ;;  %v4769_v30 = vld [vmem:[%s6291_s1 + $0x170] sm:$0xff]   ;;  %v4775_v38 = vld [vmem:[%s6291_s1 + $0x138] sm:$0xff]  }
  0x3f   : > { %4513 = vmatprep.subr.bf16.mxu1 %v4752_v34  ;;  %v715_v46 = vrot.slane %v4094_v40, %v5128_v16  ;;  %2076 = vmatprep.mubr.bf16.mxu1 %v1729_v42  ;;  %v533_v21 = vrot.slane %v526_v14, %v5128_v16  ;;  %v1728_v59 = vcombine.low %v5178_v35, %v5182_v37  ;;  %v4786_v34 = vld [vmem:[%s6291_s1 + $0x288] sm:$0xff]   ;;  %v4773_v37 = vld [vmem:[%s6291_s1 + $0x178] sm:$0xff]   ;;  %v4790_v39 = vld [vmem:[%s6291_s1 + $0x290] sm:$0xff]  }
  0x40   : > { %v729_v47 = vrot.slane %v4096_v43, %v5128_v16  ;;  %v558_v23 = vrot.slane %v551_v17, %v5128_v16  ;;  %v583_v53 = vrot.slane %v576_v20, %v5128_v16  ;;  %v608_v25 = vrot.slane %v601_v45, %v5128_v16  ;;  %v4792_v40 = vld [vmem:[%s6291_s1 + $0x2d8] sm:$0xff]   ;;  %v4783_v42 = vld [vmem:[%s6291_s1 + $0x200] sm:$0xff]  }
  0x42   : > { %4514 = vmatpush3.bf16.msra.mxu1 %v4754_v41  ;;  %v738_v51 = vcombine.high %v715_v46, %v729_v47  ;;  %v737_v52 = vcombine.low %v715_v46, %v729_v47  ;;  %v741_v26 = vcombine.low %v533_v21, %v558_v23  ;;  %v742_v28 = vcombine.low %v583_v53, %v608_v25  ;;  %v4781_v41 = vld [vmem:[%s6291_s1 + $0x240] sm:$0xff]   ;;  %v4785_v47 = vld [vmem:[%s6291_s1 + $0x248] sm:$0xff]  }
  0x43   : > { %4515 = vmatprep.subr.bf16.mxu1 %v4756_v44  ;;  %v4794_v44 = vld [vmem:[%s6291_s1 + $0x298] sm:$0xff]   ;;  %v4796_v46 = vld [vmem:[%s6291_s1 + $0x2e0] sm:$0xff]  }
  0x44   : > { %1085 = vmatprep.mubr.bf16.mxu0 %v738_v51  ;;  %v749_v31 = vrot.slane %v741_v26, %v5128_v16  ;;  %v756_v33 = vrot.slane %v742_v28, %v5128_v16  ;;  %v4800_v51 = vld [vmem:[%s6291_s1 + $0x2e8] sm:$0xff]   ;;  %v4817_v28 = vld [vmem:[#allocation2 + $0xc] ss:$0 sps:$4 sm:$0x66]  }
  0x45   : > { %1086 = vmatmul.mubr.bf16.vlgmr.msra.gmra.mrb[0].mxu0 %v737_v52  ;;  %v4789_v52 = vld [vmem:[%s6291_s1 + $0x250] sm:$0xff]  }
  0x46   : > { %4516 = vmatpush3.bf16.msra.mxu1 %v4758_v50  ;;  %4488 = vmatpush3.bf16.msra.mxu0 %v4747_v48  ;;  %v758_v35 = vcombine.high %v749_v31, %v756_v33  ;;  %v757_v43 = vcombine.low %v749_v31, %v756_v33  ;;  %v4787_v48 = vld [vmem:[%s6291_s1 + $0x208] sm:$0xff]   ;;  %v4798_v50 = vld [vmem:[%s6291_s1 + $0x2a0] sm:$0xff]  }
  0x47   : > { %4517 = vmatprep.subr.bf16.mxu1 %v4760_v54  ;;  %4489 = vmatprep.subr.bf16.mxu0 %v4749_v55  ;;  %v4791_v54 = vld [vmem:[%s6291_s1 + $0x210] sm:$0xff]   ;;  %v4802_v55 = vld [vmem:[%s6291_s1 + $0x2a8] sm:$0xff]  }
  0x48   : > { %1167 = vmatprep.mubr.bf16.mxu0 %v758_v35  ;;  %v1492_v35 = vrot.slane %v4817_v28, 1 }
  0x4a   : > { %4518 = vmatpush3.bf16.msra.mxu1 %v4762_v57  ;;  %4490 = vmatpush3.bf16.msra.mxu0 %v4751_v56  ;;  %v4804_v56 = vld [vmem:[%s6291_s1 + $0x2f0] sm:$0xff]   ;;  %v4793_v57 = vld [vmem:[%s6291_s1 + $0x258] sm:$0xff]  }
  0x4b   : > { %4519 = vmatprep.subr.bf16.mxu1 %v4764_v58  ;;  %4491 = vmatprep.subr.bf16.mxu0 %v4753_v60  ;;  %v4795_v58 = vld [vmem:[%s6291_s1 + $0x218] sm:$0xff]   ;;  %v4797_v60 = vld [vmem:[%s6291_s1 + $0x260] sm:$0xff]  }
  0x4e   : > { %4520 = vmatpush3.bf16.msra.mxu1 %v4766_v63  ;;  %4492 = vmatpush3.bf16.msra.mxu0 %v4755_v61  ;;  %v4806_v61 = vld [vmem:[%s6291_s1 + $0x2b0] sm:$0xff]   ;;  %v4799_v63 = vld [vmem:[%s6291_s1 + $0x220] sm:$0xff]  }
  0x4f   : > { %4521 = vmatprep.subr.bf16.mxu1 %v4768_v0  ;;  %4493 = vmatprep.subr.bf16.mxu0 %v4757_v62  ;;  %v4808_v62 = vld [vmem:[%s6291_s1 + $0x2f8] sm:$0xff]  }
  0x50   : > { %v4810_v0 = vld [vmem:[%s6291_s1 + $0x2b8] sm:$0xff]  }
  0x52   : > { %4522 = vmatpush3.bf16.msra.mxu1 %v4770_v1  ;;  %4494 = vmatpush3.bf16.msra.mxu0 %v4759_v2  ;;  %v4812_v1 = vld [vmem:[#allocation2 + $0x8] ss:$0 sps:$4 sm:$0x77]   ;;  %v4813_v2 = vld [vmem:[#allocation2 + $0xc] ss:$0 sps:$4 sm:$0x77]  }
  0x53   : > { %4523 = vmatprep.subr.bf16.mxu1 %v4772_v4  ;;  %4495 = vmatprep.subr.bf16.mxu0 %v4761_v6  ;;  %v4814_v4 = vld [vmem:[#allocation2 + $0x10] ss:$0 sps:$4 sm:$0x77]   ;;  %v4801_v6 = vld [vmem:[%s6291_s1 + $0x268] sm:$0xff]   ;;  %v1452_v14 = vshrl.u32 %v4812_v1, 16  ;;  %v1459_v17 = vshrl.u32 %v4813_v2, 16 }
  0x54   : > { %v1461_v20 = vshll.u32 %v4813_v2, 16  ;;  %v1466_v21 = vshrl.u32 %v4814_v4, 16  ;;  %v1468_v45 = vshll.u32 %v4814_v4, 16 }
  0x56   : > { %4524 = vmatpush3.bf16.msra.mxu1 %v4774_v19  ;;  %4496 = vmatpush3.bf16.msra.mxu0 %v4763_v15  ;;  %v4815_v15 = vld [vmem:[#allocation2 + $0x14] ss:$0 sps:$4 sm:$0x77]   ;;  %v1454_v19 = vshll.u32 %v4812_v1, 16  ;;  %v1463_v26 = vrot.slane %v1461_v20, 1 }
  0x57   : > { %4553 = vmatprep.subr.bf16.mxu1 %v4780_v22  ;;  %4497 = vmatprep.subr.bf16.mxu0 %v4765_v49  ;;  %v1427_v22 = vld [vmem:[#allocation2 + $0x8] sm:$0x3]  ;;  %v1473_v23 = vshrl.u32 %v4815_v15, 16  ;;  %v1475_v53 = vshll.u32 %v4815_v15, 16 }
  0x58   : > { %v1456_v49 = vrot.slane %v1454_v19, 1  ;;  %v1500_v25 = vcombine.low %v497_v11, %v1427_v22  ;;  %v4819_v11 = vld [vmem:[#allocation2 + $0x14] ss:$0 sps:$4 sm:$0x66]  }
  0x59   : > { %2077 = vmatmul.mubr.bf16.vlgmr.msra.gmra.mrb[4].mxu1 %v1728_v59  ;;  %v4803_v59 = vld [vmem:[%s6291_s1 + $0x228] sm:$0xff]   ;;  %v1477_v31 = vrot.slane %v1475_v53, 1 }
  0x5a   : > { %4554 = vmatpush3.bf16.msra.mxu1 %v4782_v27  ;;  %4498 = vmatpush3.bf16.msra.mxu0 %v4767_v24  ;;  %v4816_v24 = vld [vmem:[#allocation2 + $0x8] ss:$0 sps:$4 sm:$0x66]   ;;  %v1470_v27 = vrot.slane %v1468_v45, 1 }
  0x5b   : > { %4555 = vmatprep.subr.bf16.mxu1 %v4784_v29  ;;  %4499 = vmatprep.subr.bf16.mxu0 %v4769_v30  ;;  %v4805_v29 = vld [vmem:[%s6291_s1 + $0x270] sm:$0xff]   ;;  %v1457_v30 = vor.u32 %v1456_v49, %v1452_v14  ;;  %v1491_v33 = vrot.slane %v4816_v24, 1 }
  0x5c   : > { %v1471_v5 = vor.u32 %v1470_v27, %v1466_v21 }
  0x5e   : > { %4556 = vmatpush3.bf16.msra.mxu1 %v4786_v34  ;;  %4500 = vmatpush3.bf16.msra.mxu0 %v4771_v32  ;;  %v4818_v32 = vld [vmem:[#allocation2 + $0x10] ss:$0 sps:$4 sm:$0x66]   ;;  %v1464_v34 = vor.u32 %v1463_v26, %v1459_v17 }
  0x5f   : > { %4557 = vmatprep.subr.bf16.mxu1 %v4788_v36  ;;  %4501 = vmatprep.subr.bf16.mxu0 %v4773_v37  ;;  %v1428_v36 = vld [vmem:[#allocation2 + $0xc] sm:$0x3]  ;;  %v1514_v37 = vrot.slane %v1500_v25, %v5128_v16 }
  0x62   : > { %4558 = vmatpush3.bf16.msra.mxu1 %v4790_v39  ;;  %4502 = vmatpush3.bf16.msra.mxu0 %v4775_v38  ;;  %v4807_v38 = vld [vmem:[%s6291_s1 + $0x230] sm:$0xff]   ;;  %v1478_v39 = vor.u32 %v1477_v31, %v1473_v23 }
  0x63   : > { %4559 = vmatprep.subr.bf16.mxu1 %v4792_v40  ;;  %4531 = vmatprep.subr.bf16.mxu0 %v4781_v41  ;;  %v1493_v40 = vrot.slane %v4818_v32, 1  ;;  %v1516_v41 = vcombine.low %v1457_v30, %v1491_v33 }
  0x65   : > { %1168 = vmatmul.mubr.bf16.vlgmr.msra.gmra.mrb[4].mxu0 %v757_v43  ;;  %v1430_v43 = vld [vmem:[#allocation2 + $0x14] sm:$0x3] }
  0x66   : > { %4560 = vmatpush3.bf16.msra.mxu1 %v4794_v44  ;;  %4532 = vmatpush3.bf16.msra.mxu0 %v4783_v42  ;;  %v1429_v42 = vld [vmem:[#allocation2 + $0x10] sm:$0x3]  ;;  %v1525_v44 = vcombine.low %v498_v12, %v1428_v36  ;;  %v4811_v12 = vld [vmem:[%s6291_s1 + $0x238] sm:$0xff]  }
  0x67   : > { %4561 = vmatprep.subr.bf16.mxu1 %v4796_v46  ;;  %4533 = vmatprep.subr.bf16.mxu0 %v4785_v47  ;;  %v4809_v46 = vld [vmem:[%s6291_s1 + $0x278] sm:$0xff]   ;;  %v1494_v47 = vrot.slane %v4819_v11, 1 }
  0x68   : > { %v1539_v7 = vrot.slane %v1525_v44, %v5128_v16 }
  0x6a   : > { %4562 = vmatpush3.bf16.msra.mxu1 %v4798_v50  ;;  %4534 = vmatpush3.bf16.msra.mxu0 %v4787_v48  ;;  %v1541_v48 = vcombine.low %v1464_v34, %v1492_v35  ;;  %v1550_v50 = vcombine.low %v499_v13, %v1429_v42  ;;  %v4262_v13 = vcombine.low %v1514_v37, %v1539_v7  ;;  %v5423_v35 = vld [vmem:[%s6292_s2] ss:$0 sm:$0xff]  ;;  %v4940_v42 = vmov 1966171168  }
  0x6b   : > { %4563 = vmatprep.subr.bf16.mxu1 %v4800_v51  ;;  %4535 = vmatprep.subr.bf16.mxu0 %v4789_v52  ;;  %v1575_v51 = vcombine.low %v500_v18, %v1430_v43  ;;  %v1523_v52 = vrot.slane %v1516_v41, %v5128_v16  ;;  %v1216_v43 = vunpack.c.l.s4 %v4940_v42 }
  0x6d   : > { %v1589_v8 = vrot.slane %v1575_v51, %v5128_v16 }
  0x6e   : > { %4564 = vmatpush3.bf16.msra.mxu1 %v4802_v55  ;;  %4536 = vmatpush3.bf16.msra.mxu0 %v4791_v54  ;;  %v1566_v54 = vcombine.low %v1471_v5, %v1493_v40  ;;  %v1548_v55 = vrot.slane %v1541_v48, %v5128_v16  ;;  %v1217_v48 = vunpack.c.0.s8 %v1216_v43 }
  0x6f   : > { %4565 = vmatprep.subr.bf16.mxu1 %v4804_v56  ;;  %4537 = vmatprep.subr.bf16.mxu0 %v4793_v57  ;;  %v1591_v56 = vcombine.low %v1478_v39, %v1494_v47  ;;  %v1564_v57 = vrot.slane %v1550_v50, %v5128_v16  ;;  %v5428_v39 = vld [vmem:[%s6293_s3] ss:$0 sm:$0xff] }
  0x70   : > { %v1573_v10 = vrot.slane %v1566_v54, %v5128_v16  ;;  %v5435_v7 = vsub.s32 %v1217_v48, %v5118_v9 }
  0x71   : > { %v1598_v18 = vrot.slane %v1591_v56, %v5128_v16 }
  0x72   : > { %4566 = vmatpush3.bf16.msra.mxu1 %v4806_v61  ;;  %4538 = vmatpush3.bf16.msra.mxu0 %v4795_v58  ;;  %v1732_v58 = vcombine.low %v1523_v52, %v1548_v55  ;;  %v1713_v61 = vrot.slane %v4262_v13, %v5128_v16 }
  0x73   : > { %4567 = vmatprep.subr.bf16.mxu1 %v4808_v62  ;;  %4539 = vmatprep.subr.bf16.mxu0 %v4797_v60  ;;  %v4264_v60 = vcombine.low %v1564_v57, %v1589_v8  ;;  %v1733_v62 = vcombine.low %v1573_v10, %v1598_v18  ;;  %v5441_v57 = vsub.s32 0, %v5118_v9 }
  0x75   : > { %v1747_v1 = vrot.slane %v1733_v62, %v5128_v16 }
  0x76   : > { %4568 = vmatpush3.bf16.msra.mxu1 %v4810_v0  ;;  %4540 = vmatpush3.bf16.msra.mxu0 %v4799_v63  ;;  %v1740_v63 = vrot.slane %v1732_v58, %v5128_v16  ;;  %v1727_v0 = vrot.slane %v4264_v60, %v5128_v16 }
  0x77   : > { %4541 = vmatprep.subr.bf16.mxu0 %v4801_v6 }
  0x78   : > { %v1731_v2 = vcombine.high %v1713_v61, %v1727_v0  ;;  %v1730_v4 = vcombine.low %v1713_v61, %v1727_v0  ;;  %v1749_v6 = vcombine.high %v1740_v63, %v1747_v1  ;;  %v1748_v15 = vcombine.low %v1740_v63, %v1747_v1 }
  0x7a   : > { %4542 = vmatpush3.bf16.msra.mxu0 %v4803_v59  ;;  %2117 = vmatprep.mubr.bf16.mxu0 %v1731_v2 }
  0x7b   : > { %4543 = vmatprep.subr.bf16.mxu0 %v4805_v29  ;;  %2158 = vmatprep.mubr.bf16.mxu1 %v1749_v6 }
  0x7c   : > { %2159 = vmatmul.mubr.bf16.vlgmr.msra.gmra.mrb[8].mxu1 %v1748_v15 }
  0x7e   : > { %4544 = vmatpush3.bf16.msra.mxu0 %v4807_v38 }
  0x7f   : > { %4545 = vmatprep.subr.bf16.mxu0 %v4809_v46 }
  0x82   : > { %4546 = vmatpush3.bf16.msra.mxu0 %v4811_v12 }
  0x85   : > { %2118 = vmatmul.mubr.bf16.vlgmr.msra.gmra.mrb[8].mxu0 %v1730_v4 }
 0x10c   : > { %v4481_v14 = vpop.f32.mrb[0].mxu1 }
 0x10d   : > { %v4482_v19 = vpop.f32.mrb[1].mxu1 }
 0x10e   : > { %v4483_v17 = vadd.f32 %v4482_v19, %v4481_v14  ;;  %v4484_v20 = vpop.f32.mrb[2].mxu1 }
 0x10f   : > { %v4485_v21 = vpop.f32.mrb[3].mxu1 }
 0x110   : > { %v4486_v45 = vadd.f32 %v4485_v21, %v4484_v20 }
 0x118   : > { %v4459_v22 = vpop.f32.mrb[0].mxu0 }
 0x119   : > { %v4460_v49 = vpop.f32.mrb[1].mxu0 }
 0x11a   : > { %v4461_v23 = vadd.f32 %v4460_v49, %v4459_v22  ;;  %v4462_v53 = vpop.f32.mrb[2].mxu0 }
 0x11b   : > { %v4463_v24 = vpop.f32.mrb[3].mxu0 }
 0x11c   : > { %v1129_v25 = vadd.f32 %v4483_v17, %v4461_v23  ;;  %v4464_v59 = vadd.f32 %v4463_v24, %v4462_v53 }
 0x11e   : > { %v1132_v26 = vadd.f32 %v4486_v45, %v4464_v59 }
 0x12c   : > { %v4525_v27 = vpop.f32.mrb[4].mxu1 }
 0x12d   : > { %v4526_v28 = vpop.f32.mrb[5].mxu1 }
 0x12e   : > { %v5416_v29 = vadd.f32 %v4526_v28, %v4525_v27  ;;  %v4528_v30 = vpop.f32.mrb[6].mxu1 }
 0x12f   : > { %v4529_v31 = vpop.f32.mrb[7].mxu1 }
 0x130   : > { %v5418_v32 = vadd.f32 %v4529_v31, %v4528_v30 }
 0x138   : > { %v4503_v33 = vpop.f32.mrb[4].mxu0 }
 0x139   : > { %v4504_v34 = vpop.f32.mrb[5].mxu0 }
 0x13a   : > { %v4505_v5 = vadd.f32 %v4504_v34, %v4503_v33  ;;  %v4506_v11 = vpop.f32.mrb[6].mxu0 }
 0x13b   : > { %v4507_v36 = vpop.f32.mrb[7].mxu0 }
 0x13c   : > { %v1170_v37 = vadd.f32 %v4505_v5, %v1129_v25  ;;  %v4508_v38 = vadd.f32 %v4507_v36, %v4506_v11 }
 0x13e   : > { %v1183_v40 = vmul.f32 %v5423_v35, %v1170_v37  ;;  %v1173_v41 = vadd.f32 %v4508_v38, %v1132_v26 }
 0x140   : > { %v1192_v44 = vadd.f32 %v5428_v39, %v1183_v40  ;;  %v1184_v46 = vmul.f32 %v5423_v35, %v1173_v41 }
 0x142   : > { %v1193_v47 = vadd.f32 %v5428_v39, %v1184_v46  ;;  %v1194_v50 = vmax.f32 %v1192_v44, 0.0 }
 0x144   : > { %v1195_v51 = vmax.f32 %v1193_v47, 0.0 }
 0x146   : > { %v1196_v52 = vpack.c.bf16 %v1195_v51, %v1194_v50  ;;  %v4148_v54 = vpack.c.bf16 %v1195_v51, %v1195_v51 }
 0x148   : > { %v1212_v12 = vrot.slane %v4148_v54, %v5128_v16  ;;  %v1205_v55 = vrot.slane %v1196_v52, %v5128_v16 }
 0x14a   : > { %v1221_v56 = vrot.slane %v1205_v55, %v5435_v7  ;;  %v1213_v8 = vcombine.high %v1205_v55, %v1205_v55  ;;  %v1237_v10 = vrot.slane %v1212_v12, %v5435_v7  ;;  %v1214_v19 = vcombine.high %v1212_v12, %v1212_v12 }
 0x14c   : > { %v4149_v13 = vpack.i.b16 %v1221_v56, %v1221_v56  ;;  %v1248_v18 = vunpack.i.h.s16 %v1221_v56  ;;  %v1256_v58 = vunpack.i.h.s16 %v1237_v10  ;;  %v5445_v60 = vrot.slane %v1213_v8, %v5435_v7 }
 0x14d   : > { %v4153_v63 = vpack.i.b16 %v1237_v10, %v1237_v10  ;;  %v1222_v4 = vcombine.high %v1221_v56, %v1221_v56  ;;  %v1238_v14 = vcombine.high %v1237_v10, %v1237_v10  ;;  %v1245_v23 = vrot.slane %v1214_v19, %v5435_v7 }
 0x14e   : > { %v5448_v61 = vrot.slane %v4149_v13, %v5441_v57  ;;  %v1264_v62 = vpack.i.b16 %v1248_v18, %v1248_v18  ;;  %v1272_v1 = vpack.i.b16 %v1256_v58, %v1256_v58  ;;  %v5457_v2 = vcombine.high %v5445_v60, %v5445_v60 }
 0x14f   : > { %v5462_v6 = vrot.slane %v4153_v63, %v5441_v57  ;;  %v4151_v15 = vpack.i.b16 %v5445_v60, %v5445_v60  ;;  %v1250_v21 = vunpack.i.h.s16 %v1222_v4  ;;  %v4150_v22 = vpack.i.b16 %v1222_v4, %v1222_v4  ;;  %v4569_v27 = vpop.f32.mrb[8].mxu1 }
 0x150   : > { %1359 = vrot.lane.b32.xlu0 %v5448_v61, %s4941_s25  ;;  %v5453_v0 = vrot.slane %v1264_v62, %v5441_v57  ;;  %v5469_v17 = vrot.slane %v1272_v1, %v5441_v57  ;;  %v4152_v20 = vpack.i.b16 %v5457_v2, %v5457_v2  ;;  %v1258_v49 = vunpack.i.h.s16 %v1238_v14  ;;  %v4570_v3 = vpop.f32.mrb[9].mxu1 }
 0x151   : > { %v5476_v45 = vrot.slane %v4151_v15, %v5441_v57  ;;  %v1266_v25 = vpack.i.b16 %v1250_v21, %v1250_v21  ;;  %v4154_v26 = vpack.i.b16 %v1238_v14, %v1238_v14  ;;  %v5527_v31 = vrot.slane %v4150_v22, %v5441_v57  ;;  %v4572_v37 = vpop.f32.mrb[10].mxu1 }
 0x152   : > { %1361 = vrot.lane.b32.xlu1 %v5453_v0, %s4941_s25  ;;  %v5522_v24 = vrot.slane %v4152_v20, %v5441_v57  ;;  %v1274_v34 = vpack.i.b16 %v1258_v49, %v1258_v49  ;;  %v1260_v5 = vunpack.i.h.s16 %v1245_v23  ;;  %v4571_v11 = vadd.f32 %v4570_v3, %v4569_v27  ;;  %v4573_v41 = vpop.f32.mrb[11].mxu1 }
 0x153   : > { %v5533_v40 = vrot.slane %v1266_v25, %v5441_v57  ;;  %v5536_v42 = vrot.slane %v4154_v26, %v5441_v57  ;;  %v4155_v43 = vpack.i.b16 %v1245_v23, %v1245_v23  ;;  %v4574_v46 = vadd.f32 %v4573_v41, %v4572_v37 }
 0x154   : > { %1375 = vrot.lane.b32.xlu0 %v5462_v6, %s4941_s25  ;;  %v5543_v48 = vrot.slane %v1274_v34, %v5441_v57  ;;  %v1254_v50 = vunpack.i.h.s16 %v5457_v2  ;;  %v1276_v54 = vpack.i.b16 %v1260_v5, %v1260_v5  ;;  %v1246_v12 = vcombine.high %v1245_v23, %v1245_v23 }
 0x155   : > { %v5554_v56 = vrot.slane %v4155_v43, %v5441_v57 }
 0x156   : > { %1377 = vrot.lane.b32.xlu1 %v5469_v17, %s4941_s25  ;;  %v5560_v13 = vrot.slane %v1276_v54, %v5441_v57  ;;  %v1270_v18 = vpack.i.b16 %v1254_v50, %v1254_v50  ;;  %v1262_v58 = vunpack.i.h.s16 %v1246_v12  ;;  %v4156_v63 = vpack.i.b16 %v1246_v12, %v1246_v12 }
 0x158   : > { %v4547_v53 = vpop.f32.mrb[8].mxu0  ;;  %1367 = vrot.lane.b32.xlu0 %v5476_v45, %s4941_s25  ;;  %v1278_v4 = vpack.i.b16 %v1262_v58, %v1262_v58  ;;  %v5575_v15 = vrot.slane %v4156_v63, %v5441_v57  ;;  %v2758_v58 = vld [vmem:[#allocation3] sm:$0xf] }
 0x159   : > { %v4548_v59 = vpop.f32.mrb[9].mxu0 }
 0x15a   : > { %v4549_v28 = vadd.f32 %v4548_v59, %v4547_v53  ;;  %v4550_v30 = vpop.f32.mrb[10].mxu0  ;;  %1371 = vrot.lane.b32.xlu1 %v5522_v24, %s4941_s25  ;;  %v5582_v20 = vrot.slane %v1278_v4, %v5441_v57 }
 0x15b   : > { %v4551_v33 = vpop.f32.mrb[11].mxu0 }
 0x15c   : > { %v2120_v36 = vadd.f32 %v4549_v28, %v5416_v29  ;;  %v4552_v38 = vadd.f32 %v4551_v33, %v4550_v30  ;;  %1363 = vrot.lane.b32.xlu0 %v5527_v31, %s4941_s25  ;;  %v1252_v29 = vunpack.i.h.s16 %v5445_v60 }
 0x15e   : > { %v2161_v44 = vadd.f32 %v4571_v11, %v2120_v36  ;;  %v2123_v47 = vadd.f32 %v4552_v38, %v5418_v32  ;;  %1365 = vrot.lane.b32.xlu1 %v5533_v40, %s4941_s25  ;;  %v1268_v8 = vpack.i.b16 %v1252_v29, %v1252_v29 }
 0x160   : > { %v2167_v51 = vmul.f32 %v5423_v35, %v2161_v44  ;;  %v2164_v52 = vadd.f32 %v4574_v46, %v2123_v47  ;;  %1379 = vrot.lane.b32.xlu0 %v5536_v42, %s4941_s25 }
 0x162   : > { %v2169_v32 = vadd.f32 %v5428_v39, %v2167_v51  ;;  %v2168_v55 = vmul.f32 %v5423_v35, %v2164_v52  ;;  %1381 = vrot.lane.b32.xlu1 %v5543_v48, %s4941_s25  ;;  %v5565_v35 = vrot.slane %v1268_v8, %v5441_v57 }
 0x164   : > { %v2170_v10 = vadd.f32 %v5428_v39, %v2168_v55  ;;  %1383 = vrot.lane.b32.xlu0 %v5554_v56, %s4941_s25  ;;  %v2171_v60 = vmax.f32 %v2169_v32, 0.0  ;;  %v5570_v39 = vrot.slane %v1270_v18, %v5441_v57 }
 0x166   : > { %v2172_v62 = vmax.f32 %v2170_v10, 0.0  ;;  %1385 = vrot.lane.b32.xlu1 %v5560_v13, %s4941_s25 }
 0x168   : > { %v2173_v1 = vpack.c.bf16 %v2172_v62, %v2171_v60  ;;  %v4313_v2 = vpack.c.bf16 %v2172_v62, %v2172_v62  ;;  %1369 = vrot.lane.b32.xlu0 %v5565_v35, %s4941_s25  ;;  %v2766_v60 = vld [vmem:[#allocation3 + $0x4] sm:$0x1] }
 0x16a   : > { %1373 = vrot.lane.b32.xlu1 %v5570_v39, %s4941_s25  ;;  %v2182_v14 = vrot.slane %v2173_v1, %v5128_v16  ;;  %v2189_v19 = vrot.slane %v4313_v2, %v5128_v16 }
 0x16c   : > { %1387 = vrot.lane.b32.xlu0 %v5575_v15, %s4941_s25  ;;  %v2198_v21 = vrot.slane %v2182_v14, %v5435_v7  ;;  %v2190_v22 = vcombine.high %v2182_v14, %v2182_v14  ;;  %v2191_v49 = vcombine.high %v2189_v19, %v2189_v19  ;;  %v2214_v37 = vrot.slane %v2189_v19, %v5435_v7 }
 0x16d   : > { %v4322_v14 = vcombine.low %v2758_v58, %v2766_v60 }
 0x16e   : > { %1389 = vrot.lane.b32.xlu1 %v5582_v20, %s4941_s25  ;;  %v4314_v23 = vpack.i.b16 %v2198_v21, %v2198_v21  ;;  %v2225_v53 = vunpack.i.h.s16 %v2198_v21  ;;  %v2199_v25 = vcombine.high %v2198_v21, %v2198_v21  ;;  %v2206_v59 = vrot.slane %v2190_v22, %v5435_v7 }
 0x16f   : > { %v2222_v30 = vrot.slane %v2191_v49, %v5435_v7  ;;  %v2233_v50 = vunpack.i.h.s16 %v2214_v37  ;;  %v2215_v52 = vcombine.high %v2214_v37, %v2214_v37  ;;  %v4318_v32 = vpack.i.b16 %v2214_v37, %v2214_v37 }
 0x170   : > { %v5589_v16 = vrot.slane %v4314_v23, %v5441_v57  ;;  %v2241_v26 = vpack.i.b16 %v2225_v53, %v2225_v53  ;;  %v4315_v27 = vpack.i.b16 %v2199_v25, %v2199_v25  ;;  %v2227_v28 = vunpack.i.h.s16 %v2199_v25 }
 0x171   : > { %v2229_v34 = vunpack.i.h.s16 %v2206_v59  ;;  %v2207_v5 = vcombine.high %v2206_v59, %v2206_v59  ;;  %v4316_v36 = vpack.i.b16 %v2206_v59, %v2206_v59  ;;  %v2223_v44 = vcombine.high %v2222_v30, %v2222_v30 }
 0x172   : > { %2336 = vrot.lane.b32.xlu0 %v5589_v16, %s4941_s25  ;;  %v5595_v3 = vrot.slane %v2241_v26, %v5441_v57  ;;  %v2243_v33 = vpack.i.b16 %v2227_v28, %v2227_v28  ;;  %v5600_v11 = vrot.slane %v4315_v27, %v5441_v57  ;;  %v2249_v10 = vpack.i.b16 %v2233_v50, %v2233_v50 }
 0x173   : > { %v2245_v41 = vpack.i.b16 %v2229_v34, %v2229_v34  ;;  %v2231_v43 = vunpack.i.h.s16 %v2207_v5  ;;  %v5611_v46 = vrot.slane %v4316_v36, %v5441_v57  ;;  %v4317_v47 = vpack.i.b16 %v2207_v5, %v2207_v5 }
 0x174   : > { %2338 = vrot.lane.b32.xlu1 %v5595_v3, %s4941_s25  ;;  %v5606_v38 = vrot.slane %v2243_v33, %v5441_v57  ;;  %v2239_v29 = vunpack.i.h.s16 %v2223_v44  ;;  %v2235_v18 = vunpack.i.h.s16 %v2215_v52  ;;  %v5634_v62 = vrot.slane %v4318_v32, %v5441_v57 }
 0x175   : > { %v5616_v7 = vrot.slane %v2245_v41, %v5441_v57  ;;  %v2247_v51 = vpack.i.b16 %v2231_v43, %v2231_v43  ;;  %v5621_v12 = vrot.slane %v4317_v47, %v5441_v57  ;;  %v4319_v63 = vpack.i.b16 %v2215_v52, %v2215_v52 }
 0x176   : > { %2340 = vrot.lane.b32.xlu0 %v5600_v11, %s4941_s25  ;;  %v2255_v54 = vpack.i.b16 %v2239_v29, %v2239_v29  ;;  %v5639_v1 = vrot.slane %v2249_v10, %v5441_v57  ;;  %v2251_v2 = vpack.i.b16 %v2235_v18, %v2235_v18  ;;  %v2237_v4 = vunpack.i.h.s16 %v2222_v30 }
 0x177   : > { %v5629_v8 = vrot.slane %v2247_v51, %v5441_v57  ;;  %v5644_v19 = vrot.slane %v4319_v63, %v5441_v57  ;;  %v4320_v21 = vpack.i.b16 %v2222_v30, %v2222_v30  ;;  %v2874_v23 = vshll.u32 %v4322_v14, 16 }
 0x178   : > { %2342 = vrot.lane.b32.xlu1 %v5606_v38, %s4941_s25  ;;  %v5624_v55 = vrot.slane %v2255_v54, %v5441_v57  ;;  %v5649_v22 = vrot.slane %v2251_v2, %v5441_v57  ;;  %v2253_v49 = vpack.i.b16 %v2237_v4, %v2237_v4  ;;  %v4321_v25 = vpack.i.b16 %v2223_v44, %v2223_v44 }
 0x179   : > { %v5654_v53 = vrot.slane %v4320_v21, %v5441_v57  ;;  %v2872_v26 = vshrl.u32 %v4322_v14, 16  ;;  %v2876_v27 = vrot.slane %v2874_v23, 1  ;;  %v4942_v41 = vmov 1935823168  }
 0x17a   : > { %2344 = vrot.lane.b32.xlu0 %v5611_v46, %s4941_s25  ;;  %v5659_v59 = vrot.slane %v2253_v49, %v5441_v57  ;;  %v5664_v28 = vrot.slane %v4321_v25, %v5441_v57  ;;  %v2435_v43 = vunpack.c.l.s4 %v4942_v41  ;;  %v2743_v57 = vld [vmem:[#allocation3 + $0x34] sm:$0x1] }
 0x17b   : > { %v2877_v30 = vor.u32 %v2876_v27, %v2872_v26 }
 0x17c   : > { %2346 = vrot.lane.b32.xlu1 %v5616_v7, %s4941_s25  ;;  %v2436_v47 = vunpack.c.0.s8 %v2435_v43 }
 0x17e   : > { %2348 = vrot.lane.b32.xlu0 %v5621_v12, %s4941_s25  ;;  %v5689_v18 = vsub.s32 %v2436_v47, %v5118_v9  ;;  %v2713_v47 = vld [vmem:[#allocation3 + $0xc] sm:$0x1] }
 0x180   : > { %2350 = vrot.lane.b32.xlu1 %v5629_v8, %s4941_s25 }
 0x182   : > { %2352 = vrot.lane.b32.xlu0 %v5634_v62, %s4941_s25 }
 0x184   : > { %2354 = vrot.lane.b32.xlu1 %v5639_v1, %s4941_s25 }
 0x186   : > { %2356 = vrot.lane.b32.xlu0 %v5644_v19, %s4941_s25 }
 0x188   : > { %2358 = vrot.lane.b32.xlu1 %v5649_v22, %s4941_s25 }
 0x18a   : > { %2360 = vrot.lane.b32.xlu0 %v5654_v53, %s4941_s25 }
 0x18c   : > { %2362 = vrot.lane.b32.xlu1 %v5659_v59, %s4941_s25 }
 0x18e   : > { %2364 = vrot.lane.b32.xlu0 %v5664_v28, %s4941_s25 }
 0x190   : > { %2366 = vrot.lane.b32.xlu1 %v5624_v55, %s4941_s25 }
 0x192   : > { %2927 = vrot.lane.b32.xlu0 %v2877_v30, %s4941_s25 }
 0x1c2   : > { %v1360_v33 = vpop.permute.xlu0 %1359 }
 0x1c3   : > { %v1410_v50 = vsel %vm5672_vm7, %v5448_v61, %v1360_v33  ;;  %v4900_v33 = vld [vmem:[%s6294_s4 + $0xb8] sm:$0xff]  }
 0x1c4   : > { %v1362_v34 = vpop.permute.xlu1 %1361 }
 0x1c5   : > { %v1411_v32 = vsel %vm5672_vm7, %v5453_v0, %v1362_v34 }
 0x1c6   : > { %v1376_v5 = vpop.permute.xlu0 %1375 }
 0x1c7   : > { %v1418_v61 = vsel %vm5672_vm7, %v5462_v6, %v1376_v5 }
 0x1c8   : > { %v1378_v36 = vpop.permute.xlu1 %1377 }
 0x1c9   : > { %v1419_v9 = vsel %vm5672_vm7, %v5469_v17, %v1378_v36 }
 0x1ca   : > { %v1368_v37 = vpop.permute.xlu0 %1367 }
 0x1cc   : > { %v1372_v44 = vpop.permute.xlu1 %1371 }
 0x1cd   : > { %v1416_v26 = vsel %vm5672_vm7, %v5522_v24, %v1372_v44  ;;  %v2708_v44 = vld [vmem:[#allocation3 + $0x8] sm:$0xf] }
 0x1ce   : > { %v1364_v29 = vpop.permute.xlu0 %1363 }
 0x1cf   : > { %v1412_v51 = vsel %vm5672_vm7, %v5527_v31, %v1364_v29 }
 0x1d0   : > { %v2432_v52 = vcombine.low %v1410_v50, %v1412_v51  ;;  %v1366_v54 = vpop.permute.xlu1 %1365 }
 0x1d1   : > { %v1413_v10 = vsel %vm5672_vm7, %v5533_v40, %v1366_v54  ;;  %v4865_v54 = vld [vmem:[%s6294_s4 + $0x40] sm:$0xff]  }
 0x1d2   : > { %v2433_v58 = vcombine.low %v1411_v32, %v1413_v10  ;;  %v1380_v60 = vpop.permute.xlu0 %1379  ;;  %v2440_v63 = vrot.slane %v2432_v52, %v5689_v18  ;;  %v4866_v32 = vld [vmem:[%s6294_s4] sm:$0xff]   ;;  %4575 = vmatprep.subr.bf16.mxu0 %v4865_v54 }
 0x1d3   : > { %v1420_v31 = vsel %vm5672_vm7, %v5536_v42, %v1380_v60  ;;  %4576 = vmatpush3.bf16.msra.mxu0 %v4866_v32 }
 0x1d4   : > { %v2447_v0 = vrot.slane %v2433_v58, %v5689_v18  ;;  %v2528_v2 = vcombine.low %v1418_v61, %v1420_v31  ;;  %v1382_v4 = vpop.permute.xlu1 %1381 }
 0x1d5   : > { %v1421_v40 = vsel %vm5672_vm7, %v5543_v48, %v1382_v4  ;;  %v1414_v48 = vsel %vm5672_vm7, %v5476_v45, %v1368_v37  ;;  %v2737_v4 = vld [vmem:[#allocation3 + $0x2c] sm:$0x1] }
 0x1d6   : > { %v2448_v14 = vcombine.low %v2440_v63, %v2447_v0  ;;  %v2529_v6 = vcombine.low %v1419_v9, %v1421_v40  ;;  %v1384_v21 = vpop.permute.xlu0 %1383  ;;  %v2536_v42 = vrot.slane %v2528_v2, %v5689_v18  ;;  %v2480_v24 = vcombine.low %v1414_v48, %v1416_v26  ;;  %v4869_v48 = vld [vmem:[%s6294_s4 + $0x8] sm:$0xff]  }
 0x1d8   : > { %v2455_v49 = vrot.slane %v2448_v14, %v5689_v18  ;;  %v2543_v23 = vrot.slane %v2529_v6, %v5689_v18  ;;  %v1386_v25 = vpop.permute.xlu1 %1385  ;;  %v2488_v2 = vrot.slane %v2480_v24, %v5689_v18 }
 0x1da   : > { %v2625_v17 = vshrl.u32 %v2455_v49, 16  ;;  %v2544_v27 = vcombine.low %v2536_v42, %v2543_v23  ;;  %v1370_v30 = vpop.permute.xlu0 %1369  ;;  %v2628_v5 = vshll.u32 %v2455_v49, 16 }
 0x1db   : > { %v1415_v51 = vsel %vm5672_vm7, %v5565_v35, %v1370_v30  ;;  %v4868_v30 = vld [vmem:[%s6294_s4 + $0x48] sm:$0xff]  }
 0x1dc   : > { %v2627_v34 = vrot.slane %v2625_v17, 7  ;;  %v2551_v36 = vrot.slane %v2544_v27, %v5689_v18  ;;  %v1374_v41 = vpop.permute.xlu1 %1373  ;;  %4577 = vmatprep.subr.bf16.mxu0 %v4868_v30 }
 0x1dd   : > { %v1417_v45 = vsel %vm5672_vm7, %v5570_v39, %v1374_v41  ;;  %v1422_v39 = vsel %vm5672_vm7, %v5554_v56, %v1384_v21  ;;  %v2734_v56 = vld [vmem:[#allocation3 + $0x28] sm:$0xf]  ;;  %4578 = vmatpush3.bf16.msra.mxu0 %v4869_v48 }
 0x1de   : > { %v2630_v37 = vor.u32 %v2628_v5, %v2627_v34  ;;  %v2631_v29 = vrot.slane %v2627_v34, 4  ;;  %v2657_v50 = vshrl.u32 %v2551_v36, 16  ;;  %v1388_v52 = vpop.permute.xlu0 %1387  ;;  %v2660_v10 = vshll.u32 %v2551_v36, 16 }
 0x1df   : > { %v2481_v58 = vcombine.low %v1415_v51, %v1417_v45  ;;  %v1424_v60 = vsel %vm5672_vm7, %v5575_v15, %v1388_v52  ;;  %v1423_v15 = vsel %vm5672_vm7, %v5560_v13, %v1386_v25 }
 0x1e0   : > { %v2709_v35 = vsel %vm5722_vm10, %v2630_v37, %v2708_v44  ;;  %v2714_v61 = vsel %vm5716_vm9, %v2631_v29, %v2713_v47  ;;  %v2659_v31 = vrot.slane %v2657_v50, 7  ;;  %v2576_v63 = vcombine.low %v1422_v39, %v1424_v60  ;;  %v1390_v0 = vpop.permute.xlu1 %1389  ;;  %v2722_v29 = vld [vmem:[#allocation3 + $0x18] sm:$0xf] }
 0x1e1   : > { %2710 = vst [vmem:[#allocation3 + $0x8] sm:$0xf] %v2709_v35  ;;  %2715 = vst [vmem:[#allocation3 + $0xc] sm:$0x1] %v2714_v61  ;;  %v2495_v9 = vrot.slane %v2481_v58, %v5689_v18  ;;  %v1425_v40 = vsel %vm5672_vm7, %v5582_v20, %v1390_v0  ;;  %v4870_v35 = vld [vmem:[%s6294_s4 + $0x50] sm:$0xff]  }
 0x1e2   : > { %v2662_v14 = vor.u32 %v2660_v10, %v2659_v31  ;;  %v2663_v6 = vrot.slane %v2659_v31, 4  ;;  %v2577_v21 = vcombine.low %v1423_v15, %v1425_v40  ;;  %v2584_v26 = vrot.slane %v2576_v63, %v5689_v18  ;;  %4579 = vmatprep.subr.bf16.mxu0 %v4870_v35 }
 0x1e3   : > { %v2496_v49 = vcombine.low %v2488_v2, %v2495_v9 }
 0x1e4   : > { %v2735_v42 = vsel %vm5722_vm10, %v2662_v14, %v2734_v56  ;;  %v2738_v23 = vsel %vm5716_vm9, %v2663_v6, %v2737_v4  ;;  %v2591_v13 = vrot.slane %v2577_v21, %v5689_v18  ;;  %v2337_v25 = vpop.permute.xlu0 %2336 }
 0x1e5   : > { %2736 = vst [vmem:[#allocation3 + $0x28] sm:$0xf] %v2735_v42  ;;  %2739 = vst [vmem:[#allocation3 + $0x2c] sm:$0x1] %v2738_v23  ;;  %v2503_v20 = vrot.slane %v2496_v49, %v5689_v18  ;;  %v2384_v41 = vsel %vm5672_vm7, %v5589_v16, %v2337_v25  ;;  %v2746_v49 = vld [vmem:[#allocation3 + $0x38] sm:$0xf] }
 0x1e6   : > { %v2592_v17 = vcombine.low %v2584_v26, %v2591_v13  ;;  %v2339_v27 = vpop.permute.xlu1 %2338 }
 0x1e7   : > { %v2641_v34 = vshrl.u32 %v2503_v20, 16  ;;  %v2644_v5 = vshll.u32 %v2503_v20, 16  ;;  %v2385_v24 = vsel %vm5672_vm7, %v5595_v3, %v2339_v27  ;;  %v2725_v3 = vld [vmem:[#allocation3 + $0x1c] sm:$0x1] }
 0x1e8   : > { %v2599_v36 = vrot.slane %v2592_v17, %v5689_v18  ;;  %v2341_v44 = vpop.permute.xlu0 %2340  ;;  %v2782_v47 = vld [vmem:[#allocation3 + $0x8] sm:$0xf]  ;;  %v5778_v37 = vld [vmem:[#allocation3 + $0xc] sm:$0x1] }
 0x1e9   : > { %v5776_v45 = vld [vmem:[#allocation3 + $0x8] sm:$0xf]  ;;  %v2643_v50 = vrot.slane %v2641_v34, 7  ;;  %v2386_v51 = vsel %vm5672_vm7, %v5600_v11, %v2341_v44  ;;  %v4338_v52 = vcombine.low %v2782_v47, %v2782_v47  ;;  %v2790_v54 = vld [vmem:[#allocation3 + $0xc] sm:$0x1] }
 0x1ea   : > { %v4323_v16 = vcombine.low %v5776_v45, %v5778_v37  ;;  %v2673_v32 = vshrl.u32 %v2599_v36, 16  ;;  %v2676_v10 = vshll.u32 %v2599_v36, 16  ;;  %v2456_v39 = vcombine.low %v2384_v41, %v2386_v51  ;;  %v2343_v58 = vpop.permute.xlu1 %2342  ;;  %v4871_v11 = vld [vmem:[%s6294_s4 + $0x10] sm:$0xff]   ;;  %v4874_v51 = vld [vmem:[%s6294_s4 + $0x18] sm:$0xff]  }
 0x1eb   : > { %v5785_v60 = vcombine.low %v2782_v47, %v2790_v54  ;;  %v2646_v61 = vor.u32 %v2644_v5, %v2643_v50  ;;  %v2647_v31 = vrot.slane %v2643_v50, 4  ;;  %v2387_v63 = vsel %vm5672_vm7, %v5606_v38, %v2343_v58  ;;  %2999 = vrot.lane.b32.xlu0 %v4338_v52, %s4941_s25  ;;  %v2798_v2 = vld [vmem:[#allocation3 + $0x8] sm:$0xe]  ;;  %v2749_v38 = vld [vmem:[#allocation3 + $0x3c] sm:$0x1]  ;;  %4580 = vmatpush3.bf16.msra.mxu0 %v4871_v11  ;;  %v4873_v50 = vld [vmem:[%s6294_s4 + $0x58] sm:$0xff]  }
 0x1ec   : > { %v2879_v0 = vshrl.u32 %v4323_v16, 16  ;;  %v2675_v56 = vrot.slane %v2673_v32, 7  ;;  %v2457_v4 = vcombine.low %v2385_v24, %v2387_v63  ;;  %v2345_v15 = vpop.permute.xlu0 %2344  ;;  %v2786_v9 = vld [vmem:[#allocation3 + $0x28] sm:$0xf]  ;;  %v2881_v40 = vshll.u32 %v4323_v16, 16  ;;  %v4875_v52 = vld [vmem:[%s6294_s4 + $0xc0] sm:$0xff]   ;;  %4581 = vmatprep.subr.bf16.mxu0 %v4873_v50 }
 0x1ed   : > { %v5797_v14 = vld [vmem:[#allocation3 + $0x28] sm:$0xf]  ;;  %v2723_v6 = vsel %vm5722_vm10, %v2646_v61, %v2722_v29  ;;  %v2726_v21 = vsel %vm5716_vm9, %v2647_v31, %v2725_v3  ;;  %v2464_v42 = vrot.slane %v2456_v39, %v5689_v18  ;;  %v4342_v23 = vcombine.low %v2786_v9, %v2786_v9  ;;  %v5804_v26 = vld [vmem:[#allocation3 + $0x2c] sm:$0x1]  ;;  %4615 = vmatprep.subr.bf16.mxu1 %v4875_v52 }
 0x1ee   : > { %2724 = vst [vmem:[#allocation3 + $0x18] sm:$0xf] %v2723_v6  ;;  %2727 = vst [vmem:[#allocation3 + $0x1c] sm:$0x1] %v2726_v21  ;;  %v2678_v13 = vor.u32 %v2676_v10, %v2675_v56  ;;  %v2679_v25 = vrot.slane %v2675_v56, 4  ;;  %v2471_v20 = vrot.slane %v2457_v4, %v5689_v18  ;;  %v2347_v17 = vpop.permute.xlu1 %2346  ;;  %v2883_v27 = vrot.slane %v2881_v40, 1 }
 0x1ef   : > { %3007 = vrot.lane.b32.xlu0 %v4342_v23, %s4941_s25  ;;  %v4354_v30 = vcombine.low %v2798_v2, %v2790_v54  ;;  %v4365_v48 = vcombine.low %v5797_v14, %v5804_v26  ;;  %v5810_v34 = vld [vmem:[#allocation3 + $0x28] sm:$0xf]  ;;  %v5812_v5 = vld [vmem:[#allocation3 + $0x2c] sm:$0x1]  ;;  %v2388_v16 = vsel %vm5672_vm7, %v5611_v46, %v2345_v15  ;;  %v2389_v39 = vsel %vm5672_vm7, %v5616_v7, %v2347_v17  ;;  %v4876_v56 = vld [vmem:[%s6294_s4 + $0x60] sm:$0xff]  }
 0x1f0   : > { %v5814_v36 = vld [vmem:[#allocation3 + $0x2c] sm:$0x1]  ;;  %v2747_v41 = vsel %vm5722_vm10, %v2678_v13, %v2746_v49  ;;  %v2750_v24 = vsel %vm5716_vm9, %v2679_v25, %v2749_v38  ;;  %v2472_v44 = vcombine.low %v2464_v42, %v2471_v20  ;;  %v2349_v47 = vpop.permute.xlu0 %2348  ;;  %v2884_v29 = vor.u32 %v2883_v27, %v2879_v0  ;;  %v2802_v46 = vld [vmem:[#allocation3 + $0x28] sm:$0xe]  ;;  %4582 = vmatpush3.bf16.msra.mxu0 %v4874_v51  ;;  %v4878_v4 = vld [vmem:[%s6294_s4 + $0x20] sm:$0xff]  }
 0x1f1   : > { %2748 = vst [vmem:[#allocation3 + $0x38] sm:$0xf] %v2747_v41  ;;  %2751 = vst [vmem:[#allocation3 + $0x3c] sm:$0x1] %v2750_v24  ;;  %v2390_v54 = vsel %vm5672_vm7, %v5621_v12, %v2349_v47  ;;  %v3119_v3 = vrot.slane %v4354_v30, 1  ;;  %v3207_v32 = vshll.u32 %v4365_v48, 16  ;;  %v4327_v11 = vcombine.low %v5810_v34, %v5812_v5  ;;  %4583 = vmatprep.subr.bf16.mxu0 %v4876_v56 }
 0x1f2   : > { %v2479_v10 = vrot.slane %v2472_v44, %v5689_v18  ;;  %v2504_v58 = vcombine.low %v2388_v16, %v2390_v54  ;;  %2929 = vrot.lane.b32.xlu1 %v2884_v29, %s4941_s25  ;;  %v2351_v35 = vpop.permute.xlu1 %2350  ;;  %v3205_v61 = vshrl.u32 %v4365_v48, 16  ;;  %v5847_v63 = vcombine.low %v2786_v9, %v5814_v36  ;;  %v2716_v27 = vld [vmem:[#allocation3 + $0x10] sm:$0xf]  ;;  %v2719_v30 = vld [vmem:[#allocation3 + $0x14] sm:$0x1] }
 0x1f3   : > { %v2391_v12 = vsel %vm5672_vm7, %v5629_v8, %v2351_v35  ;;  %3127 = vrot.lane.b32.xlu0 %v3119_v3, %s4941_s25  ;;  %v3209_v31 = vrot.slane %v3207_v32, 1  ;;  %v4877_v8 = vld [vmem:[%s6294_s4 + $0x80] sm:$0xff]   ;;  %v4358_v21 = vcombine.low %v2802_v46, %v5814_v36  ;;  %v2909_v25 = vshll.u32 %v4327_v11, 16 }
 0x1f4   : > { %v2633_v7 = vshrl.u32 %v2479_v10, 16  ;;  %v2505_v0 = vcombine.low %v2389_v39, %v2391_v12  ;;  %v2353_v2 = vpop.permute.xlu0 %2352  ;;  %v2636_v15 = vshll.u32 %v2479_v10, 16  ;;  %v2512_v9 = vrot.slane %v2504_v58, %v5689_v18  ;;  %4616 = vmatpush3.bf16.msra.mxu1 %v4877_v8  ;;  %4584 = vmatpush3.bf16.msra.mxu0 %v4878_v4 }
 0x1f5   : > { %v3210_v40 = vor.u32 %v3209_v31, %v3205_v61  ;;  %v2784_v6 = vld [vmem:[#allocation3 + $0x18] sm:$0xf]  ;;  %v5863_v20 = vld [vmem:[#allocation3 + $0x1c] sm:$0x1]  ;;  %v2392_v48 = vsel %vm5672_vm7, %v5634_v62, %v2353_v2  ;;  %v2907_v41 = vshrl.u32 %v4327_v11, 16  ;;  %v2911_v51 = vrot.slane %v2909_v25, 1 }
 0x1f6   : > { %v5860_v49 = vld [vmem:[#allocation3 + $0x18] sm:$0xf]  ;;  %v2635_v38 = vrot.slane %v2633_v7, 7  ;;  %v2519_v42 = vrot.slane %v2505_v0, %v5689_v18  ;;  %v2355_v23 = vpop.permute.xlu1 %2354  ;;  %v4340_v13 = vcombine.low %v2784_v6, %v2784_v6  ;;  %v2792_v17 = vld [vmem:[#allocation3 + $0x1c] sm:$0x1]  ;;  %v3123_v52 = vrot.slane %v4358_v21, 1 }
 0x1f7   : > { %3245 = vrot.lane.b32.xlu1 %v3210_v40, %s4941_s25  ;;  %v2393_v36 = vsel %vm5672_vm7, %v5639_v1, %v2355_v23  ;;  %v4363_v24 = vcombine.low %v5860_v49, %v5863_v20  ;;  %v2800_v54 = vld [vmem:[#allocation3 + $0x18] sm:$0xe]  ;;  %v5878_v1 = vcombine.low %v2784_v6, %v2792_v17  ;;  %v5887_v11 = vld [vmem:[#allocation3 + $0x1c] sm:$0x1]  ;;  %v2912_v46 = vor.u32 %v2911_v51, %v2907_v41  ;;  %v4879_v0 = vld [vmem:[%s6294_s4 + $0xc8] sm:$0xff]  }
 0x1f8   : > { %v2638_v44 = vor.u32 %v2636_v15, %v2635_v38  ;;  %v2639_v47 = vrot.slane %v2635_v38, 4  ;;  %v2520_v29 = vcombine.low %v2512_v9, %v2519_v42  ;;  %3003 = vrot.lane.b32.xlu0 %v4340_v13, %s4941_s25  ;;  %v2357_v50 = vpop.permute.xlu0 %2356  ;;  %v5885_v35 = vld [vmem:[#allocation3 + $0x18] sm:$0xf]  ;;  %v5894_v7 = vld [vmem:[#allocation3 + $0x3c] sm:$0x1]  ;;  %v4880_v2 = vld [vmem:[%s6294_s4 + $0x68] sm:$0xff]   ;;  %v4356_v21 = vcombine.low %v2800_v54, %v2792_v17  ;;  %4617 = vmatprep.subr.bf16.mxu1 %v4879_v0 }
 0x1f9   : > { %v2394_v62 = vsel %vm5672_vm7, %v5644_v19, %v2357_v50  ;;  %v3193_v16 = vshll.u32 %v4363_v24, 16  ;;  %v5889_v19 = vld [vmem:[#allocation3 + $0x38] sm:$0xf]  ;;  %v3191_v61 = vshrl.u32 %v4363_v24, 16  ;;  %v4882_v15 = vld [vmem:[%s6294_s4 + $0x28] sm:$0xff]   ;;  %v4883_v9 = vld [vmem:[%s6294_s4 + $0xd0] sm:$0xff]   ;;  %v4325_v38 = vcombine.low %v5885_v35, %v5887_v11  ;;  %4585 = vmatprep.subr.bf16.mxu0 %v4880_v2 }
 0x1fa   : > { %v2717_v3 = vsel %vm5722_vm10, %v2638_v44, %v2716_v27  ;;  %v2720_v32 = vsel %vm5716_vm9, %v2639_v47, %v2719_v30  ;;  %v2527_v10 = vrot.slane %v2520_v29, %v5689_v18  ;;  %v2552_v39 = vcombine.low %v2392_v48, %v2394_v62  ;;  %v2359_v58 = vpop.permute.xlu1 %2358  ;;  %v4884_v42 = vld [vmem:[%s6294_s4 + $0x70] sm:$0xff]   ;;  %v2728_v23 = vld [vmem:[#allocation3 + $0x20] sm:$0xf]  ;;  %v2731_v17 = vld [vmem:[#allocation3 + $0x24] sm:$0x1]  ;;  %4586 = vmatpush3.bf16.msra.mxu0 %v4882_v15 }
 0x1fb   : > { %2718 = vst [vmem:[#allocation3 + $0x10] sm:$0xf] %v2717_v3  ;;  %2721 = vst [vmem:[#allocation3 + $0x14] sm:$0x1] %v2720_v32  ;;  %v2395_v12 = vsel %vm5672_vm7, %v5649_v22, %v2359_v58  ;;  %v3195_v31 = vrot.slane %v3193_v16, 1  ;;  %v4881_v22 = vld [vmem:[%s6294_s4 + $0x88] sm:$0xff]   ;;  %2937 = vrot.lane.b32.xlu1 %v2912_v46, %s4941_s25  ;;  %v5922_v48 = vcombine.low %v5889_v19, %v5894_v7  ;;  %4587 = vmatprep.subr.bf16.mxu0 %v4884_v42 }
 0x1fc   : > { %v2649_v56 = vshrl.u32 %v2527_v10, 16  ;;  %v2553_v8 = vcombine.low %v2393_v36, %v2395_v12  ;;  %3135 = vrot.lane.b32.xlu0 %v3123_v52, %s4941_s25  ;;  %v2361_v4 = vpop.permute.xlu0 %2360  ;;  %v2652_v40 = vshll.u32 %v2527_v10, 16  ;;  %v2560_v25 = vrot.slane %v2552_v39, %v5689_v18  ;;  %4618 = vmatpush3.bf16.msra.mxu1 %v4881_v22  ;;  %v4885_v24 = vld [vmem:[%s6294_s4 + $0x90] sm:$0xff]   ;;  %v4887_v52 = vld [vmem:[%s6294_s4 + $0xd8] sm:$0xff]  }
 0x1fd   : > { %v3196_v6 = vor.u32 %v3195_v31, %v3191_v61  ;;  %v3121_v36 = vrot.slane %v4356_v21, 1  ;;  %v2895_v41 = vshll.u32 %v4325_v38, 16  ;;  %v4886_v44 = vld [vmem:[%s6294_s4 + $0x30] sm:$0xff]   ;;  %v2396_v51 = vsel %vm5672_vm7, %v5654_v53, %v2361_v4  ;;  %4619 = vmatprep.subr.bf16.mxu1 %v4883_v9  ;;  %v4889_v53 = vld [vmem:[%s6294_s4 + $0x78] sm:$0xff]  }
 0x1fe   : > { %v2651_v13 = vrot.slane %v2649_v56, 7  ;;  %v2567_v27 = vrot.slane %v2553_v8, %v5689_v18  ;;  %v2363_v30 = vpop.permute.xlu1 %2362  ;;  %v2893_v54 = vshrl.u32 %v4325_v38, 16  ;;  %v3221_v32 = vshll.u32 %v5922_v48, 16  ;;  %v4890_v10 = vld [vmem:[%s6294_s4 + $0x98] sm:$0xff]   ;;  %4588 = vmatpush3.bf16.msra.mxu0 %v4886_v44 }
 0x1ff   : > { %3241 = vrot.lane.b32.xlu1 %v3196_v6, %s4941_s25  ;;  %v2897_v3 = vrot.slane %v2895_v41, 1  ;;  %v2397_v2 = vsel %vm5672_vm7, %v5659_v59, %v2363_v30  ;;  %v4891_v9 = vld [vmem:[%s6294_s4 + $0x38] sm:$0xff]   ;;  %4589 = vmatprep.subr.bf16.mxu0 %v4889_v53 }
 0x200   : > { %v2654_v47 = vor.u32 %v2652_v40, %v2651_v13  ;;  %v2655_v29 = vrot.slane %v2651_v13, 4  ;;  %v2568_v50 = vcombine.low %v2560_v25, %v2567_v27  ;;  %v2365_v62 = vpop.permute.xlu0 %2364  ;;  %3131 = vrot.lane.b32.xlu0 %v3121_v36, %s4941_s25  ;;  %v3223_v4 = vrot.slane %v3221_v32, 1  ;;  %4620 = vmatpush3.bf16.msra.mxu1 %v4885_v24  ;;  %v2740_v59 = vld [vmem:[#allocation3 + $0x30] sm:$0xf]  ;;  %v4892_v13 = vld [vmem:[%s6294_s4 + $0xe0] sm:$0xff]  }
 0x201   : > { %v2398_v16 = vsel %vm5672_vm7, %v5664_v28, %v2365_v62  ;;  %v2898_v56 = vor.u32 %v2897_v3, %v2893_v54  ;;  %4621 = vmatprep.subr.bf16.mxu1 %v4887_v52  ;;  %v2826_v25 = vld [vmem:[#allocation3 + $0x28] sm:$0xe]  ;;  %v5989_v36 = vld [vmem:[#allocation3 + $0x38] sm:$0xf]  ;;  %v4894_v52 = vld [vmem:[%s6294_s4 + $0xe8] sm:$0xff]  }
 0x202   : > { %v2729_v39 = vsel %vm5722_vm10, %v2654_v47, %v2728_v23  ;;  %v2732_v58 = vsel %vm5716_vm9, %v2655_v29, %v2731_v17  ;;  %v2575_v28 = vrot.slane %v2568_v50, %v5689_v18  ;;  %v2600_v46 = vcombine.low %v2396_v51, %v2398_v16  ;;  %v2367_v12 = vpop.permute.xlu1 %2366  ;;  %v5953_v61 = vld [vmem:[#allocation3 + $0x10] sm:$0xf]  ;;  %v5957_v0 = vld [vmem:[#allocation3 + $0x14] sm:$0x1]  ;;  %v5991_v47 = vld [vmem:[#allocation3 + $0x3c] sm:$0x1]  ;;  %4590 = vmatpush3.bf16.msra.mxu0 %v4891_v9 }
 0x203   : > { %v5955_v31 = vld [vmem:[#allocation3 + $0x10] sm:$0xf]  ;;  %2730 = vst [vmem:[#allocation3 + $0x20] sm:$0xf] %v2729_v39  ;;  %2733 = vst [vmem:[#allocation3 + $0x24] sm:$0x1] %v2732_v58  ;;  %v2399_v8 = vsel %vm5672_vm7, %v5624_v55, %v2367_v12  ;;  %2933 = vrot.lane.b32.xlu1 %v2898_v56, %s4941_s25  ;;  %v4373_v16 = vcombine.low %v2826_v25, %v5804_v26  ;;  %v4339_v26 = vcombine.low %v5953_v61, %v5953_v61 }
 0x204   : > { %v5965_v22 = vld [vmem:[#allocation3 + $0x10] sm:$0xf]  ;;  %v5967_v15 = vld [vmem:[#allocation3 + $0x14] sm:$0x1]  ;;  %v2665_v40 = vshrl.u32 %v2575_v28, 16  ;;  %v2601_v6 = vcombine.low %v2397_v2, %v2399_v8  ;;  %v3219_v55 = vshrl.u32 %v5922_v48, 16  ;;  %v4362_v38 = vcombine.low %v5955_v31, %v5957_v0  ;;  %4622 = vmatpush3.bf16.msra.mxu1 %v4890_v10 }
 0x205   : > { %v5972_v21 = vld [vmem:[#allocation3 + $0x14] sm:$0x1]  ;;  %v4324_v42 = vcombine.low %v5965_v22, %v5967_v15  ;;  %v2668_v30 = vshll.u32 %v2575_v28, 16  ;;  %v2608_v17 = vrot.slane %v2600_v46, %v5689_v18  ;;  %v4893_v29 = vld [vmem:[%s6294_s4 + $0xa0] sm:$0xff]   ;;  %4623 = vmatprep.subr.bf16.mxu1 %v4892_v13  ;;  %v6010_v28 = vcombine.low %v5989_v36, %v5991_v47  ;;  %v2752_v13 = vld [vmem:[#allocation3 + $0x40] sm:$0xf] }
 0x206   : > { %v5982_v23 = vcombine.low %v5953_v61, %v5972_v21  ;;  %v2667_v27 = vrot.slane %v2665_v40, 7  ;;  %v2615_v48 = vrot.slane %v2601_v6, %v5689_v18  ;;  %v3224_v41 = vor.u32 %v3223_v4, %v3219_v55  ;;  %v4896_v61 = vld [vmem:[%s6294_s4 + $0xf0] sm:$0xff]   ;;  %v2755_v25 = vld [vmem:[#allocation3 + $0x44] sm:$0x1] }
 0x207   : > { %v3186_v24 = vshll.u32 %v4362_v38, 16  ;;  %v2888_v44 = vshll.u32 %v4324_v42, 16  ;;  %v3184_v54 = vshrl.u32 %v4362_v38, 16  ;;  %v2886_v40 = vshrl.u32 %v4324_v42, 16 }
 0x208   : > { %v2670_v50 = vor.u32 %v2668_v30, %v2667_v27  ;;  %v2671_v51 = vrot.slane %v2667_v27, 4  ;;  %v2616_v62 = vcombine.low %v2608_v17, %v2615_v48  ;;  %3249 = vrot.lane.b32.xlu1 %v3224_v41, %s4941_s25  ;;  %4624 = vmatpush3.bf16.msra.mxu1 %v4893_v29  ;;  %v6028_v6 = vrot.slane %v4373_v16, 1  ;;  %v4898_v30 = vld [vmem:[%s6294_s4 + $0xb0] sm:$0xff]   ;;  %v2799_v41 = vld [vmem:[#allocation3 + $0x10] sm:$0xe] }
 0x209   : > { %v3188_v3 = vrot.slane %v3186_v24, 1  ;;  %v2890_v12 = vrot.slane %v2888_v44, 1  ;;  %4625 = vmatprep.subr.bf16.mxu1 %v4894_v52  ;;  %v4899_v24 = vld [vmem:[%s6294_s4 + $0xf8] sm:$0xff]   ;;  %v2822_v29 = vld [vmem:[#allocation3 + $0x4c] sm:$0x1] }
 0x20a   : > { %v2741_v32 = vsel %vm5722_vm10, %v2670_v50, %v2740_v59  ;;  %v2744_v53 = vsel %vm5716_vm9, %v2671_v51, %v2743_v57  ;;  %v2623_v10 = vrot.slane %v2616_v62, %v5689_v18  ;;  %v6006_v39 = vld [vmem:[#allocation3 + $0x20] sm:$0xf]  ;;  %v2817_v58 = vld [vmem:[#allocation3 + $0x24] sm:$0x1]  ;;  %6308 = vst [vmem:[#allocation4_spill] sm:$0xff] %v6028_v6 }
 0x20b   : > { %2742 = vst [vmem:[#allocation3 + $0x30] sm:$0xf] %v2741_v32  ;;  %2745 = vst [vmem:[#allocation3 + $0x34] sm:$0x1] %v2744_v53  ;;  %v3189_v46 = vor.u32 %v3188_v3, %v3184_v54  ;;  %v2825_v2 = vld [vmem:[#allocation3 + $0x20] sm:$0xe]  ;;  %v2891_v27 = vor.u32 %v2890_v12, %v2886_v40  ;;  %v4355_v3 = vcombine.low %v2799_v41, %v5972_v21 }
 0x20c   : > { %v6014_v56 = vld [vmem:[#allocation3 + $0x24] sm:$0x1]  ;;  %v2681_v8 = vshrl.u32 %v2623_v10, 16  ;;  %v4372_v4 = vcombine.low %v2825_v2, %v2817_v58  ;;  %3001 = vrot.lane.b32.xlu1 %v4339_v26, %s4941_s25  ;;  %v2684_v57 = vshll.u32 %v2623_v10, 16  ;;  %v6030_v55 = vld [vmem:[#allocation3 + $0x20] sm:$0xf]  ;;  %v4341_v41 = vcombine.low %v6006_v39, %v6006_v39 }
 0x20d   : > { %v4895_v18 = vld [vmem:[%s6294_s4 + $0xa8] sm:$0xff]   ;;  %v6021_v9 = vcombine.low %v6006_v39, %v6014_v56  ;;  %3239 = vrot.lane.b32.xlu0 %v3189_v46, %s4941_s25  ;;  %v4364_v44 = vcombine.low %v6030_v55, %v2817_v58  ;;  %v2830_v10 = vld [vmem:[#allocation3 + $0x48] sm:$0xe]  ;;  %v6063_v58 = vld [vmem:[%s6294_s4 + $0x100] sm:$0xff]  }
 0x20e   : > { %v2683_v59 = vrot.slane %v2681_v8, 7  ;;  %v6032_v38 = vrot.slane %v4372_v4, 1  ;;  %4626 = vmatpush3.bf16.msra.mxu1 %v4895_v18  ;;  %v4377_v2 = vcombine.low %v2830_v10, %v2822_v29  ;;  %4663 = vmatprep.subr.bf16.mxu0 %v6063_v58  ;;  %v3120_v18 = vrot.slane %v4355_v3, 1  ;;  %v2801_v3 = vld [vmem:[#allocation3 + $0x20] sm:$0xe] }
 0x20f   : > { %4627 = vmatprep.subr.bf16.mxu1 %v4896_v61  ;;  %v3200_v26 = vshll.u32 %v4364_v44, 16 }
 0x210   : > { %v2686_v17 = vor.u32 %v2684_v57, %v2683_v59  ;;  %v2687_v48 = vrot.slane %v2683_v59, 4  ;;  %v6073_v59 = vld [vmem:[#allocation3 + $0x48] sm:$0xf] }
 0x211   : > { %2931 = vrot.lane.b32.xlu0 %v2891_v27, %s4941_s25  ;;  %v6079_v27 = vld [vmem:[#allocation3 + $0x24] sm:$0x1] }
 0x212   : > { %v2753_v50 = vsel %vm5722_vm10, %v2686_v17, %v2752_v13  ;;  %v2756_v51 = vsel %vm5716_vm9, %v2687_v48, %v2755_v25  ;;  %v2787_v62 = vld [vmem:[#allocation3 + $0x30] sm:$0xf]  ;;  %v6050_v16 = vld [vmem:[#allocation3 + $0x34] sm:$0x1]  ;;  %4628 = vmatpush3.bf16.msra.mxu1 %v4898_v30  ;;  %v3202_v13 = vrot.slane %v3200_v26, 1  ;;  %v6081_v17 = vrot.slane %v4377_v2, 1 }
 0x213   : > { %v6048_v52 = vld [vmem:[#allocation3 + $0x30] sm:$0xf]  ;;  %2754 = vst [vmem:[#allocation3 + $0x40] sm:$0xf] %v2753_v50  ;;  %2757 = vst [vmem:[#allocation3 + $0x44] sm:$0x1] %v2756_v51  ;;  %v4343_v54 = vcombine.low %v2787_v62, %v2787_v62  ;;  %4629 = vmatprep.subr.bf16.mxu1 %v4899_v24  ;;  %v4369_v51 = vcombine.low %v6073_v59, %v2822_v29  ;;  %v4357_v2 = vcombine.low %v2801_v3, %v6014_v56 }
 0x214   : > { %v4366_v32 = vcombine.low %v6048_v52, %v6050_v16  ;;  %v2795_v53 = vld [vmem:[#allocation3 + $0x34] sm:$0x1]  ;;  %v6066_v46 = vld [vmem:[#allocation3 + $0x30] sm:$0xf]  ;;  %v6077_v25 = vld [vmem:[#allocation3 + $0x20] sm:$0xf] }
 0x215   : > { %v6058_v43 = vcombine.low %v2787_v62, %v2795_v53  ;;  %3009 = vrot.lane.b32.xlu1 %v4343_v54, %s4941_s25  ;;  %v6068_v12 = vld [vmem:[#allocation3 + $0x34] sm:$0x1]  ;;  %v2803_v61 = vld [vmem:[#allocation3 + $0x30] sm:$0xe]  ;;  %6309 = vst [vmem:[#allocation5_spill] sm:$0xff] %v6081_v17  ;;  %v3198_v24 = vshrl.u32 %v4364_v44, 16  ;;  %v4326_v10 = vcombine.low %v6077_v25, %v6079_v27 }
 0x216   : > { %v3214_v21 = vshll.u32 %v4366_v32, 16  ;;  %v3212_v8 = vshrl.u32 %v4366_v32, 16  ;;  %4630 = vmatpush3.bf16.msra.mxu1 %v4900_v33  ;;  %v4328_v40 = vcombine.low %v6066_v46, %v6068_v12  ;;  %v4359_v50 = vcombine.low %v2803_v61, %v2795_v53  ;;  %v6099_v29 = vld [vmem:[#allocation3 + $0x38] sm:$0xf] }
 0x217   : > { %4679 = vmatprep.subr.bf16.mxu1 %v6063_v58  ;;  %v3203_v26 = vor.u32 %v3202_v13, %v3198_v24  ;;  %v2827_v24 = vld [vmem:[#allocation3 + $0x30] sm:$0xe]  ;;  %v3233_v3 = vshrl.u32 %v4369_v51, 16 }
 0x218   : > { %v3216_v4 = vrot.slane %v3214_v21, 1  ;;  %v2916_v32 = vshll.u32 %v4328_v40, 16  ;;  %v3124_v53 = vrot.slane %v4359_v50, 1  ;;  %v2914_v56 = vshrl.u32 %v4328_v40, 16 }
 0x219   : > { %3129 = vrot.lane.b32.xlu1 %v3120_v18, %s4941_s25  ;;  %v3235_v18 = vshll.u32 %v4369_v51, 16 }
 0x21a   : > { %v3217_v57 = vor.u32 %v3216_v4, %v3212_v8  ;;  %v2789_v30 = vld [vmem:[#allocation3 + $0x40] sm:$0xf]  ;;  %v2821_v48 = vld [vmem:[#allocation3 + $0x44] sm:$0x1]  ;;  %v6103_v8 = vld [vmem:[#allocation3 + $0x3c] sm:$0x1] }
 0x21b   : > { %v2829_v62 = vld [vmem:[#allocation3 + $0x40] sm:$0xe]  ;;  %v6087_v54 = vld [vmem:[#allocation3 + $0x44] sm:$0x1]  ;;  %v2824_v4 = vld [vmem:[#allocation3 + $0x18] sm:$0xe] }
 0x21c   : > { %3247 = vrot.lane.b32.xlu0 %v3217_v57, %s4941_s25  ;;  %v4376_v33 = vcombine.low %v2829_v62, %v2821_v48  ;;  %v6092_v21 = vcombine.low %v2789_v30, %v6087_v54  ;;  %v6095_v39 = vld [vmem:[#allocation3 + $0x40] sm:$0xf]  ;;  %v2918_v61 = vrot.slane %v2916_v32, 1  ;;  %v2902_v57 = vshll.u32 %v4326_v10, 16 }
 0x21d   : > { %3005 = vrot.lane.b32.xlu1 %v4341_v41, %s4941_s25  ;;  %v2823_v41 = vld [vmem:[#allocation3 + $0x10] sm:$0xe]  ;;  %v4344_v62 = vcombine.low %v5989_v36, %v5989_v36  ;;  %v4368_v50 = vcombine.low %v6095_v39, %v2821_v48  ;;  %v3122_v32 = vrot.slane %v4357_v2, 1  ;;  %v4371_v42 = vcombine.low %v2824_v4, %v5863_v20 }
 0x21e   : > { %v6097_v44 = vrot.slane %v4376_v33, 1  ;;  %v2828_v33 = vld [vmem:[#allocation3 + $0x38] sm:$0xe]  ;;  %v4370_v13 = vcombine.low %v2823_v41, %v5957_v0  ;;  %v2919_v17 = vor.u32 %v2918_v61, %v2914_v56  ;;  %v3237_v36 = vrot.slane %v3235_v18, 1 }
 0x21f   : > { %v4375_v48 = vcombine.low %v2828_v33, %v5894_v7  ;;  %v3228_v40 = vshll.u32 %v4368_v50, 16  ;;  %v6121_v6 = vrot.slane %v4371_v42, 1  ;;  %v4345_v20 = vcombine.low %v2789_v30, %v2789_v30  ;;  %v2779_v7 = vld [vmem:[#allocation3 + $0x28] sm:$0xe] }
 0x220   : > { %6310 = vst [vmem:[#allocation6_spill] sm:$0xff] %v6097_v44  ;;  %3243 = vrot.lane.b32.xlu0 %v3203_v26, %s4941_s25  ;;  %v4329_v26 = vcombine.low %v6099_v29, %v6103_v8  ;;  %v2904_v44 = vrot.slane %v2902_v57, 1  ;;  %v6119_v51 = vrot.slane %v4370_v13, 1  ;;  %v2900_v0 = vshrl.u32 %v4326_v10, 16  ;;  %v2804_v57 = vld [vmem:[#allocation3 + $0x38] sm:$0xe] }
 0x221   : > { %3137 = vrot.lane.b32.xlu1 %v3124_v53, %s4941_s25  ;;  %v4374_v53 = vcombine.low %v2827_v24, %v6050_v16  ;;  %v6125_v2 = vrot.slane %v4375_v48, 1  ;;  %v3238_v42 = vor.u32 %v3237_v36, %v3233_v3  ;;  %v3230_v61 = vrot.slane %v3228_v40, 1 }
 0x222   : > { %v2923_v16 = vshll.u32 %v4329_v26, 16  ;;  %v2905_v4 = vor.u32 %v2904_v44, %v2900_v0  ;;  %v3226_v13 = vshrl.u32 %v4368_v50, 16  ;;  %v2921_v10 = vshrl.u32 %v4329_v26, 16  ;;  %v2928_v50 = vpop.permute.xlu0 %2927 }
 0x223   : > { %v4360_v24 = vcombine.low %v2804_v57, %v5991_v47  ;;  %v4335_v18 = vcombine.low %v2779_v7, %v5812_v5  ;;  %v6181_v5 = vld [vmem:[%s6294_s4 + $0x110] sm:$0xff]   ;;  %v2776_v7 = vld [vmem:[#allocation3 + $0x10] sm:$0xe] }
 0x224   : > { %3011 = vrot.lane.b32.xlu0 %v4344_v62, %s4941_s25  ;;  %v6123_v62 = vrot.slane %v4374_v53, 1  ;;  %v2925_v41 = vrot.slane %v2923_v16, 1  ;;  %v3231_v30 = vor.u32 %v3230_v61, %v3226_v13 }
 0x225   : > { %3133 = vrot.lane.b32.xlu1 %v3122_v32, %s4941_s25  ;;  %v3125_v44 = vrot.slane %v4360_v24, 1 }
 0x226   : > { %v2926_v33 = vor.u32 %v2925_v41, %v2921_v10  ;;  %v4929_v10 = vld [vmem:[#allocation3] sm:$0xf] }
 0x227   : > { %v3290_v24 = vsel %vm3287_vm11, %v4929_v10, %v2928_v50  ;;  %v3049_v10 = vshll.u32 %v5982_v23, 16 }
 0x228   : > { %2939 = vrot.lane.b32.xlu0 %v2919_v17, %s4941_s25  ;;  %v2805_v17 = vld [vmem:[#allocation3 + $0x40] sm:$0xe] }
 0x229   : > { %3013 = vrot.lane.b32.xlu1 %v4345_v20, %s4941_s25  ;;  %v4361_v56 = vcombine.low %v2805_v17, %v6087_v54  ;;  %v2774_v20 = vld [vmem:[#allocation3] sm:$0xe] }
 0x22b   : > { %v3126_v3 = vrot.slane %v4361_v56, 1 }
 0x22c   : > { %2935 = vrot.lane.b32.xlu0 %v2905_v4, %s4941_s25  ;;  %v2775_v4 = vld [vmem:[#allocation3 + $0x8] sm:$0xe] }
 0x22d   : > { %3253 = vrot.lane.b32.xlu1 %v3238_v42, %s4941_s25  ;;  %v4928_v42 = vld [vmem:[#allocation3 + $0x4] sm:$0x1]  ;;  %v4331_v57 = vcombine.low %v2775_v4, %v5778_v37 }
 0x22e   : > { %v4330_v61 = vcombine.low %v2774_v20, %v4928_v42 }
 0x230   : > { %3251 = vrot.lane.b32.xlu0 %v3231_v30, %s4941_s25  ;;  %v2967_v17 = vrot.slane %v4330_v61, 1  ;;  %v2968_v30 = vrot.slane %v4331_v57, 1  ;;  %v3042_v61 = vshll.u32 %v5785_v60, 16 }
 0x231   : > { %2941 = vrot.lane.b32.xlu1 %v2926_v33, %s4941_s25  ;;  %v2778_v33 = vld [vmem:[#allocation3 + $0x20] sm:$0xe] }
 0x234   : > { %3139 = vrot.lane.b32.xlu0 %v3125_v44, %s4941_s25 }
 0x235   : > { %3141 = vrot.lane.b32.xlu1 %v3126_v3, %s4941_s25 }
 0x25d   : > { %v3000_v32 = vpop.permute.xlu0 %2999 }
 0x25e   : > { %v3314_v20 = vsel %vm3287_vm11, %v2967_v17, %v3000_v32  ;;  %v3044_v32 = vrot.slane %v3042_v61, 1  ;;  %v3051_v17 = vrot.slane %v3049_v10, 1 }
 0x261   : > { %v3008_v53 = vpop.permute.xlu0 %3007 }
 0x264   : > { %v2930_v36 = vpop.permute.xlu1 %2929 }
 0x265   : > { %v6141_v26 = vpop.permute.xlu0 %3127  ;;  %v3293_v56 = vsel %vm3287_vm11, %v5776_v45, %v2930_v36  ;;  %v4334_v45 = vcombine.low %v2778_v33, %v6079_v27  ;;  %v3070_v27 = vshll.u32 %v5847_v63, 16 }
 0x266   : > { %v4379_v36 = vcombine.low %v3290_v24, %v3293_v56  ;;  %v2777_v24 = vld [vmem:[#allocation3 + $0x18] sm:$0xe]  ;;  %v3040_v56 = vshrl.u32 %v5785_v60, 16  ;;  %v6196_v60 = vld [vmem:[%s6294_s4 + $0x118] sm:$0xff]  }
 0x269   : > { %v6143_v47 = vpop.permute.xlu1 %3245 }
 0x26a   : > { %v6145_v48 = vpop.permute.xlu0 %3003 }
 0x26d   : > { %v6147_v40 = vpop.permute.xlu1 %2937 }
 0x26e   : > { %v6149_v0 = vpop.permute.xlu0 %3135 }
 0x271   : > { %v3242_v54 = vpop.permute.xlu1 %3241 }
 0x272   : > { %v6154_v13 = vpop.permute.xlu0 %3131  ;;  %v3365_v37 = vsel %vm3287_vm11, %v5860_v49, %v3242_v54  ;;  %v6174_v49 = vld [vmem:[%s6294_s4 + $0x108] sm:$0xff]   ;;  %v2972_v54 = vrot.slane %v4335_v18, 1  ;;  %v3047_v18 = vshrl.u32 %v5982_v23, 16 }
 0x274   : > { %v3052_v61 = vor.u32 %v3051_v17, %v3047_v18 }
 0x275   : > { %v6151_v16 = vpop.permute.xlu1 %2933 }
 0x27a   : > { %v6156_v41 = vpop.permute.xlu1 %3249 }
 0x27e   : > { %v3002_v44 = vpop.permute.xlu1 %3001 }
 0x27f   : > { %v3240_v3 = vpop.permute.xlu0 %3239  ;;  %v3317_v4 = vsel %vm3287_vm11, %v2968_v30, %v3002_v44 }
 0x280   : > { %v3362_v42 = vsel %vm3287_vm11, %v5955_v31, %v3240_v3  ;;  %v4380_v50 = vcombine.low %v3314_v20, %v3317_v4  ;;  %v2971_v31 = vrot.slane %v4334_v45, 1  ;;  %v3077_v3 = vshll.u32 %v6058_v43, 16 }
 0x281   : > { %v4382_v57 = vcombine.low %v3362_v42, %v3365_v37  ;;  %v3045_v4 = vor.u32 %v3044_v32, %v3040_v56  ;;  %v4332_v42 = vcombine.low %v2776_v7, %v5967_v15  ;;  %v3056_v45 = vshll.u32 %v5878_v1, 16 }
 0x282   : > { %3831 = vmatprep.mubr.bf16.mxu0 %v4380_v50  ;;  %v3326_v33 = vsel %vm3287_vm11, %v2971_v31, %v3008_v53  ;;  %v4333_v50 = vcombine.low %v2777_v24, %v5887_v11  ;;  %v3079_v31 = vrot.slane %v3077_v3, 1  ;;  %v3063_v11 = vshll.u32 %v6021_v9, 16 }
 0x283   : > { %3896 = vmatprep.mubr.bf16.mxu1 %v4382_v57  ;;  %3832 = vmatmul.mubr.bf16.vlgmr.msra.gmra.mrb[12].mxu0 %v4379_v36  ;;  %v2932_v20 = vpop.permute.xlu0 %2931  ;;  %v3338_v53 = vsel %vm3287_vm11, %v3045_v4, %v6141_v26  ;;  %v3072_v57 = vrot.slane %v3070_v27, 1  ;;  %v2969_v32 = vrot.slane %v4332_v42, 1  ;;  %v3075_v7 = vshrl.u32 %v6058_v43, 16 }
 0x284   : > { %4664 = vmatpush3.bf16.msra.mxu0 %v6063_v58  ;;  %v2970_v17 = vrot.slane %v4333_v50, 1  ;;  %v3296_v26 = vsel %vm3287_vm11, %v5965_v22, %v2932_v20  ;;  %v3058_v56 = vrot.slane %v3056_v45, 1  ;;  %v3371_v43 = vsel %vm3287_vm11, %v5797_v14, %v6143_v47 }
 0x285   : > { %4665 = vmatprep.subr.bf16.mxu0 %v6174_v49  ;;  %v3080_v22 = vor.u32 %v3079_v31, %v3075_v7  ;;  %v3065_v3 = vrot.slane %v3063_v11, 1  ;;  %v3061_v14 = vshrl.u32 %v6021_v9, 16 }
 0x287   : > { %v3010_v30 = vpop.permute.xlu1 %3009 }
 0x288   : > { %v3329_v44 = vsel %vm3287_vm11, %v2972_v54, %v3010_v30  ;;  %4666 = vmatpush3.bf16.msra.mxu0 %v6174_v49  ;;  %v3068_v54 = vshrl.u32 %v5847_v63, 16  ;;  %v3320_v30 = vsel %vm3287_vm11, %v2969_v32, %v6145_v48  ;;  %v3299_v63 = vsel %vm3287_vm11, %v5885_v35, %v6151_v16  ;;  %v2780_v35 = vld [vmem:[#allocation3 + $0x30] sm:$0xe]  ;;  %v2781_v16 = vld [vmem:[#allocation3 + $0x38] sm:$0xe] }
 0x289   : > { %v4390_v37 = vcombine.low %v3326_v33, %v3329_v44  ;;  %4667 = vmatprep.subr.bf16.mxu0 %v6181_v5  ;;  %v4384_v48 = vcombine.low %v3296_v26, %v3299_v63  ;;  %v3305_v32 = vsel %vm3287_vm11, %v5810_v34, %v6147_v40  ;;  %v3089_v40 = vshrl.u32 %v6092_v21, 16 }
 0x28a   : > { %v3073_v24 = vor.u32 %v3072_v57, %v3068_v54  ;;  %v3066_v57 = vor.u32 %v3065_v3, %v3061_v14  ;;  %v6315_v3 = vld [vmem:[#allocation6_spill] sm:$0xff] }
 0x28b   : > { %v3130_v23 = vpop.permute.xlu1 %3129 }
 0x28c   : > { %v3341_v10 = vsel %vm3287_vm11, %v3052_v61, %v3130_v23  ;;  %4668 = vmatpush3.bf16.msra.mxu0 %v6181_v5  ;;  %v3350_v42 = vsel %vm3287_vm11, %v3073_v24, %v6149_v0  ;;  %v3054_v61 = vshrl.u32 %v5878_v1, 16 }
 0x28d   : > { %v4381_v15 = vcombine.low %v3338_v53, %v3341_v10  ;;  %4669 = vmatprep.subr.bf16.mxu0 %v6196_v60  ;;  %v4336_v53 = vcombine.low %v2780_v35, %v6068_v12  ;;  %v4337_v10 = vcombine.low %v2781_v16, %v6103_v8  ;;  %v3377_v12 = vsel %vm3287_vm11, %v5889_v19, %v6156_v41 }
 0x28e   : > { %v3248_v36 = vpop.permute.xlu0 %3247  ;;  %v3059_v23 = vor.u32 %v3058_v56, %v3054_v61  ;;  %v3084_v19 = vshll.u32 %v6010_v28, 16  ;;  %v3091_v41 = vshll.u32 %v6092_v21, 16  ;;  %v6312_v21 = vcombine.low %v6123_v62, %v6125_v2  ;;  %v4378_v62 = vld [vmem:[%s6295_s5] ss:$0 sm:$0xff] }
 0x28f   : > { %3897 = vmatmul.mubr.bf16.vlgmr.msra.gmra.mrb[12].mxu1 %v4381_v15  ;;  %v3006_v27 = vpop.permute.xlu1 %3005  ;;  %v3374_v1 = vsel %vm3287_vm11, %v6048_v52, %v3248_v36  ;;  %v2973_v15 = vrot.slane %v4336_v53, 1  ;;  %v2974_v31 = vrot.slane %v4337_v10, 1 }
 0x290   : > { %v3323_v33 = vsel %vm3287_vm11, %v2970_v17, %v3006_v27  ;;  %4683 = vmatpush3.bf16.msra.mxu1 %v6063_v58  ;;  %4670 = vmatpush3.bf16.msra.mxu0 %v6196_v60  ;;  %v3344_v9 = vsel %vm3287_vm11, %v3059_v23, %v6154_v13  ;;  %v4392_v8 = vcombine.low %v3374_v1, %v3377_v12  ;;  %v3093_v24 = vrot.slane %v3091_v41, 1 }
 0x291   : > { %v4385_v44 = vcombine.low %v3320_v30, %v3323_v33  ;;  %4680 = vmatprep.subr.bf16.mxu1 %v6174_v49  ;;  %v3086_v30 = vrot.slane %v3084_v19, 1 }
 0x292   : > { %v3244_v18 = vpop.permute.xlu0 %3243 }
 0x293   : > { %v3368_v58 = vsel %vm3287_vm11, %v6030_v55, %v3244_v18  ;;  %3839 = vmatprep.mubr.bf16.mxu0 %v4385_v44  ;;  %v3138_v4 = vpop.permute.xlu1 %3137 }
 0x294   : > { %v4387_v20 = vcombine.low %v3368_v58, %v3371_v43  ;;  %v3353_v50 = vsel %vm3287_vm11, %v3080_v22, %v3138_v4  ;;  %3840 = vmatmul.mubr.bf16.gmra.mrb[16].mxu0 %v4384_v48  ;;  %4684 = vmatpush3.bf16.msra.mxu1 %v6174_v49 }
 0x295   : > { %v4391_v47 = vcombine.low %v3350_v42, %v3353_v50  ;;  %3847 = vmatprep.mubr.bf16.mxu0 %v4390_v37  ;;  %4681 = vmatprep.subr.bf16.mxu1 %v6181_v5 }
 0x296   : > { %v3012_v55 = vpop.permute.xlu0 %3011  ;;  %3904 = vmatprep.mubr.bf16.mxu1 %v4387_v20  ;;  %v6316_v20 = vld [vmem:[#allocation5_spill] sm:$0xff] }
 0x297   : > { %v3134_v0 = vpop.permute.xlu1 %3133  ;;  %v3332_v36 = vsel %vm3287_vm11, %v2973_v15, %v3012_v55  ;;  %v6317_v4 = vcombine.low %v6315_v3, %v6316_v20 }
 0x298   : > { %v3347_v49 = vsel %vm3287_vm11, %v3066_v57, %v3134_v0  ;;  %4685 = vmatpush3.bf16.msra.mxu1 %v6181_v5 }
 0x299   : > { %v4386_v37 = vcombine.low %v3344_v9, %v3347_v49  ;;  %4682 = vmatprep.subr.bf16.mxu1 %v6196_v60 }
 0x29a   : > { %v2940_v45 = vpop.permute.xlu0 %2939 }
 0x29b   : > { %3905 = vmatmul.mubr.bf16.gmra.mrb[16].mxu1 %v4386_v37  ;;  %v3014_v52 = vpop.permute.xlu1 %3013 }
 0x29c   : > { %v3335_v13 = vsel %vm3287_vm11, %v2974_v31, %v3014_v52  ;;  %3912 = vmatprep.mubr.bf16.mxu1 %v4392_v8  ;;  %4686 = vmatpush3.bf16.msra.mxu1 %v6196_v60 }
 0x29d   : > { %v4395_v5 = vcombine.low %v3332_v36, %v3335_v13 }
 0x29e   : > { %v2936_v11 = vpop.permute.xlu0 %2935 }
 0x29f   : > { %v3302_v54 = vsel %vm3287_vm11, %v6077_v25, %v2936_v11  ;;  %v3254_v26 = vpop.permute.xlu1 %3253  ;;  %v3082_v25 = vshrl.u32 %v6010_v28, 16  ;;  %v6311_v28 = vcombine.low %v6119_v51, %v6121_v6 }
 0x2a0   : > { %v4389_v17 = vcombine.low %v3302_v54, %v3305_v32  ;;  %v3383_v60 = vsel %vm3287_vm11, %v6073_v59, %v3254_v26  ;;  %v3308_v59 = vsel %vm3287_vm11, %v6066_v46, %v2940_v45  ;;  %v6313_v46 = vld [vmem:[#allocation4_spill] sm:$0xff] }
 0x2a1   : > { %v3087_v44 = vor.u32 %v3086_v30, %v3082_v25 }
 0x2a2   : > { %v3252_v27 = vpop.permute.xlu0 %3251  ;;  %3848 = vmatmul.mubr.bf16.gmra.mrb[20].mxu0 %v4389_v17 }
 0x2a3   : > { %v3380_v7 = vsel %vm3287_vm11, %v6095_v39, %v3252_v27  ;;  %3855 = vmatprep.mubr.bf16.mxu0 %v4395_v5  ;;  %3913 = vmatmul.mubr.bf16.gmra.mrb[20].mxu1 %v4391_v47  ;;  %v2942_v56 = vpop.permute.xlu1 %2941  ;;  %v3094_v39 = vor.u32 %v3093_v24, %v3089_v40 }
 0x2a4   : > { %v4397_v33 = vcombine.low %v3380_v7, %v3383_v60  ;;  %v3311_v34 = vsel %vm3287_vm11, %v6099_v29, %v2942_v56  ;;  %v6314_v29 = vcombine.low %v6032_v38, %v6313_v46 }
 0x2a5   : > { %v4394_v18 = vcombine.low %v3308_v59, %v3311_v34 }
 0x2a6   : > { %v3140_v63 = vpop.permute.xlu0 %3139  ;;  %3920 = vmatprep.mubr.bf16.mxu1 %v4397_v33 }
 0x2a7   : > { %v3142_v22 = vpop.permute.xlu1 %3141  ;;  %v3356_v43 = vsel %vm3287_vm11, %v3087_v44, %v3140_v63 }
 0x2a8   : > { %v3359_v48 = vsel %vm3287_vm11, %v3094_v39, %v3142_v22 }
 0x2a9   : > { %v4396_v58 = vcombine.low %v3356_v43, %v3359_v48 }
 0x2aa   : > { %3856 = vmatmul.mubr.bf16.gmra.mrb[24].mxu0 %v4394_v18 }
 0x2ab   : > { %4671 = vmatprep.mubr.msk.bf16.mxu0 %vm3287_vm11, %v6311_v28  ;;  %3921 = vmatmul.mubr.bf16.gmra.mrb[24].mxu1 %v4396_v58 }
 0x2ac   : > { %4675 = vmatprep.mubr.msk.bf16.mxu1 %vm3287_vm11, %v6312_v21 }
 0x2b2   : > { %4672 = vmatmul.mubr.msk.bf16.vlgmr.msra.gmra.mrb[28].mxu0 %vm3287_vm11, %v6314_v29 }
 0x2b3   : > { %4676 = vmatmul.mubr.msk.bf16.vlgmr.msra.gmra.mrb[28].mxu1 %vm3287_vm11, %v6317_v4 }
 0x356   : > { %v4591_v35 = vpop.f32.mrb[12].mxu0 }
 0x357   : > { %v4592_v6 = vpop.f32.mrb[13].mxu0 }
 0x358   : > { %v4593_v51 = vadd.f32 %v4592_v6, %v4591_v35  ;;  %v4594_v16 = vpop.f32.mrb[14].mxu0 }
 0x359   : > { %v4595_v42 = vpop.f32.mrb[15].mxu0 }
 0x35a   : > { %v4596_v61 = vadd.f32 %v4595_v42, %v4594_v16  ;;  %v3834_v38 = vadd.f32 %v4593_v51, %v4378_v62 }
 0x35c   : > { %v3837_v23 = vadd.f32 %v4596_v61, %v4378_v62 }
 0x362   : > { %v4631_v2 = vpop.f32.mrb[12].mxu1 }
 0x363   : > { %v4632_v50 = vpop.f32.mrb[13].mxu1 }
 0x364   : > { %v4633_v14 = vadd.f32 %v4632_v50, %v4631_v2  ;;  %v4634_v47 = vpop.f32.mrb[14].mxu1 }
 0x365   : > { %v4635_v55 = vpop.f32.mrb[15].mxu1 }
 0x366   : > { %v4636_v53 = vadd.f32 %v4635_v55, %v4634_v47  ;;  %v3899_v57 = vadd.f32 %v4633_v14, %v3834_v38 }
 0x367   : > { %v4597_v10 = vpop.f32.mrb[16].mxu0 }
 0x368   : > { %v4598_v1 = vpop.f32.mrb[17].mxu0  ;;  %v3902_v0 = vadd.f32 %v4636_v53, %v3837_v23 }
 0x369   : > { %v4599_v9 = vadd.f32 %v4598_v1, %v4597_v10  ;;  %v4600_v49 = vpop.f32.mrb[18].mxu0 }
 0x36a   : > { %v4601_v12 = vpop.f32.mrb[19].mxu0 }
 0x36b   : > { %v4602_v37 = vadd.f32 %v4601_v12, %v4600_v49  ;;  %v3842_v15 = vadd.f32 %v4599_v9, %v4378_v62 }
 0x36d   : > { %v3845_v13 = vadd.f32 %v4602_v37, %v4378_v62 }
 0x36e   : > { %v4637_v45 = vpop.f32.mrb[16].mxu1 }
 0x36f   : > { %v4638_v8 = vpop.f32.mrb[17].mxu1 }
 0x370   : > { %v4639_v31 = vadd.f32 %v4638_v8, %v4637_v45  ;;  %v4640_v52 = vpop.f32.mrb[18].mxu1 }
 0x371   : > { %v4641_v36 = vpop.f32.mrb[19].mxu1 }
 0x372   : > { %v4642_v5 = vadd.f32 %v4641_v36, %v4640_v52  ;;  %v3907_v11 = vadd.f32 %v4639_v31, %v3842_v15 }
 0x374   : > { %v3910_v41 = vadd.f32 %v4642_v5, %v3845_v13 }
 0x375   : > { %v4603_v19 = vpop.f32.mrb[20].mxu0 }
 0x376   : > { %v4604_v32 = vpop.f32.mrb[21].mxu0  ;;  %v4643_v26 = vpop.f32.mrb[20].mxu1 }
 0x377   : > { %v4605_v54 = vadd.f32 %v4604_v32, %v4603_v19  ;;  %v4606_v17 = vpop.f32.mrb[22].mxu0  ;;  %v4644_v60 = vpop.f32.mrb[21].mxu1 }
 0x378   : > { %v4607_v27 = vpop.f32.mrb[23].mxu0  ;;  %v4645_v24 = vadd.f32 %v4644_v60, %v4643_v26  ;;  %v4646_v33 = vpop.f32.mrb[22].mxu1 }
 0x379   : > { %v3850_v7 = vadd.f32 %v4605_v54, %v4378_v62  ;;  %v4608_v30 = vadd.f32 %v4607_v27, %v4606_v17  ;;  %v4647_v56 = vpop.f32.mrb[23].mxu1 }
 0x37a   : > { %v4648_v25 = vadd.f32 %v4647_v56, %v4646_v33 }
 0x37b   : > { %v3853_v34 = vadd.f32 %v4608_v30, %v4378_v62  ;;  %v3915_v40 = vadd.f32 %v4645_v24, %v3850_v7 }
 0x37d   : > { %v4609_v63 = vpop.f32.mrb[24].mxu0  ;;  %v3918_v59 = vadd.f32 %v4648_v25, %v3853_v34 }
 0x37e   : > { %v4610_v44 = vpop.f32.mrb[25].mxu0  ;;  %v4649_v22 = vpop.f32.mrb[24].mxu1 }
 0x37f   : > { %v4611_v39 = vadd.f32 %v4610_v44, %v4609_v63  ;;  %v4612_v18 = vpop.f32.mrb[26].mxu0  ;;  %v4650_v48 = vpop.f32.mrb[25].mxu1 }
 0x380   : > { %v4613_v43 = vpop.f32.mrb[27].mxu0  ;;  %v4651_v21 = vadd.f32 %v4650_v48, %v4649_v22  ;;  %v4652_v46 = vpop.f32.mrb[26].mxu1 }
 0x381   : > { %v3858_v58 = vadd.f32 %v4611_v39, %v4378_v62  ;;  %v4614_v28 = vadd.f32 %v4613_v43, %v4612_v18  ;;  %v4653_v29 = vpop.f32.mrb[27].mxu1 }
 0x382   : > { %v4654_v20 = vadd.f32 %v4653_v29, %v4652_v46 }
 0x383   : > { %v3861_v3 = vadd.f32 %v4614_v28, %v4378_v62  ;;  %v3923_v4 = vadd.f32 %v4651_v21, %v3858_v58 }
 0x385   : > { %v4673_v35 = vpop.f32.mrb[28].mxu0  ;;  %v3926_v6 = vadd.f32 %v4654_v20, %v3861_v3 }
 0x386   : > { %v3972_v51 = vadd.f32 %v4673_v35, %v3907_v11  ;;  %v3963_v16 = vpop.f32.mrb[29].mxu0  ;;  %v4677_v2 = vpop.f32.mrb[28].mxu1 }
 0x387   : > { %v3964_v42 = vadd.f32 %v3963_v16, %v3899_v57  ;;  %v4674_v61 = vpop.f32.mrb[30].mxu0  ;;  %v3988_v38 = vadd.f32 %v4677_v2, %v3923_v4  ;;  %v3979_v47 = vpop.f32.mrb[29].mxu1 }
 0x388   : > { %4912 = vtanh.f32 %v3972_v51  ;;  %v3975_v50 = vadd.f32 %v4674_v61, %v3910_v41  ;;  %v3966_v14 = vpop.f32.mrb[31].mxu0  ;;  %v3980_v23 = vadd.f32 %v3979_v47, %v3915_v40  ;;  %v4678_v53 = vpop.f32.mrb[30].mxu1 }
 0x389   : > { %4914 = vtanh.f32 %v3964_v42  ;;  %v3967_v55 = vadd.f32 %v3966_v14, %v3902_v0  ;;  %v3991_v62 = vadd.f32 %v4678_v53, %v3926_v6  ;;  %v3982_v10 = vpop.f32.mrb[31].mxu1 }
 0x38a   : > { %4916 = vtanh.f32 %v3975_v50  ;;  %v3983_v1 = vadd.f32 %v3982_v10, %v3918_v59 }
 0x38b   : > { %4918 = vtanh.f32 %v3988_v38 }
 0x38c   : > { %4920 = vtanh.f32 %v3967_v55 }
 0x38d   : > { %4922 = vtanh.f32 %v3980_v23 }
 0x38e   : > { %4924 = vtanh.f32 %v3991_v62 }
 0x38f   : > { %4926 = vtanh.f32 %v3983_v1 }
 0x392   : > { %v4913_v57 = vpop.eup %4912 }
 0x393   : > { %v4915_v9 = vpop.eup %4914  ;;  %4004 = vst [vmem:[%s251_s15 + $0x10] sm:$0xff] %v4913_v57 }
 0x394   : > { %v4917_v0 = vpop.eup %4916  ;;  %4002 = vst [vmem:[%s251_s15] sm:$0xff] %v4915_v9 }
 0x395   : > { %v4919_v49 = vpop.eup %4918  ;;  %4005 = vst [vmem:[%s251_s15 + $0x18] sm:$0xff] %v4917_v0 }
 0x396   : > { %v4921_v12 = vpop.eup %4920  ;;  %4008 = vst [vmem:[%s251_s15 + $0x30] sm:$0xff] %v4919_v49 }
 0x397   : > { %v4923_v37 = vpop.eup %4922  ;;  %4003 = vst [vmem:[%s251_s15 + $0x8] sm:$0xff] %v4921_v12 }
 0x398   : > { %v4925_v45 = vpop.eup %4924  ;;  %4006 = vst [vmem:[%s251_s15 + $0x20] sm:$0xff] %v4923_v37 }
 0x399   : > { %v4927_v8 = vpop.eup %4926  ;;  %4009 = vst [vmem:[%s251_s15 + $0x38] sm:$0xff] %v4925_v45 }
 0x39a   : > { %4007 = vst [vmem:[%s251_s15 + $0x28] sm:$0xff] %v4927_v8 }
 0x39b PF: > { %s16_s21 = sadd.s32 1, %s4936_s21  }
 0x39c   : > { %p13_p4 = scmp.ge.s32.totalorder %s16_s21, 4  }
 0x39e   :  { %15 = sbr.rel (!%p13_p4) target bundleno = 1 (0x1), region = 79 }

// kernel: generator_forward_pallas.2
= control target key start
LH: loop header
LB: loop body
LE: loop exit
PB: predicated region body
PF: predicated region fallthrough
CT: control target
= control target key end

     0   :  { %s6761_s0 = inlined_call_operand.vmem [shape: bf16[2,32], index: 0, kind: input, shape index: {}]   ;;  %s6762_s1 = inlined_call_operand.hbm [shape: bf16[32,1024], index: 1, kind: input, shape index: {}]   ;;  %s6763_s2 = inlined_call_operand.hbm [shape: f32[1,1024], index: 2, kind: input, shape index: {}]   ;;  %s6764_s3 = inlined_call_operand.hbm [shape: f32[1,1024], index: 3, kind: input, shape index: {}]   ;;  %s6765_s4 = inlined_call_operand.hbm [shape: bf16[1024,2048], index: 4, kind: input, shape index: {}]   ;;  %s6766_s5 = inlined_call_operand.hbm [shape: f32[1,2048], index: 5, kind: input, shape index: {}]   ;;  %s6767_s6 = inlined_call_operand.hbm [shape: f32[1,2048], index: 6, kind: input, shape index: {}]   ;;  %s6768_s7 = inlined_call_operand.vmem [shape: bf16[2,2048], index: 7, kind: output, shape index: {}]  }
   0x1   :  { %6783 = sst [smem:[#allocation19_spill]] %s6761_s0 }
   0x2   :  { %6784 = sst [smem:[#allocation20_spill]] %s6763_s2 }
   0x3   :  { %6785 = sst [smem:[#allocation21_spill]] %s6765_s4 }
   0x4   :  { %6786 = sst [smem:[#allocation22_spill]] %s6768_s7 }
   0x5   :  { %12 = vsyncpa [#allocation3], 0 }
   0x6   :  { %13 = vsyncpa [#allocation5], 0 }
   0x7   :  { %14 = vsyncpa [#allocation8], 0 }
   0x8   :  { %16 = vsyncpa [#allocation8 + $0x1], 0 }
   0x9   :  { %17 = vsyncpa [#allocation11], 0 }
   0xa   :  { %19 = vsyncpa [#allocation11 + $0x1], 0  ;;  %s5807_s24 = smov 0   ;;  %s5809_s25 = smov 0  }
   0xb   :  { %s5811_s26 = smov 0   ;;  %s5813_s27 = smov 0  }
   0xc LB: > { %6787 = sst [smem:[#allocation16_spill]] %s5750_s26  ;;  %s5826_s28 = sadd.s32 4294967295, %s5754_s27   ;;  %s5754_s27 = sphi %s5813_s27, %s6812_s27   ;;  %s5750_s26 = sphi %s5811_s26, %s6814_s26   ;;  %s5746_s25 = sphi %s5809_s25, %s6816_s25   ;;  %s5742_s24 = sphi %s5807_s24, %s6815_s24  }
   0xd   : > { %s5829_s29 = sadd.s32 1, %s5754_s27   ;;  %s116_s8 = sadd.s32 1, %s5750_s26 }
   0xe   : > { %6788 = sst [smem:[#allocation17_spill]] %s5829_s29  ;;  %s113_s30 = ssub.s32 %s5754_s27, %s5829_s29 }
   0xf   : > { %p114_p0 = scmp.eq.s32.totalorder %s113_s30, 0  ;;  %p123_p1 = scmp.ne.s32.totalorder %s5750_s26, %s5746_s25 }
  0x10   : > { %p124_p2 = scmp.eq.s32.totalorder %s5754_s27, 0  ;;  %p129_p3 = scmp.ne.s32.totalorder %s5746_s25, %s5742_s24 }
  0x11   : > { %s5839_s9 = scalar_select %p114_p0, %s5750_s26, %s116_s8  }
  0x12   : > { %p125_p4 = por %p124_p2, %p123_p1  ;;  %p6769_p5 = scmp.eq.s32.totalorder %s5826_s28, 0 }
  0x13   : > { %6789 = sst [smem:[#allocation18_spill]] %s5839_s9  ;;  %p4836_p6 = scmp.ge.s32.totalorder %s5754_s27, 1 }
  0x14   : > { %p218_p7 = scmp.lt.s32.totalorder %s5754_s27, 3  ;;  %p5846_p8 = por %p6769_p5, %p129_p3 }
  0x15   : > { %s5756_s12 = smov [#allocation4]   ;;  %p5488_p11 = scmp.lt.s32.totalorder %s5754_s27, 2 }
  0x16   : > { %s6790_s10 = scalar_select %p5846_p8, 1, 0 }
  0x17   : > { %p5850_p9 = pnand %p4836_p6, %p218_p7  ;;  %s247_s13 = sshll.u32 %s5756_s12, 4  ;;  %s248_s13 = int_to_ptr.vmem [resolvable:$true] %s247_s13 }
  0x18   : > { %p5863_p13 = pnand %p5488_p11, %p125_p4  ;;  %s269_s16 = sand.u32 1, %s5754_s27  }
  0x19   : > { %s6791_s11 = scalar_select %p5850_p9, 1, 0 }
  0x1a   : > { %p5465_p10 = pneg %p5850_p9  ;;  %s6794_s2 = sld [smem:[#allocation20_spill]] }
  0x1b   : > { %s6793_s15 = scalar_select %p5863_p13, 1, 0 }
  0x1c   : > { %p5859_p12 = pnand %p5465_p10, %p6769_p5 }
  0x1e   : > { %s6792_s14 = scalar_select %p5859_p12, 1, 0 }
  0x1f   : > { %p5876_p1 = pneg %p5859_p12 }
  0x20   : > { %s5534_s19 = scalar_lea.hbm %s6794_s2, 128 }
  0x21   : > { %p5535_p0 = scmp.ne.s32.totalorder %s6794_s2, %s5534_s19  ;;  %p5541_p4 = scmp.lt.u32.totalorder %s5534_s19, %s6794_s2 }
  0x22   : > { %s6795_s22 = scalar_select %p5876_p1, 1, 0 }
  0x23   : > { %p5537_p2 = pnand %p5876_p1, %p5535_p0 }
  0x25   : > { %p5538_p3 = pneg %p5537_p2 }
  0x27   : > { %p5543_p6 = pnand %p5541_p4, %p5538_p3 }
  0x29   : > { %5546 = shalt.err (!%p5543_p6)
}
  0x2a   : > { %s5547_s30 = scalar_lea.vmem %s248_s13, 128  ;;  %p5555_p5 = scmp.lt.s32.totalorder %s248_s13, %s248_s13 }
  0x2b   : > { %p5548_p7 = scmp.ne.s32.totalorder %s248_s13, %s5547_s30  ;;  %p5556_p8 = scmp.lt.s32.totalorder %s5547_s30, %s5547_s30 }
  0x2d   : > { %p5550_p10 = pnand %p5548_p7, %p5876_p1  ;;  %p5557_p9 = por %p5556_p8, %p5555_p5 }
  0x2f   : > { %p5551_p11 = pneg %p5550_p10 }
  0x31   : > { %p5558_p13 = pnand %p5557_p9, %p5551_p11 }
  0x33   : > { %5561 = shalt.err (!%p5558_p13)
}
  0x34   : > { %5471 = dma.hbm_to_vmem [thread:$0]  (!%p5859_p12), %s6794_s2, 128, %s248_s13, [#allocation5]  }
  0x35   : > { %s5893_s17 = sand.u32 1, %s5750_s26   ;;  %s5396_s19 = sshll.u32 %s5754_s27, 9 }
  0x36   : > { %s4841_s18 = sshll.u32 %s5893_s17, 12  ;;  %s6796_s4 = sld [smem:[#allocation21_spill]] }
  0x37   : > { %s273_s24 = scalar_lea.vmem [#allocation7], %s4841_s18  ;;  %s5904_s8 = scalar_lea.sflag [#allocation8], %s269_s16 }
  0x38   : > { %s280_s30 = sshll.u32 %s273_s24, 4  ;;  %p6797_p8 = scmp.ne.s32.totalorder %s6793_s15, 0  ;;  %s5902_s30 = int_to_ptr.vmem [resolvable:$true] %s280_s30 }
  0x3a   : > { %p5910_p9 = pneg %p6797_p8 }
  0x3c   : > { %s5900_s23 = scalar_lea.hbm %s6796_s4, %s5396_s19  ;;  %s5567_s18 = scalar_lea.hbm %s6796_s4, 131072 }
  0x3d   : > { %s5562_s13 = scalar_lea.hbm %s5900_s23, 65536  ;;  %p5568_p2 = scmp.lt.u32.totalorder %s5900_s23, %s6796_s4 }
  0x3e   : > { %p5563_p5 = scmp.ne.s32.totalorder %s5900_s23, %s5562_s13  ;;  %p5569_p3 = scmp.lt.u32.totalorder %s5567_s18, %s5562_s13 }
  0x3f   : > { %s6798_s12 = scalar_select %p5910_p9, 1, 0 }
  0x40   : > { %p5565_p13 = pnand %p5910_p9, %p5563_p5  ;;  %p5570_p4 = por %p5569_p3, %p5568_p2 }
  0x41   : > { %p5571_p6 = scmp.lt.u32.totalorder %s5562_s13, %s5900_s23 }
  0x42   : > { %p5566_p0 = pneg %p5565_p13 }
  0x43   : > { %p5572_p7 = por %p5571_p6, %p5570_p4 }
  0x45   : > { %p5573_p10 = pnand %p5572_p7, %p5566_p0 }
  0x47   : > { %5576 = shalt.err (!%p5573_p10)
}
  0x48   : > { %s5577_s16 = scalar_lea.vmem %s5902_s30, 65536  ;;  %s5757_s19 = smov [#allocation7]  }
  0x49   : > { %p5578_p11 = scmp.ne.s32.totalorder %s5902_s30, %s5577_s16  ;;  %s5582_s20 = sshll.u32 %s5757_s19, 4  ;;  %s5583_s20 = int_to_ptr.vmem [resolvable:$false] %s5582_s20 }
  0x4a   : > { %s5584_s21 = scalar_lea.vmem %s5583_s20, 131072  ;;  %p5585_p12 = scmp.lt.s32.totalorder %s5902_s30, %s5583_s20 }
  0x4b   : > { %p5580_p5 = pnand %p5578_p11, %p5910_p9  ;;  %p5586_p1 = scmp.lt.s32.totalorder %s5584_s21, %s5577_s16 }
  0x4d   : > { %p5581_p13 = pneg %p5580_p5  ;;  %p5587_p2 = por %p5586_p1, %p5585_p12 }
  0x4f   : > { %p5588_p3 = pnand %p5587_p2, %p5581_p13 }
  0x51   : > { %5591 = shalt.err (!%p5588_p3)
}
  0x52   : > { %s5758_s13 = smov 1024   ;;  %s5759_s18 = smov 512  }
  0x53   : > { %s5760_s24 = smov 32   ;;  %s5761_s2 = smov [#allocation2]  }
  0x54   : > { %5478 = dma.hbm_to_vmem [thread:$0]  (!%p6797_p8), %s5900_s23, 65536, %s5902_s30, %s5904_s8, %s5758_s13, %s5759_s18, %s5760_s24  }
  0x55   : > { %s233_s4 = sshll.u32 %s5761_s2, 4  ;;  %s5762_s19 = smov [#allocation6]   ;;  %s234_s4 = int_to_ptr.vmem [resolvable:$true] %s233_s4 }
  0x56   : > { %s258_s9 = sshll.u32 %s5762_s19, 4  ;;  %s5592_s21 = scalar_lea.hbm %s6762_s1, 2048  ;;  %s259_s9 = int_to_ptr.vmem [resolvable:$true] %s258_s9 }
  0x57   : > { %p5593_p12 = scmp.ne.s32.totalorder %s6762_s1, %s5592_s21  ;;  %p6799_p1 = scmp.ne.s32.totalorder %s6795_s22, 0 }
  0x58   : > { %p5599_p6 = scmp.lt.u32.totalorder %s5592_s21, %s6762_s1 }
  0x59   : > { %p5595_p0 = pnand %p5593_p12, %p6799_p1 }
  0x5b   : > { %p5596_p4 = pneg %p5595_p0 }
  0x5d   : > { %p5601_p7 = pnand %p5599_p6, %p5596_p4 }
  0x5f   : > { %5604 = shalt.err (!%p5601_p7)
}
  0x60   : > { %s5605_s2 = scalar_lea.vmem %s234_s4, 2048  ;;  %p5613_p13 = scmp.lt.s32.totalorder %s234_s4, %s234_s4 }
  0x61   : > { %p5606_p10 = scmp.ne.s32.totalorder %s234_s4, %s5605_s2  ;;  %p5614_p2 = scmp.lt.s32.totalorder %s5605_s2, %s5605_s2 }
  0x63   : > { %p5608_p11 = pnand %p5606_p10, %p6799_p1  ;;  %p5615_p3 = por %p5614_p2, %p5613_p13 }
  0x65   : > { %p5609_p5 = pneg %p5608_p11 }
  0x67   : > { %p5616_p8 = pnand %p5615_p3, %p5609_p5 }
  0x69   : > { %5619 = shalt.err (!%p5616_p8)
}
  0x6a   : > { %p6800_p12 = scmp.ne.s32.totalorder %s6792_s14, 0  ;;  %s4844_s0 = sshll.u32 %s5893_s17, 3 }
  0x6b   : > { %s5620_s30 = scalar_lea.hbm %s6764_s3, 128 }
  0x6c   : > { %5468 = dma.hbm_to_vmem [thread:$0]  (!%p6800_p12), %s6762_s1, 2048, %s234_s4, [#allocation3], %s5759_s18, %s5759_s18, %s5760_s24  }
  0x6d   : > { %p5621_p0 = scmp.ne.s32.totalorder %s6764_s3, %s5620_s30  ;;  %p5627_p6 = scmp.lt.u32.totalorder %s5620_s30, %s6764_s3 }
  0x6f   : > { %p5623_p8 = pnand %p5621_p0, %p6799_p1 }
  0x71   : > { %p5624_p4 = pneg %p5623_p8 }
  0x73   : > { %p5629_p7 = pnand %p5627_p6, %p5624_p4 }
  0x75   : > { %5632 = shalt.err (!%p5629_p7)
}
  0x76   : > { %s5633_s4 = scalar_lea.vmem %s259_s9, 128  ;;  %p5641_p13 = scmp.lt.s32.totalorder %s259_s9, %s259_s9 }
  0x77   : > { %p5634_p10 = scmp.ne.s32.totalorder %s259_s9, %s5633_s4  ;;  %p5642_p2 = scmp.lt.s32.totalorder %s5633_s4, %s5633_s4 }
  0x79   : > { %p5636_p11 = pnand %p5634_p10, %p6799_p1  ;;  %p5643_p3 = por %p5642_p2, %p5641_p13 }
  0x7b   : > { %p5637_p5 = pneg %p5636_p11 }
  0x7d   : > { %p5644_p9 = pnand %p5643_p3, %p5637_p5 }
  0x7f   : > { %5647 = shalt.err (!%p5644_p9)
}
  0x80   : > { %5474 = dma.hbm_to_vmem [thread:$0]  (!%p6800_p12), %s6764_s3, 128, %s259_s9, [#allocation5]  }
  0x81   : > { %s5397_s21 = sshll.u32 %s5754_s27, 7  ;;  %s294_s14 = scalar_lea.vmem [#allocation9], %s4844_s0 }
  0x82   : > { %s5977_s26 = scalar_lea.hbm %s6766_s5, %s5397_s21  ;;  %s302_s29 = sshll.u32 %s294_s14, 4  ;;  %s303_s29 = int_to_ptr.vmem [resolvable:$true] %s302_s29 }
  0x83   : > { %s5648_s7 = scalar_lea.hbm %s5977_s26, 128  ;;  %p6801_p1 = scmp.ne.s32.totalorder %s6798_s12, 0 }
  0x84   : > { %p5649_p9 = scmp.ne.s32.totalorder %s5977_s26, %s5648_s7  ;;  %s5653_s30 = scalar_lea.hbm %s6766_s5, 256 }
  0x85   : > { %p5654_p8 = scmp.lt.u32.totalorder %s5977_s26, %s6766_s5  ;;  %p5655_p4 = scmp.lt.u32.totalorder %s5653_s30, %s5648_s7 }
  0x86   : > { %p5651_p0 = pnand %p5649_p9, %p6801_p1  ;;  %p5657_p7 = scmp.lt.u32.totalorder %s5648_s7, %s5977_s26 }
  0x87   : > { %p5656_p6 = por %p5655_p4, %p5654_p8 }
  0x88   : > { %p5652_p12 = pneg %p5651_p0 }
  0x89   : > { %p5658_p10 = por %p5657_p7, %p5656_p6 }
  0x8b   : > { %p5659_p11 = pnand %p5658_p10, %p5652_p12 }
  0x8d   : > { %5662 = shalt.err (!%p5659_p11)
}
  0x8e   : > { %s5663_s20 = scalar_lea.vmem %s303_s29, 128  ;;  %s5763_s16 = smov [#allocation9]  }
  0x8f   : > { %p5664_p5 = scmp.ne.s32.totalorder %s303_s29, %s5663_s20  ;;  %s5668_s4 = sshll.u32 %s5763_s16, 4  ;;  %s5669_s4 = int_to_ptr.vmem [resolvable:$false] %s5668_s4 }
  0x90   : > { %s5670_s18 = scalar_lea.vmem %s5669_s4, 256  ;;  %p5671_p3 = scmp.lt.s32.totalorder %s303_s29, %s5669_s4 }
  0x91   : > { %p5666_p13 = pnand %p5664_p5, %p6801_p1  ;;  %p5672_p9 = scmp.lt.s32.totalorder %s5670_s18, %s5663_s20 }
  0x93   : > { %p5667_p2 = pneg %p5666_p13  ;;  %p5673_p0 = por %p5672_p9, %p5671_p3 }
  0x95   : > { %p5674_p4 = pnand %p5673_p0, %p5667_p2 }
  0x97   : > { %5677 = shalt.err (!%p5674_p4)
}
  0x98   : > { %p6802_p8 = scmp.ne.s32.totalorder %s6793_s15, 0  ;;  %s6004_s2 = scalar_lea.hbm %s6767_s6, %s5397_s21 }
  0x99   : > { %s313_s14 = scalar_lea.vmem [#allocation10], %s4844_s0  ;;  %s310_s9 = scalar_lea.sflag [#allocation11], %s5893_s17 }
  0x9a   : > { %5481 = dma.hbm_to_vmem [thread:$0]  (!%p6802_p8), %s5977_s26, 128, %s303_s29, %s5904_s8  }
  0x9b   : > { %s321_s7 = sshll.u32 %s313_s14, 4  ;;  %s5678_s23 = scalar_lea.hbm %s6004_s2, 128  ;;  %s322_s7 = int_to_ptr.vmem [resolvable:$true] %s321_s7 }
  0x9c   : > { %p5679_p12 = scmp.ne.s32.totalorder %s6004_s2, %s5678_s23  ;;  %s5683_s26 = scalar_lea.hbm %s6767_s6, 256 }
  0x9d   : > { %p5684_p10 = scmp.lt.u32.totalorder %s6004_s2, %s6767_s6  ;;  %p5685_p11 = scmp.lt.u32.totalorder %s5683_s26, %s5678_s23 }
  0x9e   : > { %p5681_p6 = pnand %p5679_p12, %p6801_p1  ;;  %p5687_p13 = scmp.lt.u32.totalorder %s5678_s23, %s6004_s2 }
  0x9f   : > { %p5686_p5 = por %p5685_p11, %p5684_p10 }
  0xa0   : > { %p5682_p7 = pneg %p5681_p6 }
  0xa1   : > { %p5688_p2 = por %p5687_p13, %p5686_p5 }
  0xa3   : > { %p5689_p3 = pnand %p5688_p2, %p5682_p7 }
  0xa5   : > { %5692 = shalt.err (!%p5689_p3)
}
  0xa6   : > { %s5693_s17 = scalar_lea.vmem %s322_s7, 128  ;;  %s5764_s0 = smov [#allocation10]  }
  0xa7   : > { %p5694_p9 = scmp.ne.s32.totalorder %s322_s7, %s5693_s17  ;;  %s5698_s30 = sshll.u32 %s5764_s0, 4  ;;  %s5699_s30 = int_to_ptr.vmem [resolvable:$false] %s5698_s30 }
  0xa8   : > { %s5700_s13 = scalar_lea.vmem %s5699_s30, 256  ;;  %p5701_p12 = scmp.lt.s32.totalorder %s322_s7, %s5699_s30 }
  0xa9   : > { %p5696_p0 = pnand %p5694_p9, %p6801_p1  ;;  %p5702_p6 = scmp.lt.s32.totalorder %s5700_s13, %s5693_s17 }
  0xab   : > { %p5697_p4 = pneg %p5696_p0  ;;  %p5703_p8 = por %p5702_p6, %p5701_p12 }
  0xad   : > { %p5704_p10 = pnand %p5703_p8, %p5697_p4 }
  0xaf   : > { %5707 = shalt.err (!%p5704_p10)
}
  0xb0   : > { %p6803_p11 = scmp.ne.s32.totalorder %s6793_s15, 0  ;;  %p6804_p7 = scmp.ne.s32.totalorder %s6791_s11, 0 }
  0xb1   : > { %p6805_p5 = scmp.eq.s32.totalorder (!%p6804_p7), %s5826_s28, 0 }
  0xb2   : > { %5484 = dma.hbm_to_vmem [thread:$0]  (!%p6803_p11), %s6004_s2, 128, %s322_s7, %s310_s9  }
  0xb3   : > { %330 = sbr.rel (%p6804_p7) target bundleno = 1112 (0x458), region = 48 }
  0xba   : > { %5725 = dma.done.wait (%p6805_p5), [#allocation3], 2048   ;;  %p6806_p1 = pmov %p6805_p5 }
  0xbc   : > { %5727 = vsyncadd (%p6806_p1), [#allocation3], 4294965248  ;;  %p6807_p13 = pmov %p6806_p1 }
  0xbd   : > { %p6808_p2 = pmov %p6806_p1 }
  0xbe   : > { %5729 = dma.done.wait (%p6807_p13), [#allocation5], 256  }
  0xbf   : > { %5731 = vsyncadd (%p6808_p2), [#allocation5], 4294967040  ;;  %s344_s15 = sand.u32 1, %s5826_s28   ;;  %s346_s12 = sand.u32 1, %s5746_s25  }
  0xc0   : > { %s4854_s19 = sshll.u32 %s346_s12, 12  ;;  %s345_s11 = scalar_lea.sflag [#allocation8], %s344_s15 }
  0xc1   : > { %s6038_s20 = scalar_lea.vmem [#allocation7], %s4854_s19  ;;  %p6809_p8 = scmp.ne.s32.totalorder %s6790_s10, 0 }
  0xc3   : > { %5733 = dma.done.wait (%p6809_p8), %s345_s11, 65664  }
  0xc4   : > { %5735 = vsyncadd (%p6809_p8), %s345_s11, 4294901632  ;;  %s4855_s16 = sshll.u32 %s346_s12, 3  ;;  %s363_s18 = scalar_lea.sflag [#allocation11], %s346_s12 }
  0xc5   : > { %s6044_s4 = scalar_lea.vmem [#allocation9], %s4855_s16  ;;  %s6046_s24 = scalar_lea.vmem [#allocation10], %s4855_s16 }
  0xc6   : > { %5737 = dma.done.wait (%p6809_p8), %s363_s18, 128  }
  0xc7   : > { %5739 = vsyncadd (%p6809_p8), %s363_s18, 4294967168  ;;  %v5765_v0 = vmov 0   ;;  %v416_v1 = vld [vmem:[#allocation2] sm:$0xff]  ;;  %v417_v7 = vld [vmem:[#allocation2 + $0x8] sm:$0xff]  ;;  %s6810_s2 = sld [smem:[#allocation19_spill]]  ;;  %vm512_vm0 = vcmask 261120  }
  0xc8   : > { %548 = vmatprep.mubr.bf16.mxu0 %v5765_v0  ;;  %589 = vmatprep.mubr.bf16.mxu1 %v5765_v0  ;;  %v420_v2 = vld [vmem:[#allocation2 + $0x20] sm:$0xff]  ;;  %v421_v9 = vld [vmem:[#allocation2 + $0x28] sm:$0xff]  ;;  %v418_v15 = vld [vmem:[#allocation2 + $0x10] sm:$0xff]  ;;  %s4857_s14 = sshll.u32 %s5826_s28, 3  ;;  %s6811_s9 = sld [smem:[#allocation22_spill]] }
  0xc9   : > { %v424_v3 = vld [vmem:[#allocation2 + $0x40] sm:$0xff]  ;;  %v4859_v4 = vcombine.high %v416_v1, %v420_v2  ;;  %v4858_v5 = vcombine.low %v416_v1, %v420_v2  ;;  %v425_v10 = vld [vmem:[#allocation2 + $0x48] sm:$0xff]  ;;  %v4861_v12 = vcombine.high %v417_v7, %v421_v9  ;;  %v4860_v13 = vcombine.low %v417_v7, %v421_v9  ;;  %v422_v16 = vld [vmem:[#allocation2 + $0x30] sm:$0xff]  ;;  %p410_p3 = scmp.lt.s32.totalorder %s4857_s14, 15 }
  0xca   : > { %v428_v6 = vld [vmem:[#allocation2 + $0x60] sm:$0xff]  ;;  %v429_v11 = vld [vmem:[#allocation2 + $0x68] sm:$0xff]  ;;  %v419_v18 = vld [vmem:[#allocation2 + $0x18] sm:$0xff]  ;;  %v4863_v20 = vcombine.high %v418_v15, %v422_v16  ;;  %v4862_v26 = vcombine.low %v418_v15, %v422_v16 }
  0xcb   : > { %v4867_v8 = vcombine.high %v424_v3, %v428_v6  ;;  %516 = vmatprep.subr.bf16.mxu0 %v4859_v4  ;;  %v4869_v14 = vcombine.high %v425_v10, %v429_v11  ;;  %v4866_v17 = vcombine.low %v424_v3, %v428_v6  ;;  %v423_v19 = vld [vmem:[#allocation2 + $0x38] sm:$0xff]  ;;  %557 = vmatprep.subr.bf16.mxu1 %v4861_v12  ;;  %v426_v22 = vld [vmem:[#allocation2 + $0x50] sm:$0xff]  ;;  %s6818_s14 = smov (!%p410_p3, %s4857_s14), 15 }
  0xcc   : > { %517 = vmatpush1.bf16.msra.mxu0 %v4858_v5  ;;  %558 = vmatpush1.bf16.msra.mxu1 %v4860_v13  ;;  %v4868_v21 = vcombine.low %v425_v10, %v429_v11  ;;  %v430_v23 = vld [vmem:[#allocation2 + $0x70] sm:$0xff]  ;;  %v4865_v24 = vcombine.high %v419_v18, %v423_v19  ;;  %v427_v27 = vld [vmem:[#allocation2 + $0x58] sm:$0xff]  ;;  %v4864_v30 = vcombine.low %v419_v18, %v423_v19 }
  0xcd   : > { %518 = vmatprep.subr.bf16.mxu0 %v4867_v8  ;;  %559 = vmatprep.subr.bf16.mxu1 %v4869_v14  ;;  %v415_v25 = vld [vmem:[%s6810_s2] sm:$0x1]  ;;  %v431_v28 = vld [vmem:[#allocation2 + $0x78] sm:$0xff]  ;;  %v4871_v29 = vcombine.high %v426_v22, %v430_v23  ;;  %v4870_v34 = vcombine.low %v426_v22, %v430_v23 }
  0xce   : > { %v796_v31 = vld [vmem:[%s6038_s20] sm:$0xff]  ;;  %v4873_v33 = vcombine.high %v427_v27, %v431_v28  ;;  %v797_v35 = vld [vmem:[%s6038_s20 + $0x8] sm:$0xff]  ;;  %v4872_v38 = vcombine.low %v427_v27, %v431_v28  ;;  %s412_s23 = scalar_lea.vmem %s6811_s9, %s6818_s14 }
  0xcf   : > { %v800_v32 = vld [vmem:[%s6038_s20 + $0x20] sm:$0xff]  ;;  %v801_v36 = vld [vmem:[%s6038_s20 + $0x28] sm:$0xff] }
  0xd0   : > { %519 = vmatpush1.bf16.msra.mxu0 %v4866_v17  ;;  %560 = vmatpush1.bf16.msra.mxu1 %v4868_v21  ;;  %v4879_v37 = vcombine.high %v796_v31, %v800_v32  ;;  %v804_v39 = vld [vmem:[%s6038_s20 + $0x40] sm:$0xff]  ;;  %v4881_v41 = vcombine.high %v797_v35, %v801_v36  ;;  %v4878_v42 = vcombine.low %v796_v31, %v800_v32  ;;  %v805_v43 = vld [vmem:[%s6038_s20 + $0x48] sm:$0xff] }
  0xd1   : > { %598 = vmatprep.subr.bf16.mxu0 %v4863_v20  ;;  %639 = vmatprep.subr.bf16.mxu1 %v4865_v24  ;;  %v808_v40 = vld [vmem:[%s6038_s20 + $0x60] sm:$0xff]  ;;  %v809_v44 = vld [vmem:[%s6038_s20 + $0x68] sm:$0xff]  ;;  %v4880_v46 = vcombine.low %v797_v35, %v801_v36 }
  0xd2   : > { %v4887_v45 = vcombine.high %v804_v39, %v808_v40  ;;  %v812_v47 = vld [vmem:[%s6038_s20 + $0x80] sm:$0xff]  ;;  %v4889_v49 = vcombine.high %v805_v43, %v809_v44  ;;  %v4886_v50 = vcombine.low %v804_v39, %v808_v40  ;;  %v813_v51 = vld [vmem:[%s6038_s20 + $0x88] sm:$0xff]  ;;  %v4888_v54 = vcombine.low %v805_v43, %v809_v44 }
  0xd3   : > { %4874 = vmatmul.mubr.msk.bf16.vlgmr.msra.gmra.mrb[0].mxu0 %vm512_vm0, %v415_v25  ;;  %4875 = vmatmul.mubr.msk.bf16.vlgmr.msra.gmra.mrb[0].mxu1 %vm512_vm0, %v415_v25  ;;  %v816_v48 = vld [vmem:[%s6038_s20 + $0xa0] sm:$0xff]  ;;  %v817_v52 = vld [vmem:[%s6038_s20 + $0xa8] sm:$0xff] }
  0xd4   : > { %599 = vmatpush1.bf16.msra.mxu0 %v4862_v26  ;;  %630 = vmatprep.mubr.bf16.mxu0 %v5765_v0  ;;  %v4895_v53 = vcombine.high %v812_v47, %v816_v48  ;;  %v820_v55 = vld [vmem:[%s6038_s20 + $0xc0] sm:$0xff]  ;;  %v4897_v57 = vcombine.high %v813_v51, %v817_v52  ;;  %v4894_v58 = vcombine.low %v812_v47, %v816_v48  ;;  %v821_v59 = vld [vmem:[%s6038_s20 + $0xc8] sm:$0xff] }
  0xd5   : > { %600 = vmatprep.subr.bf16.mxu0 %v4871_v29  ;;  %640 = vmatpush1.bf16.msra.mxu1 %v4864_v30  ;;  %v824_v56 = vld [vmem:[%s6038_s20 + $0xe0] sm:$0xff]  ;;  %v825_v60 = vld [vmem:[%s6038_s20 + $0xe8] sm:$0xff]  ;;  %v4896_v62 = vcombine.low %v813_v51, %v817_v52 }
  0xd6   : > { %671 = vmatprep.mubr.bf16.mxu1 %v5765_v0  ;;  %641 = vmatprep.subr.bf16.mxu1 %v4873_v33  ;;  %v4903_v61 = vcombine.high %v820_v55, %v824_v56  ;;  %v828_v63 = vld [vmem:[%s6038_s20 + $0x100] sm:$0xff]  ;;  %v4905_v1 = vcombine.high %v821_v59, %v825_v60  ;;  %v4902_v2 = vcombine.low %v820_v55, %v824_v56  ;;  %v829_v3 = vld [vmem:[%s6038_s20 + $0x108] sm:$0xff] }
  0xd7   : > { %v832_v0 = vld [vmem:[%s6038_s20 + $0x120] sm:$0xff]  ;;  %v833_v4 = vld [vmem:[%s6038_s20 + $0x128] sm:$0xff]  ;;  %v4904_v6 = vcombine.low %v821_v59, %v825_v60 }
  0xd8   : > { %601 = vmatpush1.bf16.msra.mxu0 %v4870_v34  ;;  %v4911_v5 = vcombine.high %v828_v63, %v832_v0  ;;  %v836_v7 = vld [vmem:[%s6038_s20 + $0x140] sm:$0xff]  ;;  %v4913_v9 = vcombine.high %v829_v3, %v833_v4  ;;  %v4910_v10 = vcombine.low %v828_v63, %v832_v0  ;;  %v837_v11 = vld [vmem:[%s6038_s20 + $0x148] sm:$0xff]  ;;  %v4912_v14 = vcombine.low %v829_v3, %v833_v4 }
  0xd9   : > { %3868 = vmatprep.subr.bf16.mxu0 %v4879_v37  ;;  %642 = vmatpush1.bf16.msra.mxu1 %v4872_v38  ;;  %v840_v8 = vld [vmem:[%s6038_s20 + $0x160] sm:$0xff]  ;;  %v841_v12 = vld [vmem:[%s6038_s20 + $0x168] sm:$0xff] }
  0xda   : > { %4032 = vmatprep.subr.bf16.mxu1 %v4881_v41  ;;  %v4919_v13 = vcombine.high %v836_v7, %v840_v8  ;;  %v844_v15 = vld [vmem:[%s6038_s20 + $0x180] sm:$0xff]  ;;  %v4921_v17 = vcombine.high %v837_v11, %v841_v12  ;;  %v4918_v18 = vcombine.low %v836_v7, %v840_v8  ;;  %v845_v19 = vld [vmem:[%s6038_s20 + $0x188] sm:$0xff]  ;;  %v4920_v22 = vcombine.low %v837_v11, %v841_v12 }
  0xdb   : > { %4876 = vmatmul.mubr.msk.bf16.vlgmr.msra.gmra.mrb[4].mxu0 %vm512_vm0, %v415_v25  ;;  %v848_v16 = vld [vmem:[%s6038_s20 + $0x1a0] sm:$0xff]  ;;  %v849_v20 = vld [vmem:[%s6038_s20 + $0x1a8] sm:$0xff] }
  0xdc   : > { %3869 = vmatpush1.bf16.msra.mxu0 %v4878_v42  ;;  %4877 = vmatmul.mubr.msk.bf16.vlgmr.msra.gmra.mrb[4].mxu1 %vm512_vm0, %v415_v25  ;;  %v4927_v21 = vcombine.high %v844_v15, %v848_v16  ;;  %v852_v23 = vld [vmem:[%s6038_s20 + $0x1c0] sm:$0xff]  ;;  %v4929_v25 = vcombine.high %v845_v19, %v849_v20  ;;  %v4926_v26 = vcombine.low %v844_v15, %v848_v16  ;;  %v853_v27 = vld [vmem:[%s6038_s20 + $0x1c8] sm:$0xff] }
  0xdd   : > { %3870 = vmatprep.subr.bf16.mxu0 %v4887_v45  ;;  %4033 = vmatpush1.bf16.msra.mxu1 %v4880_v46  ;;  %v856_v24 = vld [vmem:[%s6038_s20 + $0x1e0] sm:$0xff]  ;;  %v857_v28 = vld [vmem:[%s6038_s20 + $0x1e8] sm:$0xff]  ;;  %v4928_v30 = vcombine.low %v845_v19, %v849_v20 }
  0xde   : > { %4034 = vmatprep.subr.bf16.mxu1 %v4889_v49  ;;  %v4935_v29 = vcombine.high %v852_v23, %v856_v24  ;;  %v860_v31 = vld [vmem:[%s6038_s20 + $0x200] sm:$0xff]  ;;  %v4937_v33 = vcombine.high %v853_v27, %v857_v28  ;;  %v4934_v34 = vcombine.low %v852_v23, %v856_v24  ;;  %v861_v35 = vld [vmem:[%s6038_s20 + $0x208] sm:$0xff]  ;;  %v4936_v38 = vcombine.low %v853_v27, %v857_v28 }
  0xdf   : > { %v864_v32 = vld [vmem:[%s6038_s20 + $0x220] sm:$0xff]  ;;  %v865_v36 = vld [vmem:[%s6038_s20 + $0x228] sm:$0xff] }
  0xe0   : > { %3871 = vmatpush1.bf16.msra.mxu0 %v4886_v50  ;;  %v4943_v37 = vcombine.high %v860_v31, %v864_v32  ;;  %v868_v39 = vld [vmem:[%s6038_s20 + $0x240] sm:$0xff]  ;;  %v4945_v41 = vcombine.high %v861_v35, %v865_v36  ;;  %v4942_v42 = vcombine.low %v860_v31, %v864_v32  ;;  %v869_v43 = vld [vmem:[%s6038_s20 + $0x248] sm:$0xff]  ;;  %v4944_v46 = vcombine.low %v861_v35, %v865_v36 }
  0xe1   : > { %3872 = vmatprep.subr.bf16.mxu0 %v4895_v53  ;;  %4035 = vmatpush1.bf16.msra.mxu1 %v4888_v54  ;;  %v872_v40 = vld [vmem:[%s6038_s20 + $0x260] sm:$0xff]  ;;  %v873_v44 = vld [vmem:[%s6038_s20 + $0x268] sm:$0xff] }
  0xe2   : > { %4036 = vmatprep.subr.bf16.mxu1 %v4897_v57  ;;  %v4951_v45 = vcombine.high %v868_v39, %v872_v40  ;;  %v876_v47 = vld [vmem:[%s6038_s20 + $0x280] sm:$0xff]  ;;  %v4953_v49 = vcombine.high %v869_v43, %v873_v44  ;;  %v4950_v50 = vcombine.low %v868_v39, %v872_v40  ;;  %v877_v51 = vld [vmem:[%s6038_s20 + $0x288] sm:$0xff]  ;;  %v4952_v54 = vcombine.low %v869_v43, %v873_v44 }
  0xe3   : > { %v880_v48 = vld [vmem:[%s6038_s20 + $0x2a0] sm:$0xff]  ;;  %v881_v52 = vld [vmem:[%s6038_s20 + $0x2a8] sm:$0xff] }
  0xe4   : > { %3873 = vmatpush1.bf16.msra.mxu0 %v4894_v58  ;;  %v4959_v53 = vcombine.high %v876_v47, %v880_v48  ;;  %v884_v55 = vld [vmem:[%s6038_s20 + $0x2c0] sm:$0xff]  ;;  %v4961_v57 = vcombine.high %v877_v51, %v881_v52  ;;  %v4958_v58 = vcombine.low %v876_v47, %v880_v48  ;;  %v885_v59 = vld [vmem:[%s6038_s20 + $0x2c8] sm:$0xff]  ;;  %v6137_v47 = vld [vmem:[#allocation6] sm:$0xff] }
  0xe5   : > { %3874 = vmatprep.subr.bf16.mxu0 %v4903_v61  ;;  %4037 = vmatpush1.bf16.msra.mxu1 %v4896_v62  ;;  %v888_v56 = vld [vmem:[%s6038_s20 + $0x2e0] sm:$0xff]  ;;  %v889_v60 = vld [vmem:[%s6038_s20 + $0x2e8] sm:$0xff]  ;;  %v4960_v62 = vcombine.low %v877_v51, %v881_v52 }
  0xe6   : > { %4038 = vmatprep.subr.bf16.mxu1 %v4905_v1  ;;  %v4967_v61 = vcombine.high %v884_v55, %v888_v56  ;;  %v892_v63 = vld [vmem:[%s6038_s20 + $0x300] sm:$0xff]  ;;  %v4969_v1 = vcombine.high %v885_v59, %v889_v60  ;;  %v893_v3 = vld [vmem:[%s6038_s20 + $0x308] sm:$0xff] }
  0xe7   : > { %v896_v0 = vld [vmem:[%s6038_s20 + $0x320] sm:$0xff]  ;;  %v897_v4 = vld [vmem:[%s6038_s20 + $0x328] sm:$0xff] }
  0xe8   : > { %3875 = vmatpush1.bf16.msra.mxu0 %v4902_v2  ;;  %v4966_v2 = vcombine.low %v884_v55, %v888_v56  ;;  %v900_v7 = vld [vmem:[%s6038_s20 + $0x340] sm:$0xff]  ;;  %v901_v11 = vld [vmem:[%s6038_s20 + $0x348] sm:$0xff] }
  0xe9   : > { %3876 = vmatprep.subr.bf16.mxu0 %v4911_v5  ;;  %4039 = vmatpush1.bf16.msra.mxu1 %v4904_v6  ;;  %v4975_v5 = vcombine.high %v892_v63, %v896_v0  ;;  %v4968_v6 = vcombine.low %v885_v59, %v889_v60  ;;  %v904_v8 = vld [vmem:[%s6038_s20 + $0x360] sm:$0xff]  ;;  %v905_v12 = vld [vmem:[%s6038_s20 + $0x368] sm:$0xff] }
  0xea   : > { %4040 = vmatprep.subr.bf16.mxu1 %v4913_v9  ;;  %v4977_v9 = vcombine.high %v893_v3, %v897_v4  ;;  %v4985_v15 = vcombine.high %v901_v11, %v905_v12  ;;  %v4982_v16 = vcombine.low %v900_v7, %v904_v8  ;;  %v912_v19 = vld [vmem:[%s6038_s20 + $0x3a0] sm:$0xff]  ;;  %v909_v20 = vld [vmem:[%s6038_s20 + $0x388] sm:$0xff] }
  0xeb   : > { %v920_v27 = vld [vmem:[%s6038_s20 + $0x3e0] sm:$0xff]  ;;  %v917_v28 = vld [vmem:[%s6038_s20 + $0x3c8] sm:$0xff] }
  0xec   : > { %3877 = vmatpush1.bf16.msra.mxu0 %v4910_v10  ;;  %v4974_v10 = vcombine.low %v892_v63, %v896_v0  ;;  %v928_v35 = vld [vmem:[%s6038_s20 + $0x420] sm:$0xff]  ;;  %v925_v36 = vld [vmem:[%s6038_s20 + $0x408] sm:$0xff] }
  0xed   : > { %3878 = vmatprep.subr.bf16.mxu0 %v4919_v13  ;;  %4041 = vmatpush1.bf16.msra.mxu1 %v4912_v14  ;;  %v4983_v13 = vcombine.high %v900_v7, %v904_v8  ;;  %v4976_v14 = vcombine.low %v893_v3, %v897_v4  ;;  %v932_v4 = vld [vmem:[%s6038_s20 + $0x440] sm:$0xff]  ;;  %v933_v8 = vld [vmem:[%s6038_s20 + $0x448] sm:$0xff] }
  0xee   : > { %4042 = vmatprep.subr.bf16.mxu1 %v4921_v17  ;;  %v4984_v17 = vcombine.low %v901_v11, %v905_v12  ;;  %v936_v7 = vld [vmem:[%s6038_s20 + $0x460] sm:$0xff] }
  0xf0   : > { %3879 = vmatpush1.bf16.msra.mxu0 %v4918_v18  ;;  %v908_v18 = vld [vmem:[%s6038_s20 + $0x380] sm:$0xff] }
  0xf1   : > { %3880 = vmatprep.subr.bf16.mxu0 %v4927_v21  ;;  %4043 = vmatpush1.bf16.msra.mxu1 %v4920_v22  ;;  %v4991_v21 = vcombine.high %v908_v18, %v912_v19  ;;  %v913_v22 = vld [vmem:[%s6038_s20 + $0x3a8] sm:$0xff]  ;;  %v4990_v23 = vcombine.low %v908_v18, %v912_v19  ;;  %v944_v19 = vld [vmem:[%s6038_s20 + $0x4a0] sm:$0xff] }
  0xf2   : > { %4044 = vmatprep.subr.bf16.mxu1 %v4929_v25  ;;  %v4992_v24 = vcombine.low %v909_v20, %v913_v22  ;;  %v4993_v25 = vcombine.high %v909_v20, %v913_v22  ;;  %v941_v20 = vld [vmem:[%s6038_s20 + $0x488] sm:$0xff] }
  0xf4   : > { %3881 = vmatpush1.bf16.msra.mxu0 %v4926_v26  ;;  %v916_v26 = vld [vmem:[%s6038_s20 + $0x3c0] sm:$0xff] }
  0xf5   : > { %3882 = vmatprep.subr.bf16.mxu0 %v4935_v29  ;;  %4045 = vmatpush1.bf16.msra.mxu1 %v4928_v30  ;;  %v4999_v29 = vcombine.high %v916_v26, %v920_v27  ;;  %v921_v30 = vld [vmem:[%s6038_s20 + $0x3e8] sm:$0xff]  ;;  %v4998_v31 = vcombine.low %v916_v26, %v920_v27 }
  0xf6   : > { %4046 = vmatprep.subr.bf16.mxu1 %v4937_v33  ;;  %v5000_v32 = vcombine.low %v917_v28, %v921_v30  ;;  %v5001_v33 = vcombine.high %v917_v28, %v921_v30  ;;  %v952_v30 = vld [vmem:[%s6038_s20 + $0x4e0] sm:$0xff] }
  0xf8   : > { %3883 = vmatpush1.bf16.msra.mxu0 %v4934_v34  ;;  %v924_v34 = vld [vmem:[%s6038_s20 + $0x400] sm:$0xff] }
  0xf9   : > { %3884 = vmatprep.subr.bf16.mxu0 %v4943_v37  ;;  %4047 = vmatpush1.bf16.msra.mxu1 %v4936_v38  ;;  %v5007_v37 = vcombine.high %v924_v34, %v928_v35  ;;  %v929_v38 = vld [vmem:[%s6038_s20 + $0x428] sm:$0xff]  ;;  %v5006_v39 = vcombine.low %v924_v34, %v928_v35 }
  0xfa   : > { %4048 = vmatprep.subr.bf16.mxu1 %v4945_v41  ;;  %v5008_v40 = vcombine.low %v925_v36, %v929_v38  ;;  %v5009_v41 = vcombine.high %v925_v36, %v929_v38  ;;  %v960_v38 = vld [vmem:[%s6038_s20 + $0x520] sm:$0xff] }
  0xfc   : > { %3885 = vmatpush1.bf16.msra.mxu0 %v4942_v42  ;;  %v682_v42 = vlaneseq }
  0xfd   : > { %3886 = vmatprep.subr.bf16.mxu0 %v4951_v45  ;;  %4049 = vmatpush1.bf16.msra.mxu1 %v4944_v46  ;;  %v6132_v45 = vld [vmem:[#allocation4] sm:$0xff] }
  0xfe   : > { %4050 = vmatprep.subr.bf16.mxu1 %v4953_v49  ;;  %v6127_v43 = vshrl.u32 %v682_v42, 7 }
 0x100   : > { %3887 = vmatpush1.bf16.msra.mxu0 %v4950_v50  ;;  %v6130_v44 = vsub.s32 0, %v6127_v43  ;;  %v6135_v46 = vsub.s32 1, %v6127_v43  ;;  %v6140_v48 = vsub.s32 3, %v6127_v43 }
 0x101   : > { %3888 = vmatprep.subr.bf16.mxu0 %v4959_v53  ;;  %4051 = vmatpush1.bf16.msra.mxu1 %v4952_v54 }
 0x102   : > { %4052 = vmatprep.subr.bf16.mxu1 %v4961_v57  ;;  %v685_v49 = vrot.slane %v6132_v45, %v6130_v44  ;;  %v689_v50 = vrot.slane %v6132_v45, %v6135_v46  ;;  %v735_v51 = vrot.slane %v6137_v47, %v6130_v44  ;;  %v739_v53 = vrot.slane %v6137_v47, %v6135_v46 }
 0x103   : > { %v697_v54 = vrot.slane %v6132_v45, %v6140_v48  ;;  %v747_v60 = vrot.slane %v6137_v47, %v6140_v48 }
 0x104   : > { %3889 = vmatpush1.bf16.msra.mxu0 %v4958_v58 }
 0x105   : > { %3890 = vmatprep.subr.bf16.mxu0 %v4967_v61  ;;  %4053 = vmatpush1.bf16.msra.mxu1 %v4960_v62 }
 0x106   : > { %4054 = vmatprep.subr.bf16.mxu1 %v4969_v1 }
 0x108   : > { %3891 = vmatpush1.bf16.msra.mxu0 %v4966_v2 }
 0x109   : > { %3892 = vmatprep.subr.bf16.mxu0 %v4975_v5  ;;  %4055 = vmatpush1.bf16.msra.mxu1 %v4968_v6 }
 0x10a   : > { %4056 = vmatprep.subr.bf16.mxu1 %v4977_v9  ;;  %v937_v9 = vld [vmem:[%s6038_s20 + $0x468] sm:$0xff] }
 0x10b   : > { %v5016_v26 = vcombine.low %v933_v8, %v937_v9 }
 0x10c   : > { %3893 = vmatpush1.bf16.msra.mxu0 %v4974_v10 }
 0x10d   : > { %3894 = vmatprep.subr.bf16.mxu0 %v4983_v13  ;;  %4057 = vmatpush1.bf16.msra.mxu1 %v4976_v14 }
 0x10e   : > { %4058 = vmatprep.subr.bf16.mxu1 %v4985_v15  ;;  %v5015_v15 = vcombine.high %v932_v4, %v936_v7 }
 0x110   : > { %3895 = vmatpush1.bf16.msra.mxu0 %v4982_v16  ;;  %v5017_v16 = vcombine.high %v933_v8, %v937_v9  ;;  %v984_v8 = vld [vmem:[%s6038_s20 + $0x5e0] sm:$0xff]  ;;  %v981_v9 = vld [vmem:[%s6038_s20 + $0x5c8] sm:$0xff] }
 0x111   : > { %4059 = vmatpush1.bf16.msra.mxu1 %v4984_v17  ;;  %3896 = vmatprep.subr.bf16.mxu0 %v4991_v21  ;;  %v940_v17 = vld [vmem:[%s6038_s20 + $0x480] sm:$0xff]  ;;  %v945_v21 = vld [vmem:[%s6038_s20 + $0x4a8] sm:$0xff] }
 0x112   : > { %4060 = vmatprep.subr.bf16.mxu1 %v4993_v25  ;;  %v5014_v25 = vcombine.low %v932_v4, %v936_v7  ;;  %v5023_v27 = vcombine.high %v940_v17, %v944_v19  ;;  %v5025_v28 = vcombine.high %v941_v20, %v945_v21  ;;  %v5024_v34 = vcombine.low %v941_v20, %v945_v21  ;;  %v988_v20 = vld [vmem:[%s6038_s20 + $0x600] sm:$0xff] }
 0x113   : > { %v992_v21 = vld [vmem:[%s6038_s20 + $0x620] sm:$0xff] }
 0x114   : > { %3897 = vmatpush1.bf16.msra.mxu0 %v4990_v23 }
 0x115   : > { %4061 = vmatpush1.bf16.msra.mxu1 %v4992_v24  ;;  %3898 = vmatprep.subr.bf16.mxu0 %v4999_v29  ;;  %v948_v29 = vld [vmem:[%s6038_s20 + $0x4c0] sm:$0xff] }
 0x116   : > { %4062 = vmatprep.subr.bf16.mxu1 %v5001_v33  ;;  %v5022_v33 = vcombine.low %v940_v17, %v944_v19  ;;  %v5031_v35 = vcombine.high %v948_v29, %v952_v30 }
 0x118   : > { %3899 = vmatpush1.bf16.msra.mxu0 %v4998_v31  ;;  %v949_v31 = vld [vmem:[%s6038_s20 + $0x4c8] sm:$0xff] }
 0x119   : > { %4063 = vmatpush1.bf16.msra.mxu1 %v5000_v32  ;;  %3909 = vmatprep.subr.bf16.mxu0 %v5007_v37  ;;  %v953_v32 = vld [vmem:[%s6038_s20 + $0x4e8] sm:$0xff]  ;;  %v956_v37 = vld [vmem:[%s6038_s20 + $0x500] sm:$0xff] }
 0x11a   : > { %4073 = vmatprep.subr.bf16.mxu1 %v5009_v41  ;;  %v5033_v36 = vcombine.high %v949_v31, %v953_v32  ;;  %v5030_v41 = vcombine.low %v948_v29, %v952_v30  ;;  %v5032_v42 = vcombine.low %v949_v31, %v953_v32  ;;  %v996_v29 = vld [vmem:[%s6038_s20 + $0x640] sm:$0xff]  ;;  %v997_v31 = vld [vmem:[%s6038_s20 + $0x648] sm:$0xff] }
 0x11b   : > { %v1000_v30 = vld [vmem:[%s6038_s20 + $0x660] sm:$0xff]  ;;  %v1001_v32 = vld [vmem:[%s6038_s20 + $0x668] sm:$0xff] }
 0x1a6   : > { %v550_v52 = vpop.f32.mrb[0].mxu0  ;;  %v6152_v59 = vpop.f32.mrb[0].mxu1 }
 0x1a7   : > { %v722_v55 = vmul.f32 %v685_v49, %v550_v52  ;;  %v552_v56 = vpop.f32.mrb[1].mxu0  ;;  %v593_v63 = vpop.f32.mrb[1].mxu1  ;;  %v5039_v49 = vcombine.high %v956_v37, %v960_v38  ;;  %v968_v52 = vld [vmem:[%s6038_s20 + $0x560] sm:$0xff] }
 0x1a8   : > { %v723_v57 = vmul.f32 %v689_v50, %v552_v56  ;;  %v554_v58 = vpop.f32.mrb[2].mxu0  ;;  %v725_v1 = vmul.f32 %v697_v54, %v593_v63  ;;  %v595_v2 = vpop.f32.mrb[2].mxu1  ;;  %v969_v54 = vld [vmem:[%s6038_s20 + $0x568] sm:$0xff] }
 0x1a9   : > { %v772_v61 = vadd.f32 %v735_v51, %v722_v55  ;;  %v555_v62 = vpop.f32.mrb[3].mxu0  ;;  %v596_v5 = vpop.f32.mrb[3].mxu1  ;;  %v964_v51 = vld [vmem:[%s6038_s20 + $0x540] sm:$0xff]  ;;  %v5038_v55 = vcombine.low %v956_v37, %v960_v38  ;;  %v973_v63 = vld [vmem:[%s6038_s20 + $0x588] sm:$0xff] }
 0x1aa   : > { %v773_v0 = vadd.f32 %v739_v53, %v723_v57  ;;  %v775_v10 = vadd.f32 %v747_v60, %v725_v1  ;;  %v965_v53 = vld [vmem:[%s6038_s20 + $0x548] sm:$0xff]  ;;  %v5047_v57 = vcombine.high %v964_v51, %v968_v52  ;;  %v972_v60 = vld [vmem:[%s6038_s20 + $0x580] sm:$0xff]  ;;  %v5046_v1 = vcombine.low %v964_v51, %v968_v52 }
 0x1ab   : > { %v780_v3 = vmax.f32 %v772_v61, 0.0  ;;  %v5049_v58 = vcombine.high %v965_v53, %v969_v54  ;;  %v976_v62 = vld [vmem:[%s6038_s20 + $0x5a0] sm:$0xff]  ;;  %v5048_v2 = vcombine.low %v965_v53, %v969_v54  ;;  %v1013_v53 = vld [vmem:[%s6038_s20 + $0x6c8] sm:$0xff] }
 0x1ac   : > { %v781_v6 = vmax.f32 %v773_v0, 0.0  ;;  %v783_v12 = vmax.f32 %v775_v10, 0.0  ;;  %v977_v0 = vld [vmem:[%s6038_s20 + $0x5a8] sm:$0xff]  ;;  %v5055_v4 = vcombine.high %v972_v60, %v976_v62  ;;  %v1004_v37 = vld [vmem:[%s6038_s20 + $0x680] sm:$0xff] }
 0x1ad   : > { %v6164_v14 = vpack.c.bf16 %v780_v3, %v780_v3  ;;  %v5057_v5 = vcombine.high %v973_v63, %v977_v0  ;;  %v985_v10 = vld [vmem:[%s6038_s20 + $0x5e8] sm:$0xff]  ;;  %v1008_v38 = vld [vmem:[%s6038_s20 + $0x6a0] sm:$0xff] }
 0x1ae   : > { %v6160_v11 = vpack.c.bf16 %v781_v6, %v781_v6  ;;  %v6162_v13 = vpop.f32.mrb[4].mxu0  ;;  %v6174_v22 = vpack.c.bf16 %v783_v12, %v783_v12  ;;  %v980_v6 = vld [vmem:[%s6038_s20 + $0x5c0] sm:$0xff]  ;;  %v5065_v19 = vcombine.high %v981_v9, %v985_v10  ;;  %v1017_v54 = vld [vmem:[%s6038_s20 + $0x6e8] sm:$0xff] }
 0x1af   : > { %v6167_v18 = vpop.f32.mrb[5].mxu0  ;;  %v6193_v61 = vpop.f32.mrb[4].mxu1  ;;  %v5063_v17 = vcombine.high %v980_v6, %v984_v8  ;;  %v1012_v51 = vld [vmem:[%s6038_s20 + $0x6c0] sm:$0xff] }
 0x1b0   : > { %3900 = vmatprep.mubr.bf16.mxu0 %v6160_v11  ;;  %4064 = vmatprep.mubr.bf16.mxu1 %v6160_v11  ;;  %v636_v23 = vpop.f32.mrb[6].mxu0  ;;  %v6198_v3 = vpop.f32.mrb[5].mxu1  ;;  %v1016_v52 = vld [vmem:[%s6038_s20 + $0x6e0] sm:$0xff] }
 0x1b1   : > { %3901 = vmatmul.mubr.bf16.vlgmr.msra.gmra.mrb[8].mxu0 %v6164_v14  ;;  %4065 = vmatmul.mubr.bf16.vlgmr.msra.gmra.mrb[8].mxu1 %v6164_v14  ;;  %v637_v24 = vpop.f32.mrb[7].mxu0  ;;  %v677_v7 = vpop.f32.mrb[6].mxu1  ;;  %v989_v23 = vld [vmem:[%s6038_s20 + $0x608] sm:$0xff] }
 0x1b2   : > { %3910 = vmatpush1.bf16.msra.mxu0 %v5006_v39  ;;  %4074 = vmatpush1.bf16.msra.mxu1 %v5008_v40  ;;  %v957_v39 = vld [vmem:[%s6038_s20 + $0x508] sm:$0xff]  ;;  %v678_v12 = vpop.f32.mrb[7].mxu1  ;;  %v1028_v7 = vld [vmem:[%s6038_s20 + $0x740] sm:$0xff] }
 0x1b3   : > { %3911 = vmatprep.subr.bf16.mxu0 %v5015_v15  ;;  %4075 = vmatprep.subr.bf16.mxu1 %v5017_v16  ;;  %v961_v40 = vld [vmem:[%s6038_s20 + $0x528] sm:$0xff]  ;;  %v5054_v15 = vcombine.low %v972_v60, %v976_v62  ;;  %v5056_v16 = vcombine.low %v973_v63, %v977_v0  ;;  %v1020_v60 = vld [vmem:[%s6038_s20 + $0x700] sm:$0xff]  ;;  %v6232_v12 = vsub.s32 5, %v6127_v43 }
 0x1b4   : > { %3941 = vmatprep.mubr.bf16.mxu0 %v6174_v22  ;;  %4105 = vmatprep.mubr.bf16.mxu1 %v6174_v22  ;;  %v5041_v50 = vcombine.high %v957_v39, %v961_v40  ;;  %v5040_v56 = vcombine.low %v957_v39, %v961_v40  ;;  %v993_v24 = vld [vmem:[%s6038_s20 + $0x628] sm:$0xff]  ;;  %v1024_v62 = vld [vmem:[%s6038_s20 + $0x720] sm:$0xff] }
 0x1b5   : > { %v1005_v39 = vld [vmem:[%s6038_s20 + $0x688] sm:$0xff] }
 0x1b6   : > { %3912 = vmatpush1.bf16.msra.mxu0 %v5014_v25  ;;  %4076 = vmatpush1.bf16.msra.mxu1 %v5016_v26  ;;  %v5062_v25 = vcombine.low %v980_v6, %v984_v8  ;;  %v5064_v26 = vcombine.low %v981_v9, %v985_v10  ;;  %v1009_v40 = vld [vmem:[%s6038_s20 + $0x6a8] sm:$0xff]  ;;  %v1032_v8 = vld [vmem:[%s6038_s20 + $0x760] sm:$0xff] }
 0x1b7   : > { %3913 = vmatprep.subr.bf16.mxu0 %v5023_v27  ;;  %4077 = vmatprep.subr.bf16.mxu1 %v5025_v28  ;;  %v5071_v27 = vcombine.high %v988_v20, %v992_v21  ;;  %v5073_v28 = vcombine.high %v989_v23, %v993_v24  ;;  %v1021_v63 = vld [vmem:[%s6038_s20 + $0x708] sm:$0xff] }
 0x1b8   : > { %v1025_v0 = vld [vmem:[%s6038_s20 + $0x728] sm:$0xff] }
 0x1b9   : > { %v5105_v6 = vcombine.high %v1021_v63, %v1025_v0  ;;  %v1029_v9 = vld [vmem:[%s6038_s20 + $0x748] sm:$0xff] }
 0x1ba   : > { %3914 = vmatpush1.bf16.msra.mxu0 %v5022_v33  ;;  %4078 = vmatpush1.bf16.msra.mxu1 %v5024_v34  ;;  %v5070_v33 = vcombine.low %v988_v20, %v992_v21  ;;  %v5072_v34 = vcombine.low %v989_v23, %v993_v24  ;;  %v1033_v10 = vld [vmem:[%s6038_s20 + $0x768] sm:$0xff]  ;;  %v1036_v21 = vld [vmem:[%s6038_s20 + $0x780] sm:$0xff] }
 0x1bb   : > { %3915 = vmatprep.subr.bf16.mxu0 %v5031_v35  ;;  %4079 = vmatprep.subr.bf16.mxu1 %v5033_v36  ;;  %v5079_v35 = vcombine.high %v996_v29, %v1000_v30  ;;  %v5081_v36 = vcombine.high %v997_v31, %v1001_v32  ;;  %v5113_v20 = vcombine.high %v1029_v9, %v1033_v10  ;;  %v1040_v23 = vld [vmem:[%s6038_s20 + $0x7a0] sm:$0xff]  ;;  %v1037_v24 = vld [vmem:[%s6038_s20 + $0x788] sm:$0xff] }
 0x1be   : > { %3916 = vmatpush1.bf16.msra.mxu0 %v5030_v41  ;;  %4080 = vmatpush1.bf16.msra.mxu1 %v5032_v42  ;;  %v5078_v41 = vcombine.low %v996_v29, %v1000_v30  ;;  %v5080_v42 = vcombine.low %v997_v31, %v1001_v32  ;;  %v5110_v29 = vcombine.low %v1028_v7, %v1032_v8 }
 0x1bf   : > { %3917 = vmatprep.subr.bf16.mxu0 %v5039_v49  ;;  %4081 = vmatprep.subr.bf16.mxu1 %v5041_v50  ;;  %v5087_v49 = vcombine.high %v1004_v37, %v1008_v38  ;;  %v5089_v50 = vcombine.high %v1005_v39, %v1009_v40  ;;  %v5112_v30 = vcombine.low %v1029_v9, %v1033_v10  ;;  %v1072_v9 = vld [vmem:[%s6038_s20 + $0x8a0] sm:$0xff]  ;;  %v1069_v10 = vld [vmem:[%s6038_s20 + $0x888] sm:$0xff] }
 0x1c0   : > { %v5119_v31 = vcombine.high %v1036_v21, %v1040_v23 }
 0x1c2   : > { %3918 = vmatpush1.bf16.msra.mxu0 %v5038_v55  ;;  %4082 = vmatpush1.bf16.msra.mxu1 %v5040_v56  ;;  %v5086_v55 = vcombine.low %v1004_v37, %v1008_v38  ;;  %v5088_v56 = vcombine.low %v1005_v39, %v1009_v40  ;;  %v755_v37 = vrot.slane %v6137_v47, %v6232_v12 }
 0x1c3   : > { %3919 = vmatprep.subr.bf16.mxu0 %v5047_v57  ;;  %4083 = vmatprep.subr.bf16.mxu1 %v5049_v58  ;;  %v5095_v57 = vcombine.high %v1012_v51, %v1016_v52  ;;  %v5097_v58 = vcombine.high %v1013_v53, %v1017_v54  ;;  %v5118_v39 = vcombine.low %v1036_v21, %v1040_v23  ;;  %v1076_v23 = vld [vmem:[%s6038_s20 + $0x8c0] sm:$0xff] }
 0x1c6   : > { %3920 = vmatpush1.bf16.msra.mxu0 %v5046_v1  ;;  %4084 = vmatpush1.bf16.msra.mxu1 %v5048_v2  ;;  %v6225_v1 = vsub.s32 2, %v6127_v43  ;;  %v5094_v2 = vcombine.low %v1012_v51, %v1016_v52  ;;  %v1053_v51 = vld [vmem:[%s6038_s20 + $0x808] sm:$0xff] }
 0x1c7   : > { %3921 = vmatprep.subr.bf16.mxu0 %v5055_v4  ;;  %4085 = vmatprep.subr.bf16.mxu1 %v5057_v5  ;;  %v5096_v4 = vcombine.low %v1013_v53, %v1017_v54  ;;  %v5103_v5 = vcombine.high %v1020_v60, %v1024_v62 }
 0x1ca   : > { %3922 = vmatpush1.bf16.msra.mxu0 %v5054_v15  ;;  %4086 = vmatpush1.bf16.msra.mxu1 %v5056_v16  ;;  %v693_v15 = vrot.slane %v6132_v45, %v6225_v1  ;;  %v5102_v16 = vcombine.low %v1020_v60, %v1024_v62  ;;  %v1064_v60 = vld [vmem:[%s6038_s20 + $0x860] sm:$0xff]  ;;  %v1061_v62 = vld [vmem:[%s6038_s20 + $0x848] sm:$0xff] }
 0x1cb   : > { %3923 = vmatprep.subr.bf16.mxu0 %v5063_v17  ;;  %4087 = vmatprep.subr.bf16.mxu1 %v5065_v19  ;;  %v5104_v17 = vcombine.low %v1021_v63, %v1025_v0  ;;  %v5111_v19 = vcombine.high %v1028_v7, %v1032_v8  ;;  %v1065_v63 = vld [vmem:[%s6038_s20 + $0x868] sm:$0xff]  ;;  %v1068_v8 = vld [vmem:[%s6038_s20 + $0x880] sm:$0xff] }
 0x1cc   : > { %v5145_v7 = vcombine.high %v1061_v62, %v1065_v63 }
 0x1ce   : > { %3924 = vmatpush1.bf16.msra.mxu0 %v5062_v25  ;;  %4088 = vmatpush1.bf16.msra.mxu1 %v5064_v26  ;;  %v1041_v25 = vld [vmem:[%s6038_s20 + $0x7a8] sm:$0xff]  ;;  %v705_v26 = vrot.slane %v6132_v45, %v6232_v12 }
 0x1cf   : > { %3925 = vmatprep.subr.bf16.mxu0 %v5071_v27  ;;  %4089 = vmatprep.subr.bf16.mxu1 %v5073_v28  ;;  %v724_v27 = vmul.f32 %v693_v15, %v6152_v59  ;;  %v743_v28 = vrot.slane %v6137_v47, %v6225_v1  ;;  %v5121_v32 = vcombine.high %v1037_v24, %v1041_v25  ;;  %v1073_v15 = vld [vmem:[%s6038_s20 + $0x8a8] sm:$0xff] }
 0x1d0   : > { %v727_v59 = vmul.f32 %v705_v26, %v6167_v18  ;;  %v5120_v40 = vcombine.low %v1037_v24, %v1041_v25  ;;  %v1057_v18 = vld [vmem:[%s6038_s20 + $0x828] sm:$0xff]  ;;  %v5153_v21 = vcombine.high %v1069_v10, %v1073_v15  ;;  %v1080_v24 = vld [vmem:[%s6038_s20 + $0x8e0] sm:$0xff] }
 0x1d1   : > { %v774_v38 = vadd.f32 %v743_v28, %v724_v27  ;;  %v1077_v25 = vld [vmem:[%s6038_s20 + $0x8c8] sm:$0xff]  ;;  %v5150_v27 = vcombine.low %v1068_v8, %v1072_v9  ;;  %v5152_v28 = vcombine.low %v1069_v10, %v1073_v15 }
 0x1d2   : > { %3926 = vmatpush1.bf16.msra.mxu0 %v5070_v33  ;;  %4090 = vmatpush1.bf16.msra.mxu1 %v5072_v34  ;;  %v1044_v33 = vld [vmem:[%s6038_s20 + $0x7c0] sm:$0xff]  ;;  %v777_v52 = vadd.f32 %v755_v37, %v727_v59  ;;  %v1081_v26 = vld [vmem:[%s6038_s20 + $0x8e8] sm:$0xff] }
 0x1d3   : > { %3927 = vmatprep.subr.bf16.mxu0 %v5079_v35  ;;  %4091 = vmatprep.subr.bf16.mxu1 %v5081_v36  ;;  %v1048_v34 = vld [vmem:[%s6038_s20 + $0x7e0] sm:$0xff]  ;;  %v1045_v35 = vld [vmem:[%s6038_s20 + $0x7c8] sm:$0xff]  ;;  %v782_v53 = vmax.f32 %v774_v38, 0.0 }
 0x1d4   : > { %v1049_v36 = vld [vmem:[%s6038_s20 + $0x7e8] sm:$0xff]  ;;  %v5126_v54 = vcombine.low %v1044_v33, %v1048_v34  ;;  %v785_v0 = vmax.f32 %v777_v52, 0.0  ;;  %v1092_v38 = vld [vmem:[%s6038_s20 + $0x940] sm:$0xff] }
 0x1d5   : > { %v1104_v52 = vld [vmem:[%s6038_s20 + $0x9a0] sm:$0xff]  ;;  %v1117_v10 = vld [vmem:[%s6038_s20 + $0xa08] sm:$0xff] }
 0x1d6   : > { %3928 = vmatpush1.bf16.msra.mxu0 %v5078_v41  ;;  %4092 = vmatpush1.bf16.msra.mxu1 %v5080_v42  ;;  %v5127_v41 = vcombine.high %v1044_v33, %v1048_v34  ;;  %v5129_v42 = vcombine.high %v1045_v35, %v1049_v36  ;;  %v1085_v33 = vld [vmem:[%s6038_s20 + $0x908] sm:$0xff] }
 0x1d7   : > { %3929 = vmatprep.subr.bf16.mxu0 %v5087_v49  ;;  %4093 = vmatprep.subr.bf16.mxu1 %v5089_v50  ;;  %v1052_v49 = vld [vmem:[%s6038_s20 + $0x800] sm:$0xff]  ;;  %v1089_v34 = vld [vmem:[%s6038_s20 + $0x928] sm:$0xff] }
 0x1d8   : > { %v1056_v50 = vld [vmem:[%s6038_s20 + $0x820] sm:$0xff]  ;;  %v5169_v37 = vcombine.high %v1085_v33, %v1089_v34  ;;  %v1121_v15 = vld [vmem:[%s6038_s20 + $0xa28] sm:$0xff] }
 0x1da   : > { %3930 = vmatpush1.bf16.msra.mxu0 %v5086_v55  ;;  %4094 = vmatpush1.bf16.msra.mxu1 %v5088_v56  ;;  %v5128_v55 = vcombine.low %v1045_v35, %v1049_v36  ;;  %v5135_v56 = vcombine.high %v1052_v49, %v1056_v50  ;;  %v5158_v35 = vcombine.low %v1076_v23, %v1080_v24 }
 0x1db   : > { %3931 = vmatprep.subr.bf16.mxu0 %v5095_v57  ;;  %4095 = vmatprep.subr.bf16.mxu1 %v5097_v58  ;;  %v5137_v57 = vcombine.high %v1053_v51, %v1057_v18  ;;  %v1060_v58 = vld [vmem:[%s6038_s20 + $0x840] sm:$0xff]  ;;  %v5160_v36 = vcombine.low %v1077_v25, %v1081_v26 }
 0x1de   : > { %3932 = vmatpush1.bf16.msra.mxu0 %v5094_v2  ;;  %4096 = vmatpush1.bf16.msra.mxu1 %v5096_v4  ;;  %v6260_v2 = vpack.c.bf16 %v782_v53, %v782_v53  ;;  %v5134_v4 = vcombine.low %v1052_v49, %v1056_v50  ;;  %v5168_v49 = vcombine.low %v1085_v33, %v1089_v34  ;;  %v1101_v53 = vld [vmem:[%s6038_s20 + $0x988] sm:$0xff] }
 0x1df   : > { %3933 = vmatprep.subr.bf16.mxu0 %v5103_v5  ;;  %4097 = vmatprep.subr.bf16.mxu1 %v5105_v6  ;;  %v5136_v5 = vcombine.low %v1053_v51, %v1057_v18  ;;  %v5143_v6 = vcombine.high %v1060_v58, %v1064_v60  ;;  %v1100_v18 = vld [vmem:[%s6038_s20 + $0x980] sm:$0xff]  ;;  %v1133_v33 = vld [vmem:[%s6038_s20 + $0xa88] sm:$0xff] }
 0x1e0   : > { %v1137_v34 = vld [vmem:[%s6038_s20 + $0xaa8] sm:$0xff] }
 0x1e2   : > { %3934 = vmatpush1.bf16.msra.mxu0 %v5102_v16  ;;  %4098 = vmatpush1.bf16.msra.mxu1 %v5104_v17  ;;  %v6266_v16 = vpack.c.bf16 %v785_v0, %v785_v0  ;;  %v5142_v17 = vcombine.low %v1060_v58, %v1064_v60  ;;  %v1108_v60 = vld [vmem:[%s6038_s20 + $0x9c0] sm:$0xff]  ;;  %v1113_v0 = vld [vmem:[%s6038_s20 + $0x9e8] sm:$0xff] }
 0x1e3   : > { %3935 = vmatprep.subr.bf16.mxu0 %v5111_v19  ;;  %4099 = vmatprep.subr.bf16.mxu1 %v5113_v20  ;;  %v5144_v19 = vcombine.low %v1061_v62, %v1065_v63  ;;  %v5151_v20 = vcombine.high %v1068_v8, %v1072_v9  ;;  %v1112_v62 = vld [vmem:[%s6038_s20 + $0x9e0] sm:$0xff]  ;;  %v1109_v63 = vld [vmem:[%s6038_s20 + $0x9c8] sm:$0xff] }
 0x1e4   : > { %v1116_v8 = vld [vmem:[%s6038_s20 + $0xa00] sm:$0xff] }
 0x1e5   : > { %v1120_v9 = vld [vmem:[%s6038_s20 + $0xa20] sm:$0xff] }
 0x1e6   : > { %3936 = vmatpush1.bf16.msra.mxu0 %v5110_v29  ;;  %4100 = vmatpush1.bf16.msra.mxu1 %v5112_v30  ;;  %v5159_v29 = vcombine.high %v1076_v23, %v1080_v24  ;;  %v5161_v30 = vcombine.high %v1077_v25, %v1081_v26  ;;  %v1124_v23 = vld [vmem:[%s6038_s20 + $0xa40] sm:$0xff]  ;;  %v1125_v25 = vld [vmem:[%s6038_s20 + $0xa48] sm:$0xff] }
 0x1e7   : > { %3937 = vmatprep.subr.bf16.mxu0 %v5119_v31  ;;  %4101 = vmatprep.subr.bf16.mxu1 %v5121_v32  ;;  %v1084_v31 = vld [vmem:[%s6038_s20 + $0x900] sm:$0xff]  ;;  %v1129_v26 = vld [vmem:[%s6038_s20 + $0xa68] sm:$0xff] }
 0x1e8   : > { %v1088_v32 = vld [vmem:[%s6038_s20 + $0x920] sm:$0xff] }
 0x1e9   : > { %v5167_v59 = vcombine.high %v1084_v31, %v1088_v32  ;;  %v1128_v24 = vld [vmem:[%s6038_s20 + $0xa60] sm:$0xff] }
 0x1ea   : > { %3938 = vmatpush1.bf16.msra.mxu0 %v5118_v39  ;;  %4102 = vmatpush1.bf16.msra.mxu1 %v5120_v40  ;;  %v1096_v39 = vld [vmem:[%s6038_s20 + $0x960] sm:$0xff]  ;;  %v1093_v40 = vld [vmem:[%s6038_s20 + $0x948] sm:$0xff] }
 0x1eb   : > { %3939 = vmatprep.subr.bf16.mxu0 %v5127_v41  ;;  %4103 = vmatprep.subr.bf16.mxu1 %v5129_v42  ;;  %v1097_v41 = vld [vmem:[%s6038_s20 + $0x968] sm:$0xff]  ;;  %v5166_v42 = vcombine.low %v1084_v31, %v1088_v32  ;;  %v5175_v50 = vcombine.high %v1092_v38, %v1096_v39  ;;  %v1132_v31 = vld [vmem:[%s6038_s20 + $0xa80] sm:$0xff] }
 0x1ec   : > { %v5177_v51 = vcombine.high %v1093_v40, %v1097_v41  ;;  %v1136_v32 = vld [vmem:[%s6038_s20 + $0xaa0] sm:$0xff] }
 0x1ee   : > { %3940 = vmatpush1.bf16.msra.mxu0 %v5126_v54  ;;  %4104 = vmatpush1.bf16.msra.mxu1 %v5128_v55  ;;  %v1105_v54 = vld [vmem:[%s6038_s20 + $0x9a8] sm:$0xff]  ;;  %v5174_v55 = vcombine.low %v1092_v38, %v1096_v39  ;;  %v1140_v38 = vld [vmem:[%s6038_s20 + $0xac0] sm:$0xff] }
 0x1ef   : > { %3950 = vmatprep.subr.bf16.mxu0 %v5135_v56  ;;  %4114 = vmatprep.subr.bf16.mxu1 %v5137_v57  ;;  %v5176_v56 = vcombine.low %v1093_v40, %v1097_v41  ;;  %v5183_v57 = vcombine.high %v1100_v18, %v1104_v52  ;;  %v5185_v58 = vcombine.high %v1101_v53, %v1105_v54  ;;  %v1144_v39 = vld [vmem:[%s6038_s20 + $0xae0] sm:$0xff]  ;;  %v1141_v40 = vld [vmem:[%s6038_s20 + $0xac8] sm:$0xff] }
 0x1f0   : > { %v1145_v41 = vld [vmem:[%s6038_s20 + $0xae8] sm:$0xff] }
 0x1f1   : > { %3942 = vmatmul.mubr.bf16.vlgmr.msra.gmra.mrb[8].mxu0 %v6260_v2  ;;  %4106 = vmatmul.mubr.bf16.vlgmr.msra.gmra.mrb[8].mxu1 %v6260_v2 }
 0x1f2   : > { %3951 = vmatpush1.bf16.msra.mxu0 %v5134_v4  ;;  %4115 = vmatpush1.bf16.msra.mxu1 %v5136_v5  ;;  %v5182_v4 = vcombine.low %v1100_v18, %v1104_v52  ;;  %v5184_v5 = vcombine.low %v1101_v53, %v1105_v54  ;;  %v1148_v18 = vld [vmem:[%s6038_s20 + $0xb00] sm:$0xff]  ;;  %v1149_v53 = vld [vmem:[%s6038_s20 + $0xb08] sm:$0xff] }
 0x1f3   : > { %3952 = vmatprep.subr.bf16.mxu0 %v5143_v6  ;;  %4116 = vmatprep.subr.bf16.mxu1 %v5145_v7  ;;  %v5191_v6 = vcombine.high %v1108_v60, %v1112_v62  ;;  %v5193_v7 = vcombine.high %v1109_v63, %v1113_v0  ;;  %v1152_v52 = vld [vmem:[%s6038_s20 + $0xb20] sm:$0xff]  ;;  %v1153_v54 = vld [vmem:[%s6038_s20 + $0xb28] sm:$0xff] }
 0x1f4   : > { %3982 = vmatprep.mubr.bf16.mxu0 %v6266_v16  ;;  %4146 = vmatprep.mubr.bf16.mxu1 %v6266_v16 }
 0x1f6   : > { %3953 = vmatpush1.bf16.msra.mxu0 %v5142_v17  ;;  %4117 = vmatpush1.bf16.msra.mxu1 %v5144_v19  ;;  %v5190_v17 = vcombine.low %v1108_v60, %v1112_v62  ;;  %v5192_v19 = vcombine.low %v1109_v63, %v1113_v0  ;;  %v5233_v60 = vcombine.high %v1149_v53, %v1153_v54  ;;  %v1156_v62 = vld [vmem:[%s6038_s20 + $0xb40] sm:$0xff]  ;;  %v1157_v0 = vld [vmem:[%s6038_s20 + $0xb48] sm:$0xff] }
 0x1f7   : > { %3954 = vmatprep.subr.bf16.mxu0 %v5151_v20  ;;  %4118 = vmatprep.subr.bf16.mxu1 %v5153_v21  ;;  %v5199_v20 = vcombine.high %v1116_v8, %v1120_v9  ;;  %v5201_v21 = vcombine.high %v1117_v10, %v1121_v15  ;;  %v1160_v63 = vld [vmem:[%s6038_s20 + $0xb60] sm:$0xff] }
 0x1fa   : > { %3955 = vmatpush1.bf16.msra.mxu0 %v5150_v27  ;;  %4119 = vmatpush1.bf16.msra.mxu1 %v5152_v28  ;;  %v5198_v27 = vcombine.low %v1116_v8, %v1120_v9  ;;  %v5200_v28 = vcombine.low %v1117_v10, %v1121_v15  ;;  %v5232_v8 = vcombine.low %v1149_v53, %v1153_v54  ;;  %v1164_v15 = vld [vmem:[%s6038_s20 + $0xb80] sm:$0xff]  ;;  %v1193_v53 = vld [vmem:[%s6038_s20 + $0xc68] sm:$0xff] }
 0x1fb   : > { %3956 = vmatprep.subr.bf16.mxu0 %v5159_v29  ;;  %4120 = vmatprep.subr.bf16.mxu1 %v5161_v30  ;;  %v5207_v29 = vcombine.high %v1124_v23, %v1128_v24  ;;  %v5209_v30 = vcombine.high %v1125_v25, %v1129_v26  ;;  %v5239_v9 = vcombine.high %v1156_v62, %v1160_v63 }
 0x1fe   : > { %3957 = vmatpush1.bf16.msra.mxu0 %v5158_v35  ;;  %4121 = vmatpush1.bf16.msra.mxu1 %v5160_v36  ;;  %v5206_v35 = vcombine.low %v1124_v23, %v1128_v24  ;;  %v5208_v36 = vcombine.low %v1125_v25, %v1129_v26  ;;  %v5238_v25 = vcombine.low %v1156_v62, %v1160_v63  ;;  %v1196_v63 = vld [vmem:[%s6038_s20 + $0xc80] sm:$0xff] }
 0x1ff   : > { %3958 = vmatprep.subr.bf16.mxu0 %v5167_v59  ;;  %4122 = vmatprep.subr.bf16.mxu1 %v5169_v37  ;;  %v5215_v59 = vcombine.high %v1132_v31, %v1136_v32  ;;  %v5217_v37 = vcombine.high %v1133_v33, %v1137_v34 }
 0x202   : > { %3959 = vmatpush1.bf16.msra.mxu0 %v5166_v42  ;;  %4123 = vmatpush1.bf16.msra.mxu1 %v5168_v49  ;;  %v5214_v42 = vcombine.low %v1132_v31, %v1136_v32  ;;  %v5216_v49 = vcombine.low %v1133_v33, %v1137_v34  ;;  %v1173_v31 = vld [vmem:[%s6038_s20 + $0xbc8] sm:$0xff] }
 0x203   : > { %3960 = vmatprep.subr.bf16.mxu0 %v5175_v50  ;;  %4124 = vmatprep.subr.bf16.mxu1 %v5177_v51  ;;  %v5223_v50 = vcombine.high %v1140_v38, %v1144_v39  ;;  %v5225_v51 = vcombine.high %v1141_v40, %v1145_v41 }
 0x206   : > { %3961 = vmatpush1.bf16.msra.mxu0 %v5174_v55  ;;  %4125 = vmatpush1.bf16.msra.mxu1 %v5176_v56  ;;  %v6313_v55 = vsub.s32 4, %v6127_v43  ;;  %v5222_v56 = vcombine.low %v1140_v38, %v1144_v39  ;;  %v1184_v38 = vld [vmem:[%s6038_s20 + $0xc20] sm:$0xff]  ;;  %v1181_v39 = vld [vmem:[%s6038_s20 + $0xc08] sm:$0xff] }
 0x207   : > { %3962 = vmatprep.subr.bf16.mxu0 %v5183_v57  ;;  %4126 = vmatprep.subr.bf16.mxu1 %v5185_v58  ;;  %v5224_v57 = vcombine.low %v1141_v40, %v1145_v41  ;;  %v5231_v58 = vcombine.high %v1148_v18, %v1152_v52 }
 0x208   : > { %v751_v24 = vrot.slane %v6137_v47, %v6313_v55 }
 0x20a   : > { %3963 = vmatpush1.bf16.msra.mxu0 %v5182_v4  ;;  %4127 = vmatpush1.bf16.msra.mxu1 %v5184_v5  ;;  %v1161_v4 = vld [vmem:[%s6038_s20 + $0xb68] sm:$0xff]  ;;  %v6320_v5 = vsub.s32 7, %v6127_v43 }
 0x20b   : > { %3964 = vmatprep.subr.bf16.mxu0 %v5191_v6  ;;  %4128 = vmatprep.subr.bf16.mxu1 %v5193_v7  ;;  %v701_v6 = vrot.slane %v6132_v45, %v6313_v55  ;;  %v5230_v7 = vcombine.low %v1148_v18, %v1152_v52  ;;  %v5241_v10 = vcombine.high %v1157_v0, %v1161_v4  ;;  %v1192_v18 = vld [vmem:[%s6038_s20 + $0xc60] sm:$0xff]  ;;  %v1189_v52 = vld [vmem:[%s6038_s20 + $0xc48] sm:$0xff] }
 0x20c   : > { %v5240_v26 = vcombine.low %v1157_v0, %v1161_v4  ;;  %v763_v32 = vrot.slane %v6137_v47, %v6320_v5  ;;  %v5273_v62 = vcombine.high %v1189_v52, %v1193_v53  ;;  %v1200_v0 = vld [vmem:[%s6038_s20 + $0xca0] sm:$0xff]  ;;  %v1197_v4 = vld [vmem:[%s6038_s20 + $0xc88] sm:$0xff] }
 0x20d   : > { %v726_v23 = vmul.f32 %v701_v6, %v6162_v13  ;;  %v1201_v6 = vld [vmem:[%s6038_s20 + $0xca8] sm:$0xff] }
 0x20e   : > { %3965 = vmatpush1.bf16.msra.mxu0 %v5190_v17  ;;  %4129 = vmatpush1.bf16.msra.mxu1 %v5192_v19  ;;  %v1168_v17 = vld [vmem:[%s6038_s20 + $0xba0] sm:$0xff]  ;;  %v1165_v19 = vld [vmem:[%s6038_s20 + $0xb88] sm:$0xff] }
 0x20f   : > { %3966 = vmatprep.subr.bf16.mxu0 %v5199_v20  ;;  %4130 = vmatprep.subr.bf16.mxu1 %v5201_v21  ;;  %v1169_v20 = vld [vmem:[%s6038_s20 + $0xba8] sm:$0xff]  ;;  %v713_v21 = vrot.slane %v6132_v45, %v6320_v5  ;;  %v776_v33 = vadd.f32 %v751_v24, %v726_v23  ;;  %v5246_v34 = vcombine.low %v1164_v15, %v1168_v17 }
 0x210   : > { %v1177_v45 = vld [vmem:[%s6038_s20 + $0xbe8] sm:$0xff]  ;;  %v5278_v23 = vcombine.low %v1196_v63, %v1200_v0  ;;  %v5280_v24 = vcombine.low %v1197_v4, %v1201_v6 }
 0x211   : > { %v729_v13 = vmul.f32 %v713_v21, %v6198_v3  ;;  %v1185_v3 = vld [vmem:[%s6038_s20 + $0xc28] sm:$0xff]  ;;  %v784_v41 = vmax.f32 %v776_v33, 0.0  ;;  %v1220_v33 = vld [vmem:[%s6038_s20 + $0xd40] sm:$0xff] }
 0x212   : > { %3967 = vmatpush1.bf16.msra.mxu0 %v5198_v27  ;;  %4131 = vmatpush1.bf16.msra.mxu1 %v5200_v28  ;;  %v5247_v27 = vcombine.high %v1164_v15, %v1168_v17  ;;  %v5249_v28 = vcombine.high %v1165_v19, %v1169_v20  ;;  %v5281_v15 = vcombine.high %v1197_v4, %v1201_v6  ;;  %v1204_v17 = vld [vmem:[%s6038_s20 + $0xcc0] sm:$0xff]  ;;  %v1209_v21 = vld [vmem:[%s6038_s20 + $0xce8] sm:$0xff] }
 0x213   : > { %3968 = vmatprep.subr.bf16.mxu0 %v5207_v29  ;;  %4132 = vmatprep.subr.bf16.mxu1 %v5209_v30  ;;  %v1172_v29 = vld [vmem:[%s6038_s20 + $0xbc0] sm:$0xff]  ;;  %v779_v40 = vadd.f32 %v763_v32, %v729_v13  ;;  %v1245_v4 = vld [vmem:[%s6038_s20 + $0xe08] sm:$0xff] }
 0x214   : > { %v1176_v30 = vld [vmem:[%s6038_s20 + $0xbe0] sm:$0xff]  ;;  %v1249_v6 = vld [vmem:[%s6038_s20 + $0xe28] sm:$0xff] }
 0x215   : > { %v5254_v47 = vcombine.low %v1172_v29, %v1176_v30  ;;  %v787_v54 = vmax.f32 %v779_v40, 0.0  ;;  %v1232_v40 = vld [vmem:[%s6038_s20 + $0xda0] sm:$0xff] }
 0x216   : > { %3969 = vmatpush1.bf16.msra.mxu0 %v5206_v35  ;;  %4133 = vmatpush1.bf16.msra.mxu1 %v5208_v36  ;;  %v5248_v35 = vcombine.low %v1165_v19, %v1169_v20  ;;  %v5255_v36 = vcombine.high %v1172_v29, %v1176_v30  ;;  %v1208_v19 = vld [vmem:[%s6038_s20 + $0xce0] sm:$0xff]  ;;  %v1205_v20 = vld [vmem:[%s6038_s20 + $0xcc8] sm:$0xff] }
 0x217   : > { %3970 = vmatprep.subr.bf16.mxu0 %v5215_v59  ;;  %4134 = vmatprep.subr.bf16.mxu1 %v5217_v37  ;;  %v5257_v59 = vcombine.high %v1173_v31, %v1177_v45  ;;  %v1180_v37 = vld [vmem:[%s6038_s20 + $0xc00] sm:$0xff]  ;;  %v1213_v29 = vld [vmem:[%s6038_s20 + $0xd08] sm:$0xff] }
 0x218   : > { %v1217_v30 = vld [vmem:[%s6038_s20 + $0xd28] sm:$0xff] }
 0x219   : > { %v5297_v32 = vcombine.high %v1213_v29, %v1217_v30 }
 0x21a   : > { %3971 = vmatpush1.bf16.msra.mxu0 %v5214_v42  ;;  %4135 = vmatpush1.bf16.msra.mxu1 %v5216_v49  ;;  %v5256_v42 = vcombine.low %v1173_v31, %v1177_v45  ;;  %v5263_v49 = vcombine.high %v1180_v37, %v1184_v38  ;;  %v5286_v31 = vcombine.low %v1204_v17, %v1208_v19 }
 0x21b   : > { %3972 = vmatprep.subr.bf16.mxu0 %v5223_v50  ;;  %4136 = vmatprep.subr.bf16.mxu1 %v5225_v51  ;;  %v5265_v50 = vcombine.high %v1181_v39, %v1185_v3  ;;  %v1188_v51 = vld [vmem:[%s6038_s20 + $0xc40] sm:$0xff]  ;;  %v5288_v45 = vcombine.low %v1205_v20, %v1209_v21 }
 0x21e   : > { %3973 = vmatpush1.bf16.msra.mxu0 %v5222_v56  ;;  %4137 = vmatpush1.bf16.msra.mxu1 %v5224_v57  ;;  %v6348_v56 = vpack.c.bf16 %v784_v41, %v784_v41  ;;  %v5262_v57 = vcombine.low %v1180_v37, %v1184_v38  ;;  %v5296_v37 = vcombine.low %v1213_v29, %v1217_v30  ;;  %v1229_v41 = vld [vmem:[%s6038_s20 + $0xd88] sm:$0xff] }
 0x21f   : > { %3974 = vmatprep.subr.bf16.mxu0 %v5231_v58  ;;  %4138 = vmatprep.subr.bf16.mxu1 %v5233_v60  ;;  %v5264_v58 = vcombine.low %v1181_v39, %v1185_v3  ;;  %v5271_v60 = vcombine.high %v1188_v51, %v1192_v18  ;;  %v1228_v3 = vld [vmem:[%s6038_s20 + $0xd80] sm:$0xff]  ;;  %v1261_v29 = vld [vmem:[%s6038_s20 + $0xe88] sm:$0xff] }
 0x220   : > { %v1265_v30 = vld [vmem:[%s6038_s20 + $0xea8] sm:$0xff] }
 0x222   : > { %3975 = vmatpush1.bf16.msra.mxu0 %v5230_v7  ;;  %4139 = vmatpush1.bf16.msra.mxu1 %v5232_v8  ;;  %v6354_v7 = vpack.c.bf16 %v787_v54, %v787_v54  ;;  %v5270_v8 = vcombine.low %v1188_v51, %v1192_v18  ;;  %v1236_v18 = vld [vmem:[%s6038_s20 + $0xdc0] sm:$0xff]  ;;  %v1241_v54 = vld [vmem:[%s6038_s20 + $0xde8] sm:$0xff] }
 0x223   : > { %3976 = vmatprep.subr.bf16.mxu0 %v5239_v9  ;;  %4140 = vmatprep.subr.bf16.mxu1 %v5241_v10  ;;  %v5272_v9 = vcombine.low %v1189_v52, %v1193_v53  ;;  %v5279_v10 = vcombine.high %v1196_v63, %v1200_v0  ;;  %v1240_v52 = vld [vmem:[%s6038_s20 + $0xde0] sm:$0xff]  ;;  %v1237_v53 = vld [vmem:[%s6038_s20 + $0xdc8] sm:$0xff] }
 0x224   : > { %v1244_v63 = vld [vmem:[%s6038_s20 + $0xe00] sm:$0xff] }
 0x225   : > { %v1248_v0 = vld [vmem:[%s6038_s20 + $0xe20] sm:$0xff] }
 0x226   : > { %3977 = vmatpush1.bf16.msra.mxu0 %v5238_v25  ;;  %4141 = vmatpush1.bf16.msra.mxu1 %v5240_v26  ;;  %v5287_v25 = vcombine.high %v1204_v17, %v1208_v19  ;;  %v5289_v26 = vcombine.high %v1205_v20, %v1209_v21  ;;  %v1252_v17 = vld [vmem:[%s6038_s20 + $0xe40] sm:$0xff]  ;;  %v1253_v20 = vld [vmem:[%s6038_s20 + $0xe48] sm:$0xff] }
 0x227   : > { %3978 = vmatprep.subr.bf16.mxu0 %v5247_v27  ;;  %4142 = vmatprep.subr.bf16.mxu1 %v5249_v28  ;;  %v1212_v27 = vld [vmem:[%s6038_s20 + $0xd00] sm:$0xff]  ;;  %v1257_v21 = vld [vmem:[%s6038_s20 + $0xe68] sm:$0xff] }
 0x228   : > { %v1216_v28 = vld [vmem:[%s6038_s20 + $0xd20] sm:$0xff] }
 0x229   : > { %v5295_v13 = vcombine.high %v1212_v27, %v1216_v28  ;;  %v1256_v19 = vld [vmem:[%s6038_s20 + $0xe60] sm:$0xff] }
 0x22a   : > { %3979 = vmatpush1.bf16.msra.mxu0 %v5246_v34  ;;  %4143 = vmatpush1.bf16.msra.mxu1 %v5248_v35  ;;  %v1224_v34 = vld [vmem:[%s6038_s20 + $0xd60] sm:$0xff]  ;;  %v1221_v35 = vld [vmem:[%s6038_s20 + $0xd48] sm:$0xff] }
 0x22b   : > { %3980 = vmatprep.subr.bf16.mxu0 %v5255_v36  ;;  %4144 = vmatprep.subr.bf16.mxu1 %v5257_v59  ;;  %v1225_v36 = vld [vmem:[%s6038_s20 + $0xd68] sm:$0xff]  ;;  %v5294_v59 = vcombine.low %v1212_v27, %v1216_v28  ;;  %v5303_v38 = vcombine.high %v1220_v33, %v1224_v34  ;;  %v1260_v27 = vld [vmem:[%s6038_s20 + $0xe80] sm:$0xff] }
 0x22c   : > { %v5305_v39 = vcombine.high %v1221_v35, %v1225_v36  ;;  %v1264_v28 = vld [vmem:[%s6038_s20 + $0xea0] sm:$0xff] }
 0x22e   : > { %3981 = vmatpush1.bf16.msra.mxu0 %v5254_v47  ;;  %4145 = vmatpush1.bf16.msra.mxu1 %v5256_v42  ;;  %v1233_v47 = vld [vmem:[%s6038_s20 + $0xda8] sm:$0xff]  ;;  %v5302_v42 = vcombine.low %v1220_v33, %v1224_v34  ;;  %v1268_v33 = vld [vmem:[%s6038_s20 + $0xec0] sm:$0xff] }
 0x22f   : > { %3991 = vmatprep.subr.bf16.mxu0 %v5263_v49  ;;  %4155 = vmatprep.subr.bf16.mxu1 %v5265_v50  ;;  %v5304_v49 = vcombine.low %v1221_v35, %v1225_v36  ;;  %v5311_v50 = vcombine.high %v1228_v3, %v1232_v40  ;;  %v5313_v51 = vcombine.high %v1229_v41, %v1233_v47  ;;  %v1272_v34 = vld [vmem:[%s6038_s20 + $0xee0] sm:$0xff]  ;;  %v1269_v35 = vld [vmem:[%s6038_s20 + $0xec8] sm:$0xff] }
 0x230   : > { %v1273_v36 = vld [vmem:[%s6038_s20 + $0xee8] sm:$0xff] }
 0x231   : > { %3983 = vmatmul.mubr.bf16.vlgmr.msra.gmra.mrb[8].mxu0 %v6348_v56  ;;  %4147 = vmatmul.mubr.bf16.vlgmr.msra.gmra.mrb[8].mxu1 %v6348_v56 }
 0x232   : > { %3992 = vmatpush1.bf16.msra.mxu0 %v5262_v57  ;;  %4156 = vmatpush1.bf16.msra.mxu1 %v5264_v58  ;;  %v5310_v57 = vcombine.low %v1228_v3, %v1232_v40  ;;  %v5312_v58 = vcombine.low %v1229_v41, %v1233_v47  ;;  %v1276_v3 = vld [vmem:[%s6038_s20 + $0xf00] sm:$0xff]  ;;  %v1277_v41 = vld [vmem:[%s6038_s20 + $0xf08] sm:$0xff] }
 0x233   : > { %3993 = vmatprep.subr.bf16.mxu0 %v5271_v60  ;;  %4157 = vmatprep.subr.bf16.mxu1 %v5273_v62  ;;  %v5319_v60 = vcombine.high %v1236_v18, %v1240_v52  ;;  %v5321_v62 = vcombine.high %v1237_v53, %v1241_v54  ;;  %v1280_v40 = vld [vmem:[%s6038_s20 + $0xf20] sm:$0xff]  ;;  %v1281_v47 = vld [vmem:[%s6038_s20 + $0xf28] sm:$0xff] }
 0x234   : > { %4023 = vmatprep.mubr.bf16.mxu0 %v6354_v7  ;;  %4187 = vmatprep.mubr.bf16.mxu1 %v6354_v7 }
 0x236   : > { %3994 = vmatpush1.bf16.msra.mxu0 %v5270_v8  ;;  %4158 = vmatpush1.bf16.msra.mxu1 %v5272_v9  ;;  %v5318_v8 = vcombine.low %v1236_v18, %v1240_v52  ;;  %v5320_v9 = vcombine.low %v1237_v53, %v1241_v54  ;;  %v5361_v18 = vcombine.high %v1277_v41, %v1281_v47  ;;  %v1284_v52 = vld [vmem:[%s6038_s20 + $0xf40] sm:$0xff]  ;;  %v1285_v54 = vld [vmem:[%s6038_s20 + $0xf48] sm:$0xff] }
 0x237   : > { %3995 = vmatprep.subr.bf16.mxu0 %v5279_v10  ;;  %4159 = vmatprep.subr.bf16.mxu1 %v5281_v15  ;;  %v5327_v10 = vcombine.high %v1244_v63, %v1248_v0  ;;  %v5329_v15 = vcombine.high %v1245_v4, %v1249_v6  ;;  %v1288_v53 = vld [vmem:[%s6038_s20 + $0xf60] sm:$0xff] }
 0x23a   : > { %3996 = vmatpush1.bf16.msra.mxu0 %v5278_v23  ;;  %4160 = vmatpush1.bf16.msra.mxu1 %v5280_v24  ;;  %v5326_v23 = vcombine.low %v1244_v63, %v1248_v0  ;;  %v5328_v24 = vcombine.low %v1245_v4, %v1249_v6  ;;  %v5367_v0 = vcombine.high %v1284_v52, %v1288_v53  ;;  %v1292_v6 = vld [vmem:[%s6038_s20 + $0xf80] sm:$0xff] }
 0x23b   : > { %3997 = vmatprep.subr.bf16.mxu0 %v5287_v25  ;;  %4161 = vmatprep.subr.bf16.mxu1 %v5289_v26  ;;  %v5335_v25 = vcombine.high %v1252_v17, %v1256_v19  ;;  %v5337_v26 = vcombine.high %v1253_v20, %v1257_v21 }
 0x23e   : > { %3998 = vmatpush1.bf16.msra.mxu0 %v5286_v31  ;;  %4162 = vmatpush1.bf16.msra.mxu1 %v5288_v45  ;;  %v5334_v31 = vcombine.low %v1252_v17, %v1256_v19  ;;  %v5336_v45 = vcombine.low %v1253_v20, %v1257_v21  ;;  %v5366_v19 = vcombine.low %v1284_v52, %v1288_v53  ;;  %v814_v52 = vld [vmem:[%s6038_s20 + $0x90] sm:$0xff] }
 0x23f   : > { %3999 = vmatprep.subr.bf16.mxu0 %v5295_v13  ;;  %4163 = vmatprep.subr.bf16.mxu1 %v5297_v32  ;;  %v5343_v13 = vcombine.high %v1260_v27, %v1264_v28  ;;  %v5345_v32 = vcombine.high %v1261_v29, %v1265_v30  ;;  %v818_v53 = vld [vmem:[%s6038_s20 + $0xb0] sm:$0xff] }
 0x242   : > { %4000 = vmatpush1.bf16.msra.mxu0 %v5294_v59  ;;  %4164 = vmatpush1.bf16.msra.mxu1 %v5296_v37  ;;  %v5342_v59 = vcombine.low %v1260_v27, %v1264_v28  ;;  %v5344_v37 = vcombine.low %v1261_v29, %v1265_v30  ;;  %v1301_v27 = vld [vmem:[%s6038_s20 + $0xfc8] sm:$0xff] }
 0x243   : > { %4001 = vmatprep.subr.bf16.mxu0 %v5303_v38  ;;  %4165 = vmatprep.subr.bf16.mxu1 %v5305_v39  ;;  %v5351_v38 = vcombine.high %v1268_v33, %v1272_v34  ;;  %v5353_v39 = vcombine.high %v1269_v35, %v1273_v36  ;;  %v1305_v28 = vld [vmem:[%s6038_s20 + $0xfe8] sm:$0xff] }
 0x246   : > { %4002 = vmatpush1.bf16.msra.mxu0 %v5302_v42  ;;  %4166 = vmatpush1.bf16.msra.mxu1 %v5304_v49  ;;  %v5350_v42 = vcombine.low %v1268_v33, %v1272_v34  ;;  %v5352_v49 = vcombine.low %v1269_v35, %v1273_v36  ;;  %v799_v33 = vld [vmem:[%s6038_s20 + $0x18] sm:$0xff]  ;;  %v5384_v36 = vcombine.low %v1301_v27, %v1305_v28 }
 0x247   : > { %4003 = vmatprep.subr.bf16.mxu0 %v5311_v50  ;;  %4167 = vmatprep.subr.bf16.mxu1 %v5313_v51  ;;  %v6401_v50 = vsub.s32 6, %v6127_v43  ;;  %v5359_v51 = vcombine.high %v1276_v3, %v1280_v40  ;;  %v803_v34 = vld [vmem:[%s6038_s20 + $0x38] sm:$0xff] }
 0x24a   : > { %4004 = vmatpush1.bf16.msra.mxu0 %v5310_v57  ;;  %4168 = vmatpush1.bf16.msra.mxu1 %v5312_v58  ;;  %v1289_v57 = vld [vmem:[%s6038_s20 + $0xf68] sm:$0xff]  ;;  %v5358_v58 = vcombine.low %v1276_v3, %v1280_v40  ;;  %v810_v3 = vld [vmem:[%s6038_s20 + $0x70] sm:$0xff]  ;;  %v807_v40 = vld [vmem:[%s6038_s20 + $0x58] sm:$0xff] }
 0x24b   : > { %4005 = vmatprep.subr.bf16.mxu0 %v5319_v60  ;;  %4169 = vmatprep.subr.bf16.mxu1 %v5321_v62  ;;  %v5360_v60 = vcombine.low %v1277_v41, %v1281_v47  ;;  %v5532_v62 = vld [vmem:[#allocation4] sm:$0xff]  ;;  %v5369_v4 = vcombine.high %v1285_v54, %v1289_v57  ;;  %v5368_v20 = vcombine.low %v1285_v54, %v1289_v57  ;;  %v811_v41 = vld [vmem:[%s6038_s20 + $0x78] sm:$0xff] }
 0x24c   : > { %v709_v63 = vrot.slane %v5532_v62, %v6401_v50  ;;  %v815_v54 = vld [vmem:[%s6038_s20 + $0x98] sm:$0xff]  ;;  %v4899_v62 = vcombine.high %v814_v52, %v818_v53 }
 0x24d   : > { %v819_v57 = vld [vmem:[%s6038_s20 + $0xb8] sm:$0xff] }
 0x24e   : > { %4006 = vmatpush1.bf16.msra.mxu0 %v5318_v8  ;;  %4170 = vmatpush1.bf16.msra.mxu1 %v5320_v9  ;;  %v1296_v8 = vld [vmem:[%s6038_s20 + $0xfa0] sm:$0xff]  ;;  %v1293_v9 = vld [vmem:[%s6038_s20 + $0xf88] sm:$0xff]  ;;  %v728_v21 = vmul.f32 %v709_v63, %v6193_v61  ;;  %v4901_v63 = vcombine.high %v815_v54, %v819_v57 }
 0x24f   : > { %4007 = vmatprep.subr.bf16.mxu0 %v5327_v10  ;;  %4171 = vmatprep.subr.bf16.mxu1 %v5329_v15  ;;  %v1297_v10 = vld [vmem:[%s6038_s20 + $0xfa8] sm:$0xff]  ;;  %v5533_v15 = vld [vmem:[#allocation6] sm:$0xff]  ;;  %v5374_v29 = vcombine.low %v1292_v6, %v1296_v8 }
 0x250   : > { %v759_v17 = vrot.slane %v5533_v15, %v6401_v50  ;;  %v5376_v30 = vcombine.low %v1293_v9, %v1297_v10 }
 0x252   : > { %4008 = vmatpush1.bf16.msra.mxu0 %v5326_v23  ;;  %4172 = vmatpush1.bf16.msra.mxu1 %v5328_v24  ;;  %v5375_v23 = vcombine.high %v1292_v6, %v1296_v8  ;;  %v5377_v24 = vcombine.high %v1293_v9, %v1297_v10  ;;  %v823_v6 = vld [vmem:[%s6038_s20 + $0xd8] sm:$0xff]  ;;  %v4898_v9 = vcombine.low %v814_v52, %v818_v53  ;;  %v862_v52 = vld [vmem:[%s6038_s20 + $0x210] sm:$0xff] }
 0x253   : > { %4009 = vmatprep.subr.bf16.mxu0 %v5335_v25  ;;  %4173 = vmatprep.subr.bf16.mxu1 %v5337_v26  ;;  %v1300_v25 = vld [vmem:[%s6038_s20 + $0xfc0] sm:$0xff]  ;;  %v827_v8 = vld [vmem:[%s6038_s20 + $0xf8] sm:$0xff]  ;;  %v4900_v10 = vcombine.low %v815_v54, %v819_v57  ;;  %v866_v53 = vld [vmem:[%s6038_s20 + $0x230] sm:$0xff] }
 0x254   : > { %v1304_v26 = vld [vmem:[%s6038_s20 + $0xfe0] sm:$0xff]  ;;  %v4909_v15 = vcombine.high %v823_v6, %v827_v8  ;;  %v863_v54 = vld [vmem:[%s6038_s20 + $0x218] sm:$0xff] }
 0x255   : > { %v5383_v61 = vcombine.high %v1300_v25, %v1304_v26  ;;  %v5382_v35 = vcombine.low %v1300_v25, %v1304_v26  ;;  %v867_v57 = vld [vmem:[%s6038_s20 + $0x238] sm:$0xff] }
 0x256   : > { %4010 = vmatpush1.bf16.msra.mxu0 %v5334_v31  ;;  %4174 = vmatpush1.bf16.msra.mxu1 %v5336_v45  ;;  %v778_v31 = vadd.f32 %v759_v17, %v728_v21  ;;  %v5385_v45 = vcombine.high %v1301_v27, %v1305_v28  ;;  %v830_v17 = vld [vmem:[%s6038_s20 + $0x110] sm:$0xff]  ;;  %v835_v21 = vld [vmem:[%s6038_s20 + $0x138] sm:$0xff] }
 0x257   : > { %4011 = vmatprep.subr.bf16.mxu0 %v5343_v13  ;;  %4175 = vmatprep.subr.bf16.mxu1 %v5345_v32  ;;  %v798_v13 = vld [vmem:[%s6038_s20 + $0x10] sm:$0xff] }
 0x258   : > { %v802_v32 = vld [vmem:[%s6038_s20 + $0x30] sm:$0xff] }
 0x259   : > { %v4882_v47 = vcombine.low %v798_v13, %v802_v32  ;;  %v838_v27 = vld [vmem:[%s6038_s20 + $0x150] sm:$0xff] }
 0x25a   : > { %4012 = vmatpush1.bf16.msra.mxu0 %v5342_v59  ;;  %4176 = vmatpush1.bf16.msra.mxu1 %v5344_v37  ;;  %v786_v59 = vmax.f32 %v778_v31, 0.0  ;;  %v4883_v37 = vcombine.high %v798_v13, %v802_v32  ;;  %v842_v28 = vld [vmem:[%s6038_s20 + $0x170] sm:$0xff] }
 0x25b   : > { %4013 = vmatprep.subr.bf16.mxu0 %v5351_v38  ;;  %4177 = vmatprep.subr.bf16.mxu1 %v5353_v39  ;;  %v4885_v38 = vcombine.high %v799_v33, %v803_v34  ;;  %v806_v39 = vld [vmem:[%s6038_s20 + $0x50] sm:$0xff] }
 0x25c   : > { %v846_v32 = vld [vmem:[%s6038_s20 + $0x190] sm:$0xff] }
 0x25e   : > { %4014 = vmatpush1.bf16.msra.mxu0 %v5350_v42  ;;  %4178 = vmatpush1.bf16.msra.mxu1 %v5352_v49  ;;  %v6426_v42 = vpack.c.bf16 %v786_v59, %v786_v59  ;;  %v4884_v49 = vcombine.low %v799_v33, %v803_v34  ;;  %v850_v33 = vld [vmem:[%s6038_s20 + $0x1b0] sm:$0xff]  ;;  %v847_v34 = vld [vmem:[%s6038_s20 + $0x198] sm:$0xff] }
 0x25f   : > { %4015 = vmatprep.subr.bf16.mxu0 %v5359_v51  ;;  %4179 = vmatprep.subr.bf16.mxu1 %v5361_v18  ;;  %v4891_v51 = vcombine.high %v806_v39, %v810_v3  ;;  %v4893_v18 = vcombine.high %v807_v40, %v811_v41 }
 0x262   : > { %4016 = vmatpush1.bf16.msra.mxu0 %v5358_v58  ;;  %4180 = vmatpush1.bf16.msra.mxu1 %v5360_v60  ;;  %v4890_v58 = vcombine.low %v806_v39, %v810_v3  ;;  %v4892_v60 = vcombine.low %v807_v40, %v811_v41  ;;  %v854_v39 = vld [vmem:[%s6038_s20 + $0x1d0] sm:$0xff]  ;;  %v855_v40 = vld [vmem:[%s6038_s20 + $0x1d8] sm:$0xff] }
 0x263   : > { %4017 = vmatprep.subr.bf16.mxu0 %v5367_v0  ;;  %4181 = vmatprep.subr.bf16.mxu1 %v5369_v4  ;;  %v822_v0 = vld [vmem:[%s6038_s20 + $0xd0] sm:$0xff]  ;;  %v859_v41 = vld [vmem:[%s6038_s20 + $0x1f8] sm:$0xff] }
 0x264   : > { %v826_v4 = vld [vmem:[%s6038_s20 + $0xf0] sm:$0xff] }
 0x265   : > { %v858_v3 = vld [vmem:[%s6038_s20 + $0x1f0] sm:$0xff] }
 0x266   : > { %4018 = vmatpush1.bf16.msra.mxu0 %v5366_v19  ;;  %4182 = vmatpush1.bf16.msra.mxu1 %v5368_v20  ;;  %v834_v19 = vld [vmem:[%s6038_s20 + $0x130] sm:$0xff]  ;;  %v831_v20 = vld [vmem:[%s6038_s20 + $0x118] sm:$0xff] }
 0x267   : > { %4019 = vmatprep.subr.bf16.mxu0 %v5375_v23  ;;  %4183 = vmatprep.subr.bf16.mxu1 %v5377_v24  ;;  %v4906_v23 = vcombine.low %v822_v0, %v826_v4  ;;  %v4908_v24 = vcombine.low %v823_v6, %v827_v8  ;;  %v4915_v25 = vcombine.high %v830_v17, %v834_v19  ;;  %v871_v6 = vld [vmem:[%s6038_s20 + $0x258] sm:$0xff] }
 0x268   : > { %v4917_v26 = vcombine.high %v831_v20, %v835_v21  ;;  %v4914_v31 = vcombine.low %v830_v17, %v834_v19  ;;  %v875_v8 = vld [vmem:[%s6038_s20 + $0x278] sm:$0xff]  ;;  %v878_v17 = vld [vmem:[%s6038_s20 + $0x290] sm:$0xff] }
 0x269   : > { %v882_v19 = vld [vmem:[%s6038_s20 + $0x2b0] sm:$0xff] }
 0x26a   : > { %4020 = vmatpush1.bf16.msra.mxu0 %v5374_v29  ;;  %4184 = vmatpush1.bf16.msra.mxu1 %v5376_v30  ;;  %v839_v29 = vld [vmem:[%s6038_s20 + $0x158] sm:$0xff] }
 0x26b   : > { %4021 = vmatprep.subr.bf16.mxu0 %v5383_v61  ;;  %4185 = vmatprep.subr.bf16.mxu1 %v5385_v45  ;;  %v843_v30 = vld [vmem:[%s6038_s20 + $0x178] sm:$0xff]  ;;  %v4916_v61 = vcombine.low %v831_v20, %v835_v21  ;;  %v4923_v45 = vcombine.high %v838_v27, %v842_v28 }
 0x26c   : > { %v4925_v13 = vcombine.high %v839_v29, %v843_v30  ;;  %v4924_v59 = vcombine.low %v839_v29, %v843_v30  ;;  %v879_v20 = vld [vmem:[%s6038_s20 + $0x298] sm:$0xff] }
 0x26d   : > { %v883_v21 = vld [vmem:[%s6038_s20 + $0x2b8] sm:$0xff] }
 0x26e   : > { %4022 = vmatpush1.bf16.msra.mxu0 %v5382_v35  ;;  %4186 = vmatpush1.bf16.msra.mxu1 %v5384_v36  ;;  %v851_v35 = vld [vmem:[%s6038_s20 + $0x1b8] sm:$0xff]  ;;  %v4922_v36 = vcombine.low %v838_v27, %v842_v28  ;;  %v886_v27 = vld [vmem:[%s6038_s20 + $0x2d0] sm:$0xff] }
 0x26f   : > { %4196 = vmatprep.subr.bf16.mxu0 %v4883_v37  ;;  %4360 = vmatprep.subr.bf16.mxu1 %v4885_v38  ;;  %v4931_v37 = vcombine.high %v846_v32, %v850_v33  ;;  %v4933_v38 = vcombine.high %v847_v34, %v851_v35  ;;  %v890_v28 = vld [vmem:[%s6038_s20 + $0x2f0] sm:$0xff]  ;;  %v887_v29 = vld [vmem:[%s6038_s20 + $0x2d8] sm:$0xff] }
 0x270   : > { %v891_v30 = vld [vmem:[%s6038_s20 + $0x2f8] sm:$0xff] }
 0x271   : > { %4024 = vmatmul.mubr.bf16.vlgmr.msra.gmra.mrb[8].mxu0 %v6426_v42  ;;  %4188 = vmatmul.mubr.bf16.vlgmr.msra.gmra.mrb[8].mxu1 %v6426_v42 }
 0x272   : > { %4197 = vmatpush1.bf16.msra.mxu0 %v4882_v47  ;;  %4228 = vmatprep.mubr.bf16.mxu0 %v6160_v11  ;;  %v4930_v47 = vcombine.low %v846_v32, %v850_v33  ;;  %v894_v32 = vld [vmem:[%s6038_s20 + $0x310] sm:$0xff] }
 0x273   : > { %4361 = vmatpush1.bf16.msra.mxu1 %v4884_v49  ;;  %4392 = vmatprep.mubr.bf16.mxu1 %v6160_v11  ;;  %v4907_v11 = vcombine.high %v822_v0, %v826_v4  ;;  %v4932_v49 = vcombine.low %v847_v34, %v851_v35  ;;  %v870_v0 = vld [vmem:[%s6038_s20 + $0x250] sm:$0xff]  ;;  %v895_v34 = vld [vmem:[%s6038_s20 + $0x318] sm:$0xff] }
 0x274   : > { %4198 = vmatprep.subr.bf16.mxu0 %v4891_v51  ;;  %4362 = vmatprep.subr.bf16.mxu1 %v4893_v18  ;;  %v4939_v51 = vcombine.high %v854_v39, %v858_v3  ;;  %v4941_v18 = vcombine.high %v855_v40, %v859_v41  ;;  %v874_v4 = vld [vmem:[%s6038_s20 + $0x270] sm:$0xff]  ;;  %v899_v35 = vld [vmem:[%s6038_s20 + $0x338] sm:$0xff] }
 0x275   : > { %v898_v33 = vld [vmem:[%s6038_s20 + $0x330] sm:$0xff] }
 0x276   : > { %4199 = vmatpush1.bf16.msra.mxu0 %v4890_v58  ;;  %v4938_v58 = vcombine.low %v854_v39, %v858_v3  ;;  %v902_v39 = vld [vmem:[%s6038_s20 + $0x350] sm:$0xff] }
 0x277   : > { %4363 = vmatpush1.bf16.msra.mxu1 %v4892_v60  ;;  %4200 = vmatprep.subr.bf16.mxu0 %v4899_v62  ;;  %v4940_v60 = vcombine.low %v855_v40, %v859_v41  ;;  %v4947_v62 = vcombine.high %v862_v52, %v866_v53  ;;  %v906_v3 = vld [vmem:[%s6038_s20 + $0x370] sm:$0xff]  ;;  %v903_v40 = vld [vmem:[%s6038_s20 + $0x358] sm:$0xff] }
 0x278   : > { %4364 = vmatprep.subr.bf16.mxu1 %v4901_v63  ;;  %v4949_v63 = vcombine.high %v863_v54, %v867_v57  ;;  %v907_v41 = vld [vmem:[%s6038_s20 + $0x378] sm:$0xff] }
 0x27a   : > { %4201 = vmatpush1.bf16.msra.mxu0 %v4898_v9  ;;  %v4946_v9 = vcombine.low %v862_v52, %v866_v53  ;;  %v910_v52 = vld [vmem:[%s6038_s20 + $0x390] sm:$0xff] }
 0x27b   : > { %4365 = vmatpush1.bf16.msra.mxu1 %v4900_v10  ;;  %4202 = vmatprep.subr.bf16.mxu0 %v4907_v11  ;;  %v4948_v10 = vcombine.low %v863_v54, %v867_v57  ;;  %v4955_v11 = vcombine.high %v870_v0, %v874_v4  ;;  %v914_v53 = vld [vmem:[%s6038_s20 + $0x3b0] sm:$0xff]  ;;  %v911_v54 = vld [vmem:[%s6038_s20 + $0x398] sm:$0xff] }
 0x27c   : > { %4366 = vmatprep.subr.bf16.mxu1 %v4909_v15  ;;  %v4957_v15 = vcombine.high %v871_v6, %v875_v8  ;;  %v915_v57 = vld [vmem:[%s6038_s20 + $0x3b8] sm:$0xff] }
 0x27e   : > { %4203 = vmatpush1.bf16.msra.mxu0 %v4906_v23  ;;  %v4954_v23 = vcombine.low %v870_v0, %v874_v4  ;;  %v918_v0 = vld [vmem:[%s6038_s20 + $0x3d0] sm:$0xff] }
 0x27f   : > { %4367 = vmatpush1.bf16.msra.mxu1 %v4908_v24  ;;  %4204 = vmatprep.subr.bf16.mxu0 %v4915_v25  ;;  %v4956_v24 = vcombine.low %v871_v6, %v875_v8  ;;  %v4963_v25 = vcombine.high %v878_v17, %v882_v19  ;;  %v922_v4 = vld [vmem:[%s6038_s20 + $0x3f0] sm:$0xff]  ;;  %v919_v6 = vld [vmem:[%s6038_s20 + $0x3d8] sm:$0xff] }
 0x280   : > { %4368 = vmatprep.subr.bf16.mxu1 %v4917_v26  ;;  %v4965_v26 = vcombine.high %v879_v20, %v883_v21  ;;  %v923_v8 = vld [vmem:[%s6038_s20 + $0x3f8] sm:$0xff] }
 0x282   : > { %4205 = vmatpush1.bf16.msra.mxu0 %v4914_v31  ;;  %v4962_v31 = vcombine.low %v878_v17, %v882_v19  ;;  %v926_v17 = vld [vmem:[%s6038_s20 + $0x410] sm:$0xff] }
 0x283   : > { %4369 = vmatpush1.bf16.msra.mxu1 %v4916_v61  ;;  %4206 = vmatprep.subr.bf16.mxu0 %v4923_v45  ;;  %v4964_v61 = vcombine.low %v879_v20, %v883_v21  ;;  %v4971_v45 = vcombine.high %v886_v27, %v890_v28  ;;  %v930_v19 = vld [vmem:[%s6038_s20 + $0x430] sm:$0xff]  ;;  %v927_v20 = vld [vmem:[%s6038_s20 + $0x418] sm:$0xff] }
 0x284   : > { %4370 = vmatprep.subr.bf16.mxu1 %v4925_v13  ;;  %v4973_v13 = vcombine.high %v887_v29, %v891_v30  ;;  %v931_v21 = vld [vmem:[%s6038_s20 + $0x438] sm:$0xff] }
 0x286   : > { %4207 = vmatpush1.bf16.msra.mxu0 %v4922_v36  ;;  %v4970_v36 = vcombine.low %v886_v27, %v890_v28  ;;  %v934_v27 = vld [vmem:[%s6038_s20 + $0x450] sm:$0xff] }
 0x287   : > { %4371 = vmatpush1.bf16.msra.mxu1 %v4924_v59  ;;  %4208 = vmatprep.subr.bf16.mxu0 %v4931_v37  ;;  %v4972_v59 = vcombine.low %v887_v29, %v891_v30  ;;  %v4979_v37 = vcombine.high %v894_v32, %v898_v33  ;;  %v938_v28 = vld [vmem:[%s6038_s20 + $0x470] sm:$0xff]  ;;  %v5010_v29 = vcombine.low %v926_v17, %v930_v19  ;;  %v935_v30 = vld [vmem:[%s6038_s20 + $0x458] sm:$0xff] }
 0x288   : > { %4372 = vmatprep.subr.bf16.mxu1 %v4933_v38  ;;  %v4981_v38 = vcombine.high %v895_v34, %v899_v35 }
 0x28a   : > { %4209 = vmatpush1.bf16.msra.mxu0 %v4930_v47  ;;  %v4978_v47 = vcombine.low %v894_v32, %v898_v33  ;;  %v946_v32 = vld [vmem:[%s6038_s20 + $0x4b0] sm:$0xff] }
 0x28b   : > { %4373 = vmatpush1.bf16.msra.mxu1 %v4932_v49  ;;  %4210 = vmatprep.subr.bf16.mxu0 %v4939_v51  ;;  %v4980_v49 = vcombine.low %v895_v34, %v899_v35  ;;  %v4987_v51 = vcombine.high %v902_v39, %v906_v3  ;;  %v943_v34 = vld [vmem:[%s6038_s20 + $0x498] sm:$0xff] }
 0x28c   : > { %4374 = vmatprep.subr.bf16.mxu1 %v4941_v18  ;;  %v4989_v18 = vcombine.high %v903_v40, %v907_v41  ;;  %v947_v35 = vld [vmem:[%s6038_s20 + $0x4b8] sm:$0xff] }
 0x28e   : > { %4211 = vmatpush1.bf16.msra.mxu0 %v4938_v58  ;;  %v4986_v58 = vcombine.low %v902_v39, %v906_v3  ;;  %v950_v39 = vld [vmem:[%s6038_s20 + $0x4d0] sm:$0xff] }
 0x28f   : > { %4375 = vmatpush1.bf16.msra.mxu1 %v4940_v60  ;;  %4212 = vmatprep.subr.bf16.mxu0 %v4947_v62  ;;  %v4988_v60 = vcombine.low %v903_v40, %v907_v41  ;;  %v4995_v62 = vcombine.high %v910_v52, %v914_v53  ;;  %v954_v3 = vld [vmem:[%s6038_s20 + $0x4f0] sm:$0xff]  ;;  %v951_v40 = vld [vmem:[%s6038_s20 + $0x4d8] sm:$0xff] }
 0x290   : > { %4376 = vmatprep.subr.bf16.mxu1 %v4949_v63  ;;  %v4997_v63 = vcombine.high %v911_v54, %v915_v57 }
 0x292   : > { %4213 = vmatpush1.bf16.msra.mxu0 %v4946_v9  ;;  %v4994_v9 = vcombine.low %v910_v52, %v914_v53  ;;  %v959_v52 = vld [vmem:[%s6038_s20 + $0x518] sm:$0xff] }
 0x293   : > { %4377 = vmatpush1.bf16.msra.mxu1 %v4948_v10  ;;  %4214 = vmatprep.subr.bf16.mxu0 %v4955_v11  ;;  %v4996_v10 = vcombine.low %v911_v54, %v915_v57  ;;  %v5003_v11 = vcombine.high %v918_v0, %v922_v4  ;;  %v963_v53 = vld [vmem:[%s6038_s20 + $0x538] sm:$0xff]  ;;  %v5034_v54 = vcombine.low %v950_v39, %v954_v3 }
 0x294   : > { %4378 = vmatprep.subr.bf16.mxu1 %v4957_v15  ;;  %v5005_v15 = vcombine.high %v919_v6, %v923_v8 }
 0x296   : > { %4215 = vmatpush1.bf16.msra.mxu0 %v4954_v23  ;;  %v5002_v23 = vcombine.low %v918_v0, %v922_v4  ;;  %v967_v0 = vld [vmem:[%s6038_s20 + $0x558] sm:$0xff] }
 0x297   : > { %4379 = vmatpush1.bf16.msra.mxu1 %v4956_v24  ;;  %4216 = vmatprep.subr.bf16.mxu0 %v4963_v25  ;;  %v5004_v24 = vcombine.low %v919_v6, %v923_v8  ;;  %v5011_v25 = vcombine.high %v926_v17, %v930_v19  ;;  %v971_v4 = vld [vmem:[%s6038_s20 + $0x578] sm:$0xff]  ;;  %v5044_v8 = vcombine.low %v959_v52, %v963_v53 }
 0x298   : > { %4380 = vmatprep.subr.bf16.mxu1 %v4965_v26  ;;  %v5013_v26 = vcombine.high %v927_v20, %v931_v21  ;;  %v975_v17 = vld [vmem:[%s6038_s20 + $0x598] sm:$0xff] }
 0x299   : > { %v979_v19 = vld [vmem:[%s6038_s20 + $0x5b8] sm:$0xff] }
 0x29a   : > { %4217 = vmatpush1.bf16.msra.mxu0 %v4962_v31  ;;  %v939_v31 = vld [vmem:[%s6038_s20 + $0x478] sm:$0xff] }
 0x29b   : > { %4381 = vmatpush1.bf16.msra.mxu1 %v4964_v61  ;;  %4218 = vmatprep.subr.bf16.mxu0 %v4971_v45  ;;  %v5012_v61 = vcombine.low %v927_v20, %v931_v21  ;;  %v5019_v45 = vcombine.high %v934_v27, %v938_v28  ;;  %v5021_v33 = vcombine.high %v935_v30, %v939_v31 }
 0x29c   : > { %4382 = vmatprep.subr.bf16.mxu1 %v4973_v13  ;;  %v942_v13 = vld [vmem:[%s6038_s20 + $0x490] sm:$0xff]  ;;  %v5052_v21 = vcombine.low %v967_v0, %v971_v4 }
 0x29d   : > { %v5026_v41 = vcombine.low %v942_v13, %v946_v32 }
 0x29e   : > { %4219 = vmatpush1.bf16.msra.mxu0 %v4970_v36  ;;  %v5018_v36 = vcombine.low %v934_v27, %v938_v28  ;;  %v983_v27 = vld [vmem:[%s6038_s20 + $0x5d8] sm:$0xff] }
 0x29f   : > { %4383 = vmatpush1.bf16.msra.mxu1 %v4972_v59  ;;  %4220 = vmatprep.subr.bf16.mxu0 %v4979_v37  ;;  %v5020_v59 = vcombine.low %v935_v30, %v939_v31  ;;  %v5027_v37 = vcombine.high %v942_v13, %v946_v32  ;;  %v987_v28 = vld [vmem:[%s6038_s20 + $0x5f8] sm:$0xff]  ;;  %v5060_v30 = vcombine.low %v975_v17, %v979_v19  ;;  %v994_v13 = vld [vmem:[%s6038_s20 + $0x630] sm:$0xff] }
 0x2a0   : > { %4384 = vmatprep.subr.bf16.mxu1 %v4981_v38  ;;  %v5029_v38 = vcombine.high %v943_v34, %v947_v35  ;;  %v991_v32 = vld [vmem:[%s6038_s20 + $0x618] sm:$0xff] }
 0x2a2   : > { %4221 = vmatpush1.bf16.msra.mxu0 %v4978_v47  ;;  %v5028_v47 = vcombine.low %v943_v34, %v947_v35  ;;  %v5068_v35 = vcombine.low %v983_v27, %v987_v28 }
 0x2a3   : > { %4385 = vmatpush1.bf16.msra.mxu1 %v4980_v49  ;;  %4222 = vmatprep.subr.bf16.mxu0 %v4987_v51  ;;  %v5035_v49 = vcombine.high %v950_v39, %v954_v3  ;;  %v958_v51 = vld [vmem:[%s6038_s20 + $0x510] sm:$0xff]  ;;  %v999_v39 = vld [vmem:[%s6038_s20 + $0x658] sm:$0xff] }
 0x2a4   : > { %4386 = vmatprep.subr.bf16.mxu1 %v4989_v18  ;;  %v962_v18 = vld [vmem:[%s6038_s20 + $0x530] sm:$0xff]  ;;  %v1003_v3 = vld [vmem:[%s6038_s20 + $0x678] sm:$0xff] }
 0x2a5   : > { %v5042_v6 = vcombine.low %v958_v51, %v962_v18 }
 0x2a6   : > { %4223 = vmatpush1.bf16.msra.mxu0 %v4986_v58  ;;  %v5043_v58 = vcombine.high %v958_v51, %v962_v18  ;;  %v1007_v51 = vld [vmem:[%s6038_s20 + $0x698] sm:$0xff] }
 0x2a7   : > { %4387 = vmatpush1.bf16.msra.mxu1 %v4988_v60  ;;  %4224 = vmatprep.subr.bf16.mxu0 %v4995_v62  ;;  %v5045_v60 = vcombine.high %v959_v52, %v963_v53  ;;  %v966_v62 = vld [vmem:[%s6038_s20 + $0x550] sm:$0xff]  ;;  %v1011_v18 = vld [vmem:[%s6038_s20 + $0x6b8] sm:$0xff]  ;;  %v5084_v53 = vcombine.low %v999_v39, %v1003_v3 }
 0x2a8   : > { %4388 = vmatprep.subr.bf16.mxu1 %v4997_v63  ;;  %v970_v63 = vld [vmem:[%s6038_s20 + $0x570] sm:$0xff] }
 0x2a9   : > { %v5050_v20 = vcombine.low %v966_v62, %v970_v63 }
 0x2aa   : > { %4225 = vmatpush1.bf16.msra.mxu0 %v4994_v9  ;;  %v5051_v9 = vcombine.high %v966_v62, %v970_v63  ;;  %v1015_v62 = vld [vmem:[%s6038_s20 + $0x6d8] sm:$0xff] }
 0x2ab   : > { %4389 = vmatpush1.bf16.msra.mxu1 %v4996_v10  ;;  %4226 = vmatprep.subr.bf16.mxu0 %v5003_v11  ;;  %v5053_v10 = vcombine.high %v967_v0, %v971_v4  ;;  %v974_v11 = vld [vmem:[%s6038_s20 + $0x590] sm:$0xff]  ;;  %v1019_v63 = vld [vmem:[%s6038_s20 + $0x6f8] sm:$0xff]  ;;  %v5092_v4 = vcombine.low %v1007_v51, %v1011_v18 }
 0x2ac   : > { %4390 = vmatprep.subr.bf16.mxu1 %v5005_v15  ;;  %v978_v15 = vld [vmem:[%s6038_s20 + $0x5b0] sm:$0xff] }
 0x2ae   : > { %4227 = vmatpush1.bf16.msra.mxu0 %v5002_v23  ;;  %v5059_v23 = vcombine.high %v974_v11, %v978_v15 }
 0x2af   : > { %4391 = vmatpush1.bf16.msra.mxu1 %v5004_v24  ;;  %4237 = vmatprep.subr.bf16.mxu0 %v5011_v25  ;;  %v5061_v24 = vcombine.high %v975_v17, %v979_v19  ;;  %v982_v25 = vld [vmem:[%s6038_s20 + $0x5d0] sm:$0xff]  ;;  %v5100_v19 = vcombine.low %v1015_v62, %v1019_v63 }
 0x2b0   : > { %4401 = vmatprep.subr.bf16.mxu1 %v5013_v26  ;;  %v986_v26 = vld [vmem:[%s6038_s20 + $0x5f0] sm:$0xff] }
 0x2b1   : > { %4229 = vmatmul.mubr.bf16.vlgmr.msra.gmra.mrb[12].mxu0 %v6164_v14  ;;  %v5067_v31 = vcombine.high %v982_v25, %v986_v26  ;;  %v5066_v34 = vcombine.low %v982_v25, %v986_v26  ;;  %v1031_v25 = vld [vmem:[%s6038_s20 + $0x758] sm:$0xff] }
 0x2b2   : > { %4393 = vmatmul.mubr.bf16.vlgmr.msra.gmra.mrb[12].mxu1 %v6164_v14  ;;  %4238 = vmatpush1.bf16.msra.mxu0 %v5010_v29  ;;  %v955_v14 = vld [vmem:[%s6038_s20 + $0x4f8] sm:$0xff]  ;;  %v5058_v29 = vcombine.low %v974_v11, %v978_v15 }
 0x2b3   : > { %4269 = vmatprep.mubr.bf16.mxu0 %v6174_v22  ;;  %4402 = vmatpush1.bf16.msra.mxu1 %v5012_v61  ;;  %v5036_v57 = vcombine.low %v951_v40, %v955_v14  ;;  %v5069_v61 = vcombine.high %v983_v27, %v987_v28  ;;  %v1023_v11 = vld [vmem:[%s6038_s20 + $0x718] sm:$0xff] }
 0x2b4   : > { %4433 = vmatprep.mubr.bf16.mxu1 %v6174_v22  ;;  %4239 = vmatprep.subr.bf16.mxu0 %v5019_v45  ;;  %v5037_v22 = vcombine.high %v951_v40, %v955_v14  ;;  %v990_v45 = vld [vmem:[%s6038_s20 + $0x610] sm:$0xff]  ;;  %v1027_v15 = vld [vmem:[%s6038_s20 + $0x738] sm:$0xff] }
 0x2b5   : > { %4403 = vmatprep.subr.bf16.mxu1 %v5021_v33  ;;  %v995_v33 = vld [vmem:[%s6038_s20 + $0x638] sm:$0xff]  ;;  %v5074_v40 = vcombine.low %v990_v45, %v994_v13  ;;  %v5108_v28 = vcombine.low %v1023_v11, %v1027_v15 }
 0x2b6   : > { %4240 = vmatpush1.bf16.msra.mxu0 %v5018_v36  ;;  %v5075_v36 = vcombine.high %v990_v45, %v994_v13  ;;  %v5076_v14 = vcombine.low %v991_v32, %v995_v33  ;;  %v1035_v26 = vld [vmem:[%s6038_s20 + $0x778] sm:$0xff] }
 0x2b7   : > { %4404 = vmatpush1.bf16.msra.mxu1 %v5020_v59  ;;  %4241 = vmatprep.subr.bf16.mxu0 %v5027_v37  ;;  %v5077_v59 = vcombine.high %v991_v32, %v995_v33  ;;  %v998_v37 = vld [vmem:[%s6038_s20 + $0x650] sm:$0xff]  ;;  %v1039_v45 = vld [vmem:[%s6038_s20 + $0x798] sm:$0xff]  ;;  %v5116_v33 = vcombine.low %v1031_v25, %v1035_v26 }
 0x2b8   : > { %4405 = vmatprep.subr.bf16.mxu1 %v5029_v38  ;;  %v1002_v38 = vld [vmem:[%s6038_s20 + $0x670] sm:$0xff]  ;;  %v1043_v13 = vld [vmem:[%s6038_s20 + $0x7b8] sm:$0xff] }
 0x2b9   : > { %v5082_v52 = vcombine.low %v998_v37, %v1002_v38 }
 0x2ba   : > { %4242 = vmatpush1.bf16.msra.mxu0 %v5026_v41  ;;  %v5083_v41 = vcombine.high %v998_v37, %v1002_v38  ;;  %v1047_v37 = vld [vmem:[%s6038_s20 + $0x7d8] sm:$0xff] }
 0x2bb   : > { %4406 = vmatpush1.bf16.msra.mxu1 %v5028_v47  ;;  %4243 = vmatprep.subr.bf16.mxu0 %v5035_v49  ;;  %v5085_v47 = vcombine.high %v999_v39, %v1003_v3  ;;  %v1006_v49 = vld [vmem:[%s6038_s20 + $0x690] sm:$0xff]  ;;  %v1051_v38 = vld [vmem:[%s6038_s20 + $0x7f8] sm:$0xff]  ;;  %v5124_v3 = vcombine.low %v1039_v45, %v1043_v13 }
 0x2bc   : > { %4407 = vmatprep.subr.bf16.mxu1 %v5037_v22  ;;  %v1010_v22 = vld [vmem:[%s6038_s20 + $0x6b0] sm:$0xff] }
 0x2bd   : > { %v5090_v0 = vcombine.low %v1006_v49, %v1010_v22 }
 0x2be   : > { %4244 = vmatpush1.bf16.msra.mxu0 %v5034_v54  ;;  %v5091_v54 = vcombine.high %v1006_v49, %v1010_v22  ;;  %v1055_v49 = vld [vmem:[%s6038_s20 + $0x818] sm:$0xff] }
 0x2bf   : > { %4408 = vmatpush1.bf16.msra.mxu1 %v5036_v57  ;;  %4245 = vmatprep.subr.bf16.mxu0 %v5043_v58  ;;  %v5093_v57 = vcombine.high %v1007_v51, %v1011_v18  ;;  %v1014_v58 = vld [vmem:[%s6038_s20 + $0x6d0] sm:$0xff]  ;;  %v1059_v22 = vld [vmem:[%s6038_s20 + $0x838] sm:$0xff]  ;;  %v5132_v18 = vcombine.low %v1047_v37, %v1051_v38 }
 0x2c0   : > { %4409 = vmatprep.subr.bf16.mxu1 %v5045_v60  ;;  %v1018_v60 = vld [vmem:[%s6038_s20 + $0x6f0] sm:$0xff] }
 0x2c1   : > { %v5098_v17 = vcombine.low %v1014_v58, %v1018_v60 }
 0x2c2   : > { %4246 = vmatpush1.bf16.msra.mxu0 %v5042_v6  ;;  %v5099_v6 = vcombine.high %v1014_v58, %v1018_v60  ;;  %v1063_v60 = vld [vmem:[%s6038_s20 + $0x858] sm:$0xff] }
 0x2c3   : > { %4410 = vmatpush1.bf16.msra.mxu1 %v5044_v8  ;;  %4247 = vmatprep.subr.bf16.mxu0 %v5051_v9  ;;  %v5101_v8 = vcombine.high %v1015_v62, %v1019_v63  ;;  %v1022_v9 = vld [vmem:[%s6038_s20 + $0x710] sm:$0xff]  ;;  %v1067_v62 = vld [vmem:[%s6038_s20 + $0x878] sm:$0xff]  ;;  %v5140_v63 = vcombine.low %v1055_v49, %v1059_v22 }
 0x2c4   : > { %4411 = vmatprep.subr.bf16.mxu1 %v5053_v10  ;;  %v1026_v10 = vld [vmem:[%s6038_s20 + $0x730] sm:$0xff] }
 0x2c5   : > { %v5106_v27 = vcombine.low %v1022_v9, %v1026_v10 }
 0x2c6   : > { %4248 = vmatpush1.bf16.msra.mxu0 %v5050_v20  ;;  %v5107_v20 = vcombine.high %v1022_v9, %v1026_v10  ;;  %v1071_v9 = vld [vmem:[%s6038_s20 + $0x898] sm:$0xff] }
 0x2c7   : > { %4412 = vmatpush1.bf16.msra.mxu1 %v5052_v21  ;;  %4249 = vmatprep.subr.bf16.mxu0 %v5059_v23  ;;  %v5109_v21 = vcombine.high %v1023_v11, %v1027_v15  ;;  %v1030_v23 = vld [vmem:[%s6038_s20 + $0x750] sm:$0xff]  ;;  %v1075_v10 = vld [vmem:[%s6038_s20 + $0x8b8] sm:$0xff]  ;;  %v5148_v15 = vcombine.low %v1063_v60, %v1067_v62 }
 0x2c8   : > { %4413 = vmatprep.subr.bf16.mxu1 %v5061_v24  ;;  %v1034_v24 = vld [vmem:[%s6038_s20 + $0x770] sm:$0xff] }
 0x2c9   : > { %v5114_v32 = vcombine.low %v1030_v23, %v1034_v24 }
 0x2ca   : > { %4250 = vmatpush1.bf16.msra.mxu0 %v5058_v29  ;;  %v5115_v29 = vcombine.high %v1030_v23, %v1034_v24  ;;  %v1079_v23 = vld [vmem:[%s6038_s20 + $0x8d8] sm:$0xff] }
 0x2cb   : > { %4414 = vmatpush1.bf16.msra.mxu1 %v5060_v30  ;;  %4251 = vmatprep.subr.bf16.mxu0 %v5067_v31  ;;  %v5117_v30 = vcombine.high %v1031_v25, %v1035_v26  ;;  %v1038_v31 = vld [vmem:[%s6038_s20 + $0x790] sm:$0xff]  ;;  %v5156_v25 = vcombine.low %v1071_v9, %v1075_v10 }
 0x2cc   : > { %4415 = vmatprep.subr.bf16.mxu1 %v5069_v61  ;;  %v1042_v61 = vld [vmem:[%s6038_s20 + $0x7b0] sm:$0xff] }
 0x2cd   : > { %v5122_v39 = vcombine.low %v1038_v31, %v1042_v61 }
 0x2ce   : > { %4252 = vmatpush1.bf16.msra.mxu0 %v5066_v34  ;;  %v5123_v34 = vcombine.high %v1038_v31, %v1042_v61 }
 0x2cf   : > { %4416 = vmatpush1.bf16.msra.mxu1 %v5068_v35  ;;  %4253 = vmatprep.subr.bf16.mxu0 %v5075_v36  ;;  %v5125_v35 = vcombine.high %v1039_v45, %v1043_v13  ;;  %v1046_v36 = vld [vmem:[%s6038_s20 + $0x7d0] sm:$0xff] }
 0x2d0   : > { %4417 = vmatprep.subr.bf16.mxu1 %v5077_v59  ;;  %v1050_v59 = vld [vmem:[%s6038_s20 + $0x7f0] sm:$0xff] }
 0x2d1   : > { %v5130_v51 = vcombine.low %v1046_v36, %v1050_v59 }
 0x2d2   : > { %4254 = vmatpush1.bf16.msra.mxu0 %v5074_v40  ;;  %v5131_v40 = vcombine.high %v1046_v36, %v1050_v59 }
 0x2d3   : > { %4418 = vmatpush1.bf16.msra.mxu1 %v5076_v14  ;;  %4255 = vmatprep.subr.bf16.mxu0 %v5083_v41  ;;  %v5133_v14 = vcombine.high %v1047_v37, %v1051_v38  ;;  %v1054_v41 = vld [vmem:[%s6038_s20 + $0x810] sm:$0xff] }
 0x2d4   : > { %4419 = vmatprep.subr.bf16.mxu1 %v5085_v47  ;;  %v1058_v47 = vld [vmem:[%s6038_s20 + $0x830] sm:$0xff] }
 0x2d5   : > { %v5138_v58 = vcombine.low %v1054_v41, %v1058_v47 }
 0x2d6   : > { %4256 = vmatpush1.bf16.msra.mxu0 %v5082_v52  ;;  %v5139_v52 = vcombine.high %v1054_v41, %v1058_v47 }
 0x2d7   : > { %4420 = vmatpush1.bf16.msra.mxu1 %v5084_v53  ;;  %4257 = vmatprep.subr.bf16.mxu0 %v5091_v54  ;;  %v5141_v53 = vcombine.high %v1055_v49, %v1059_v22  ;;  %v1062_v54 = vld [vmem:[%s6038_s20 + $0x850] sm:$0xff] }
 0x2d8   : > { %4421 = vmatprep.subr.bf16.mxu1 %v5093_v57  ;;  %v1066_v57 = vld [vmem:[%s6038_s20 + $0x870] sm:$0xff] }
 0x2d9   : > { %v5146_v11 = vcombine.low %v1062_v54, %v1066_v57 }
 0x2da   : > { %4258 = vmatpush1.bf16.msra.mxu0 %v5090_v0  ;;  %v5147_v0 = vcombine.high %v1062_v54, %v1066_v57 }
 0x2db   : > { %4422 = vmatpush1.bf16.msra.mxu1 %v5092_v4  ;;  %4259 = vmatprep.subr.bf16.mxu0 %v5099_v6  ;;  %v1070_v4 = vld [vmem:[%s6038_s20 + $0x890] sm:$0xff] }
 0x2dc   : > { %4423 = vmatprep.subr.bf16.mxu1 %v5101_v8  ;;  %v1074_v6 = vld [vmem:[%s6038_s20 + $0x8b0] sm:$0xff]  ;;  %v5149_v8 = vcombine.high %v1063_v60, %v1067_v62 }
 0x2dd   : > { %v5154_v24 = vcombine.low %v1070_v4, %v1074_v6  ;;  %v1118_v62 = vld [vmem:[%s6038_s20 + $0xa10] sm:$0xff] }
 0x2de   : > { %4260 = vmatpush1.bf16.msra.mxu0 %v5098_v17  ;;  %v5155_v17 = vcombine.high %v1070_v4, %v1074_v6  ;;  %v1123_v4 = vld [vmem:[%s6038_s20 + $0xa38] sm:$0xff] }
 0x2df   : > { %4424 = vmatpush1.bf16.msra.mxu1 %v5100_v19  ;;  %4261 = vmatprep.subr.bf16.mxu0 %v5107_v20  ;;  %v5157_v19 = vcombine.high %v1071_v9, %v1075_v10  ;;  %v1078_v20 = vld [vmem:[%s6038_s20 + $0x8d0] sm:$0xff] }
 0x2e0   : > { %4425 = vmatprep.subr.bf16.mxu1 %v5109_v21  ;;  %v1082_v21 = vld [vmem:[%s6038_s20 + $0x8f0] sm:$0xff] }
 0x2e1   : > { %v5163_v26 = vcombine.high %v1078_v20, %v1082_v21  ;;  %v5162_v31 = vcombine.low %v1078_v20, %v1082_v21 }
 0x2e2   : > { %4262 = vmatpush1.bf16.msra.mxu0 %v5106_v27  ;;  %v1086_v27 = vld [vmem:[%s6038_s20 + $0x910] sm:$0xff] }
 0x2e3   : > { %4426 = vmatpush1.bf16.msra.mxu1 %v5108_v28  ;;  %4263 = vmatprep.subr.bf16.mxu0 %v5115_v29  ;;  %v1090_v28 = vld [vmem:[%s6038_s20 + $0x930] sm:$0xff]  ;;  %v1087_v29 = vld [vmem:[%s6038_s20 + $0x918] sm:$0xff] }
 0x2e4   : > { %4427 = vmatprep.subr.bf16.mxu1 %v5117_v30  ;;  %v1091_v30 = vld [vmem:[%s6038_s20 + $0x938] sm:$0xff]  ;;  %v5171_v45 = vcombine.high %v1086_v27, %v1090_v28  ;;  %v5170_v36 = vcombine.low %v1086_v27, %v1090_v28 }
 0x2e5   : > { %v5173_v13 = vcombine.high %v1087_v29, %v1091_v30  ;;  %v5172_v59 = vcombine.low %v1087_v29, %v1091_v30 }
 0x2e6   : > { %4264 = vmatpush1.bf16.msra.mxu0 %v5114_v32  ;;  %v1094_v32 = vld [vmem:[%s6038_s20 + $0x950] sm:$0xff] }
 0x2e7   : > { %4428 = vmatpush1.bf16.msra.mxu1 %v5116_v33  ;;  %4265 = vmatprep.subr.bf16.mxu0 %v5123_v34  ;;  %v1098_v33 = vld [vmem:[%s6038_s20 + $0x970] sm:$0xff]  ;;  %v1095_v34 = vld [vmem:[%s6038_s20 + $0x958] sm:$0xff] }
 0x2e8   : > { %4429 = vmatprep.subr.bf16.mxu1 %v5125_v35  ;;  %v1099_v35 = vld [vmem:[%s6038_s20 + $0x978] sm:$0xff]  ;;  %v5179_v37 = vcombine.high %v1094_v32, %v1098_v33  ;;  %v5178_v41 = vcombine.low %v1094_v32, %v1098_v33 }
 0x2e9   : > { %v5181_v38 = vcombine.high %v1095_v34, %v1099_v35  ;;  %v5180_v47 = vcombine.low %v1095_v34, %v1099_v35 }
 0x2ea   : > { %4266 = vmatpush1.bf16.msra.mxu0 %v5122_v39  ;;  %v1102_v39 = vld [vmem:[%s6038_s20 + $0x990] sm:$0xff] }
 0x2eb   : > { %4430 = vmatpush1.bf16.msra.mxu1 %v5124_v3  ;;  %4267 = vmatprep.subr.bf16.mxu0 %v5131_v40  ;;  %v1106_v3 = vld [vmem:[%s6038_s20 + $0x9b0] sm:$0xff]  ;;  %v1103_v40 = vld [vmem:[%s6038_s20 + $0x998] sm:$0xff] }
 0x2ec   : > { %4431 = vmatprep.subr.bf16.mxu1 %v5133_v14  ;;  %v1107_v14 = vld [vmem:[%s6038_s20 + $0x9b8] sm:$0xff]  ;;  %v5187_v49 = vcombine.high %v1102_v39, %v1106_v3  ;;  %v5186_v54 = vcombine.low %v1102_v39, %v1106_v3 }
 0x2ed   : > { %v5189_v22 = vcombine.high %v1103_v40, %v1107_v14  ;;  %v5188_v57 = vcombine.low %v1103_v40, %v1107_v14 }
 0x2ee   : > { %4268 = vmatpush1.bf16.msra.mxu0 %v5130_v51  ;;  %v1110_v51 = vld [vmem:[%s6038_s20 + $0x9d0] sm:$0xff] }
 0x2ef   : > { %4432 = vmatpush1.bf16.msra.mxu1 %v5132_v18  ;;  %4278 = vmatprep.subr.bf16.mxu0 %v5139_v52  ;;  %v1114_v18 = vld [vmem:[%s6038_s20 + $0x9f0] sm:$0xff]  ;;  %v1111_v52 = vld [vmem:[%s6038_s20 + $0x9d8] sm:$0xff] }
 0x2f0   : > { %4442 = vmatprep.subr.bf16.mxu1 %v5141_v53  ;;  %v1115_v53 = vld [vmem:[%s6038_s20 + $0x9f8] sm:$0xff]  ;;  %v5194_v6 = vcombine.low %v1110_v51, %v1114_v18 }
 0x2f1   : > { %4270 = vmatmul.mubr.bf16.vlgmr.msra.gmra.mrb[12].mxu0 %v6260_v2  ;;  %v5197_v60 = vcombine.high %v1111_v52, %v1115_v53 }
 0x2f2   : > { %4434 = vmatmul.mubr.bf16.vlgmr.msra.gmra.mrb[12].mxu1 %v6260_v2  ;;  %4279 = vmatpush1.bf16.msra.mxu0 %v5138_v58  ;;  %v1083_v2 = vld [vmem:[%s6038_s20 + $0x8f8] sm:$0xff]  ;;  %v5195_v58 = vcombine.high %v1110_v51, %v1114_v18 }
 0x2f3   : > { %4310 = vmatprep.mubr.bf16.mxu0 %v6266_v16  ;;  %4443 = vmatpush1.bf16.msra.mxu1 %v5140_v63  ;;  %v5164_v61 = vcombine.low %v1079_v23, %v1083_v2  ;;  %v1122_v63 = vld [vmem:[%s6038_s20 + $0xa30] sm:$0xff] }
 0x2f4   : > { %4474 = vmatprep.mubr.bf16.mxu1 %v6266_v16  ;;  %4280 = vmatprep.subr.bf16.mxu0 %v5147_v0  ;;  %v5165_v16 = vcombine.high %v1079_v23, %v1083_v2  ;;  %v1119_v0 = vld [vmem:[%s6038_s20 + $0xa18] sm:$0xff]  ;;  %v5203_v9 = vcombine.high %v1118_v62, %v1122_v63  ;;  %v5202_v20 = vcombine.low %v1118_v62, %v1122_v63 }
 0x2f5   : > { %4444 = vmatprep.subr.bf16.mxu1 %v5149_v8  ;;  %v5196_v8 = vcombine.low %v1111_v52, %v1115_v53  ;;  %v5205_v10 = vcombine.high %v1119_v0, %v1123_v4  ;;  %v5204_v21 = vcombine.low %v1119_v0, %v1123_v4 }
 0x2f6   : > { %4281 = vmatpush1.bf16.msra.mxu0 %v5146_v11  ;;  %v1126_v11 = vld [vmem:[%s6038_s20 + $0xa50] sm:$0xff] }
 0x2f7   : > { %4445 = vmatpush1.bf16.msra.mxu1 %v5148_v15  ;;  %4282 = vmatprep.subr.bf16.mxu0 %v5155_v17  ;;  %v1130_v15 = vld [vmem:[%s6038_s20 + $0xa70] sm:$0xff]  ;;  %v1127_v17 = vld [vmem:[%s6038_s20 + $0xa58] sm:$0xff] }
 0x2f8   : > { %4446 = vmatprep.subr.bf16.mxu1 %v5157_v19  ;;  %v1131_v19 = vld [vmem:[%s6038_s20 + $0xa78] sm:$0xff]  ;;  %v5211_v23 = vcombine.high %v1126_v11, %v1130_v15  ;;  %v5210_v27 = vcombine.low %v1126_v11, %v1130_v15 }
 0x2f9   : > { %v5213_v2 = vcombine.high %v1127_v17, %v1131_v19  ;;  %v5212_v28 = vcombine.low %v1127_v17, %v1131_v19 }
 0x2fa   : > { %4283 = vmatpush1.bf16.msra.mxu0 %v5154_v24  ;;  %v1134_v24 = vld [vmem:[%s6038_s20 + $0xa90] sm:$0xff] }
 0x2fb   : > { %4447 = vmatpush1.bf16.msra.mxu1 %v5156_v25  ;;  %4284 = vmatprep.subr.bf16.mxu0 %v5163_v26  ;;  %v1138_v25 = vld [vmem:[%s6038_s20 + $0xab0] sm:$0xff]  ;;  %v1135_v26 = vld [vmem:[%s6038_s20 + $0xa98] sm:$0xff] }
 0x2fc   : > { %4448 = vmatprep.subr.bf16.mxu1 %v5165_v16  ;;  %v1139_v16 = vld [vmem:[%s6038_s20 + $0xab8] sm:$0xff]  ;;  %v5219_v29 = vcombine.high %v1134_v24, %v1138_v25  ;;  %v5218_v32 = vcombine.low %v1134_v24, %v1138_v25 }
 0x2fd   : > { %v5221_v30 = vcombine.high %v1135_v26, %v1139_v16  ;;  %v5220_v33 = vcombine.low %v1135_v26, %v1139_v16 }
 0x2fe   : > { %4285 = vmatpush1.bf16.msra.mxu0 %v5162_v31  ;;  %v1142_v31 = vld [vmem:[%s6038_s20 + $0xad0] sm:$0xff] }
 0x2ff   : > { %4449 = vmatpush1.bf16.msra.mxu1 %v5164_v61  ;;  %4286 = vmatprep.subr.bf16.mxu0 %v5171_v45  ;;  %v1146_v61 = vld [vmem:[%s6038_s20 + $0xaf0] sm:$0xff]  ;;  %v1143_v45 = vld [vmem:[%s6038_s20 + $0xad8] sm:$0xff] }
 0x300   : > { %4450 = vmatprep.subr.bf16.mxu1 %v5173_v13  ;;  %v1147_v13 = vld [vmem:[%s6038_s20 + $0xaf8] sm:$0xff]  ;;  %v5227_v34 = vcombine.high %v1142_v31, %v1146_v61  ;;  %v5226_v39 = vcombine.low %v1142_v31, %v1146_v61 }
 0x301   : > { %v5229_v35 = vcombine.high %v1143_v45, %v1147_v13  ;;  %v5228_v3 = vcombine.low %v1143_v45, %v1147_v13  ;;  %v1195_v31 = vld [vmem:[%s6038_s20 + $0xc78] sm:$0xff]  ;;  %v1198_v13 = vld [vmem:[%s6038_s20 + $0xc90] sm:$0xff] }
 0x302   : > { %4287 = vmatpush1.bf16.msra.mxu0 %v5170_v36  ;;  %v1150_v36 = vld [vmem:[%s6038_s20 + $0xb10] sm:$0xff] }
 0x303   : > { %4451 = vmatpush1.bf16.msra.mxu1 %v5172_v59  ;;  %4288 = vmatprep.subr.bf16.mxu0 %v5179_v37  ;;  %v1154_v59 = vld [vmem:[%s6038_s20 + $0xb30] sm:$0xff]  ;;  %v1151_v37 = vld [vmem:[%s6038_s20 + $0xb18] sm:$0xff] }
 0x304   : > { %4452 = vmatprep.subr.bf16.mxu1 %v5181_v38  ;;  %v1155_v38 = vld [vmem:[%s6038_s20 + $0xb38] sm:$0xff]  ;;  %v5235_v40 = vcombine.high %v1150_v36, %v1154_v59  ;;  %v5234_v51 = vcombine.low %v1150_v36, %v1154_v59 }
 0x305   : > { %v5237_v14 = vcombine.high %v1151_v37, %v1155_v38  ;;  %v5236_v18 = vcombine.low %v1151_v37, %v1155_v38 }
 0x306   : > { %4289 = vmatpush1.bf16.msra.mxu0 %v5178_v41  ;;  %v1158_v41 = vld [vmem:[%s6038_s20 + $0xb50] sm:$0xff] }
 0x307   : > { %4453 = vmatpush1.bf16.msra.mxu1 %v5180_v47  ;;  %4290 = vmatprep.subr.bf16.mxu0 %v5187_v49  ;;  %v1162_v47 = vld [vmem:[%s6038_s20 + $0xb70] sm:$0xff]  ;;  %v1159_v49 = vld [vmem:[%s6038_s20 + $0xb58] sm:$0xff] }
 0x308   : > { %4454 = vmatprep.subr.bf16.mxu1 %v5189_v22  ;;  %v1163_v22 = vld [vmem:[%s6038_s20 + $0xb78] sm:$0xff]  ;;  %v5243_v52 = vcombine.high %v1158_v41, %v1162_v47  ;;  %v5242_v62 = vcombine.low %v1158_v41, %v1162_v47 }
 0x309   : > { %v5245_v53 = vcombine.high %v1159_v49, %v1163_v22  ;;  %v5244_v63 = vcombine.low %v1159_v49, %v1163_v22  ;;  %v1214_v49 = vld [vmem:[%s6038_s20 + $0xd10] sm:$0xff] }
 0x30a   : > { %4291 = vmatpush1.bf16.msra.mxu0 %v5186_v54  ;;  %v1166_v54 = vld [vmem:[%s6038_s20 + $0xb90] sm:$0xff] }
 0x30b   : > { %4455 = vmatpush1.bf16.msra.mxu1 %v5188_v57  ;;  %4292 = vmatprep.subr.bf16.mxu0 %v5195_v58  ;;  %v1170_v57 = vld [vmem:[%s6038_s20 + $0xbb0] sm:$0xff]  ;;  %v1167_v58 = vld [vmem:[%s6038_s20 + $0xb98] sm:$0xff] }
 0x30c   : > { %4456 = vmatprep.subr.bf16.mxu1 %v5197_v60  ;;  %v1171_v60 = vld [vmem:[%s6038_s20 + $0xbb8] sm:$0xff]  ;;  %v5251_v0 = vcombine.high %v1166_v54, %v1170_v57  ;;  %v5250_v11 = vcombine.low %v1166_v54, %v1170_v57  ;;  %v1218_v22 = vld [vmem:[%s6038_s20 + $0xd30] sm:$0xff] }
 0x30d   : > { %v5253_v4 = vcombine.high %v1167_v58, %v1171_v60  ;;  %v5252_v15 = vcombine.low %v1167_v58, %v1171_v60  ;;  %v5299_v54 = vcombine.high %v1214_v49, %v1218_v22  ;;  %v1222_v58 = vld [vmem:[%s6038_s20 + $0xd50] sm:$0xff] }
 0x30e   : > { %4293 = vmatpush1.bf16.msra.mxu0 %v5194_v6  ;;  %v1174_v6 = vld [vmem:[%s6038_s20 + $0xbd0] sm:$0xff] }
 0x30f   : > { %4457 = vmatpush1.bf16.msra.mxu1 %v5196_v8  ;;  %4294 = vmatprep.subr.bf16.mxu0 %v5203_v9  ;;  %v1178_v8 = vld [vmem:[%s6038_s20 + $0xbf0] sm:$0xff]  ;;  %v1175_v9 = vld [vmem:[%s6038_s20 + $0xbd8] sm:$0xff] }
 0x310   : > { %4458 = vmatprep.subr.bf16.mxu1 %v5205_v10  ;;  %v1179_v10 = vld [vmem:[%s6038_s20 + $0xbf8] sm:$0xff]  ;;  %v5259_v17 = vcombine.high %v1174_v6, %v1178_v8  ;;  %v5258_v24 = vcombine.low %v1174_v6, %v1178_v8  ;;  %v1226_v60 = vld [vmem:[%s6038_s20 + $0xd70] sm:$0xff] }
 0x311   : > { %v5261_v19 = vcombine.high %v1175_v9, %v1179_v10  ;;  %v5260_v25 = vcombine.low %v1175_v9, %v1179_v10  ;;  %v6656_v6 = vld [vmem:[%s6046_s24] sm:$0xff]  ;;  %v5307_v9 = vcombine.high %v1222_v58, %v1226_v60 }
 0x312   : > { %4295 = vmatpush1.bf16.msra.mxu0 %v5202_v20  ;;  %v1182_v20 = vld [vmem:[%s6038_s20 + $0xc10] sm:$0xff] }
 0x313   : > { %4459 = vmatpush1.bf16.msra.mxu1 %v5204_v21  ;;  %4296 = vmatprep.subr.bf16.mxu0 %v5211_v23  ;;  %v1186_v21 = vld [vmem:[%s6038_s20 + $0xc30] sm:$0xff]  ;;  %v1183_v23 = vld [vmem:[%s6038_s20 + $0xc18] sm:$0xff] }
 0x314   : > { %4460 = vmatprep.subr.bf16.mxu1 %v5213_v2  ;;  %v1187_v2 = vld [vmem:[%s6038_s20 + $0xc38] sm:$0xff]  ;;  %v5267_v26 = vcombine.high %v1182_v20, %v1186_v21 }
 0x315   : > { %v5269_v16 = vcombine.high %v1183_v23, %v1187_v2  ;;  %v5268_v61 = vcombine.low %v1183_v23, %v1187_v2  ;;  %v1235_v23 = vld [vmem:[%s6038_s20 + $0xdb8] sm:$0xff] }
 0x316   : > { %4297 = vmatpush1.bf16.msra.mxu0 %v5210_v27  ;;  %v1190_v27 = vld [vmem:[%s6038_s20 + $0xc50] sm:$0xff] }
 0x317   : > { %4461 = vmatpush1.bf16.msra.mxu1 %v5212_v28  ;;  %4298 = vmatprep.subr.bf16.mxu0 %v5219_v29  ;;  %v1194_v28 = vld [vmem:[%s6038_s20 + $0xc70] sm:$0xff]  ;;  %v5266_v29 = vcombine.low %v1182_v20, %v1186_v21  ;;  %v1231_v21 = vld [vmem:[%s6038_s20 + $0xd98] sm:$0xff] }
 0x318   : > { %4462 = vmatprep.subr.bf16.mxu1 %v5221_v30  ;;  %v1191_v30 = vld [vmem:[%s6038_s20 + $0xc58] sm:$0xff]  ;;  %v5275_v45 = vcombine.high %v1190_v27, %v1194_v28  ;;  %v5274_v36 = vcombine.low %v1190_v27, %v1194_v28 }
 0x319   : > { %v5276_v59 = vcombine.low %v1191_v30, %v1195_v31 }
 0x31a   : > { %4299 = vmatpush1.bf16.msra.mxu0 %v5218_v32  ;;  %v1202_v32 = vld [vmem:[%s6038_s20 + $0xcb0] sm:$0xff] }
 0x31b   : > { %4463 = vmatpush1.bf16.msra.mxu1 %v5220_v33  ;;  %4300 = vmatprep.subr.bf16.mxu0 %v5227_v34  ;;  %v5277_v33 = vcombine.high %v1191_v30, %v1195_v31  ;;  %v1199_v34 = vld [vmem:[%s6038_s20 + $0xc98] sm:$0xff]  ;;  %v5283_v37 = vcombine.high %v1198_v13, %v1202_v32  ;;  %v4583_v31 = vrot.slane %v6656_v6, %v6135_v46 }
 0x31c   : > { %4464 = vmatprep.subr.bf16.mxu1 %v5229_v35  ;;  %v1203_v35 = vld [vmem:[%s6038_s20 + $0xcb8] sm:$0xff] }
 0x31d   : > { %v5285_v38 = vcombine.high %v1199_v34, %v1203_v35  ;;  %v5284_v41 = vcombine.low %v1199_v34, %v1203_v35 }
 0x31e   : > { %4301 = vmatpush1.bf16.msra.mxu0 %v5226_v39  ;;  %v1206_v39 = vld [vmem:[%s6038_s20 + $0xcd0] sm:$0xff] }
 0x31f   : > { %4465 = vmatpush1.bf16.msra.mxu1 %v5228_v3  ;;  %4302 = vmatprep.subr.bf16.mxu0 %v5235_v40  ;;  %v1210_v3 = vld [vmem:[%s6038_s20 + $0xcf0] sm:$0xff]  ;;  %v1207_v40 = vld [vmem:[%s6038_s20 + $0xcd8] sm:$0xff] }
 0x320   : > { %4466 = vmatprep.subr.bf16.mxu1 %v5237_v14  ;;  %v5282_v14 = vcombine.low %v1198_v13, %v1202_v32  ;;  %v5291_v47 = vcombine.high %v1206_v39, %v1210_v3  ;;  %v1238_v13 = vld [vmem:[%s6038_s20 + $0xdd0] sm:$0xff] }
 0x321   : > { %v1242_v32 = vld [vmem:[%s6038_s20 + $0xdf0] sm:$0xff] }
 0x322   : > { %4303 = vmatpush1.bf16.msra.mxu0 %v5234_v51  ;;  %v1215_v51 = vld [vmem:[%s6038_s20 + $0xd18] sm:$0xff] }
 0x323   : > { %4467 = vmatpush1.bf16.msra.mxu1 %v5236_v18  ;;  %4304 = vmatprep.subr.bf16.mxu0 %v5243_v52  ;;  %v1219_v18 = vld [vmem:[%s6038_s20 + $0xd38] sm:$0xff]  ;;  %v5290_v52 = vcombine.low %v1206_v39, %v1210_v3 }
 0x324   : > { %4468 = vmatprep.subr.bf16.mxu1 %v5245_v53  ;;  %v5301_v57 = vcombine.high %v1215_v51, %v1219_v18  ;;  %v5300_v8 = vcombine.low %v1215_v51, %v1219_v18  ;;  %v1246_v18 = vld [vmem:[%s6038_s20 + $0xe10] sm:$0xff] }
 0x326   : > { %4305 = vmatpush1.bf16.msra.mxu0 %v5242_v62  ;;  %v1223_v62 = vld [vmem:[%s6038_s20 + $0xd58] sm:$0xff] }
 0x327   : > { %4469 = vmatpush1.bf16.msra.mxu1 %v5244_v63  ;;  %4306 = vmatprep.subr.bf16.mxu0 %v5251_v0  ;;  %v1227_v63 = vld [vmem:[%s6038_s20 + $0xd78] sm:$0xff]  ;;  %v5298_v0 = vcombine.low %v1214_v49, %v1218_v22 }
 0x328   : > { %4470 = vmatprep.subr.bf16.mxu1 %v5253_v4  ;;  %v6653_v4 = vld [vmem:[%s6044_s4] sm:$0xff]  ;;  %v5309_v10 = vcombine.high %v1223_v62, %v1227_v63  ;;  %v5308_v27 = vcombine.low %v1223_v62, %v1227_v63 }
 0x329   : > { %v4537_v20 = vrot.slane %v6653_v4, %v6225_v1  ;;  %v4533_v2 = vrot.slane %v6653_v4, %v6135_v46 }
 0x32a   : > { %4307 = vmatpush1.bf16.msra.mxu0 %v5250_v11  ;;  %v1230_v11 = vld [vmem:[%s6038_s20 + $0xd90] sm:$0xff] }
 0x32b   : > { %4471 = vmatpush1.bf16.msra.mxu1 %v5252_v15  ;;  %4308 = vmatprep.subr.bf16.mxu0 %v5259_v17  ;;  %v1234_v15 = vld [vmem:[%s6038_s20 + $0xdb0] sm:$0xff]  ;;  %v4529_v17 = vrot.slane %v6653_v4, %v6130_v44 }
 0x32c   : > { %4472 = vmatprep.subr.bf16.mxu1 %v5261_v19  ;;  %v4579_v19 = vrot.slane %v6656_v6, %v6130_v44  ;;  %v4587_v44 = vrot.slane %v6656_v6, %v6225_v1  ;;  %v5315_v28 = vcombine.high %v1230_v11, %v1234_v15 }
 0x32e   : > { %4309 = vmatpush1.bf16.msra.mxu0 %v5258_v24  ;;  %v5766_v24 = vmov 1966171168  }
 0x32f   : > { %4473 = vmatpush1.bf16.msra.mxu1 %v5260_v25  ;;  %4319 = vmatprep.subr.bf16.mxu0 %v5267_v26  ;;  %v4653_v25 = vunpack.c.l.s4 %v5766_v24  ;;  %v4541_v26 = vrot.slane %v6653_v4, %v6140_v48 }
 0x330   : > { %4483 = vmatprep.subr.bf16.mxu1 %v5269_v16  ;;  %v5306_v16 = vcombine.low %v1222_v58, %v1226_v60  ;;  %v1251_v58 = vld [vmem:[%s6038_s20 + $0xe38] sm:$0xff] }
 0x331   : > { %4311 = vmatmul.mubr.bf16.vlgmr.msra.gmra.mrb[12].mxu0 %v6348_v56  ;;  %v4654_v39 = vunpack.c.0.s8 %v4653_v25 }
 0x332   : > { %4475 = vmatmul.mubr.bf16.vlgmr.msra.gmra.mrb[12].mxu1 %v6348_v56  ;;  %4320 = vmatpush1.bf16.msra.mxu0 %v5266_v29  ;;  %v1211_v56 = vld [vmem:[%s6038_s20 + $0xcf8] sm:$0xff] }
 0x333   : > { %4351 = vmatprep.mubr.bf16.mxu0 %v6354_v7  ;;  %4484 = vmatpush1.bf16.msra.mxu1 %v5268_v61  ;;  %v5292_v53 = vcombine.low %v1207_v40, %v1211_v56  ;;  %v4591_v61 = vrot.slane %v6656_v6, %v6140_v48  ;;  %v5316_v48 = vcombine.low %v1231_v21, %v1235_v23 }
 0x334   : > { %4515 = vmatprep.mubr.bf16.mxu1 %v6354_v7  ;;  %4321 = vmatprep.subr.bf16.mxu0 %v5275_v45  ;;  %v5293_v7 = vcombine.high %v1207_v40, %v1211_v56  ;;  %v5317_v45 = vcombine.high %v1231_v21, %v1235_v23  ;;  %v6687_v62 = vsub.s32 %v4654_v39, %v6127_v43  ;;  %v1259_v43 = vld [vmem:[%s6038_s20 + $0xe78] sm:$0xff] }
 0x335   : > { %4485 = vmatprep.subr.bf16.mxu1 %v5277_v33  ;;  %v1279_v39 = vld [vmem:[%s6038_s20 + $0xf18] sm:$0xff] }
 0x336   : > { %4322 = vmatpush1.bf16.msra.mxu0 %v5274_v36  ;;  %v5314_v36 = vcombine.low %v1230_v11, %v1234_v15 }
 0x337   : > { %4486 = vmatpush1.bf16.msra.mxu1 %v5276_v59  ;;  %4323 = vmatprep.subr.bf16.mxu0 %v5283_v37  ;;  %v1239_v59 = vld [vmem:[%s6038_s20 + $0xdd8] sm:$0xff] }
 0x338   : > { %4487 = vmatprep.subr.bf16.mxu1 %v5285_v38  ;;  %v1243_v37 = vld [vmem:[%s6038_s20 + $0xdf8] sm:$0xff] }
 0x339   : > { %v5325_v51 = vcombine.high %v1239_v59, %v1243_v37 }
 0x33a   : > { %4324 = vmatpush1.bf16.msra.mxu0 %v5282_v14 }
 0x33b   : > { %4488 = vmatpush1.bf16.msra.mxu1 %v5284_v41  ;;  %4325 = vmatprep.subr.bf16.mxu0 %v5291_v47 }
 0x33c   : > { %4489 = vmatprep.subr.bf16.mxu1 %v5293_v7  ;;  %v5323_v7 = vcombine.high %v1238_v13, %v1242_v32 }
 0x33e   : > { %4326 = vmatpush1.bf16.msra.mxu0 %v5290_v52  ;;  %v1250_v52 = vld [vmem:[%s6038_s20 + $0xe30] sm:$0xff] }
 0x33f   : > { %4490 = vmatpush1.bf16.msra.mxu1 %v5292_v53  ;;  %4327 = vmatprep.subr.bf16.mxu0 %v5299_v54 }
 0x340   : > { %4491 = vmatprep.subr.bf16.mxu1 %v5301_v57  ;;  %v1247_v57 = vld [vmem:[%s6038_s20 + $0xe18] sm:$0xff] }
 0x341   : > { %v5333_v15 = vcombine.high %v1247_v57, %v1251_v58  ;;  %v5332_v24 = vcombine.low %v1247_v57, %v1251_v58  ;;  %v1299_v57 = vld [vmem:[%s6038_s20 + $0xfb8] sm:$0xff] }
 0x342   : > { %4328 = vmatpush1.bf16.msra.mxu0 %v5298_v0  ;;  %v5322_v0 = vcombine.low %v1238_v13, %v1242_v32  ;;  %v1270_v13 = vld [vmem:[%s6038_s20 + $0xed0] sm:$0xff] }
 0x343   : > { %4492 = vmatpush1.bf16.msra.mxu1 %v5300_v8  ;;  %4329 = vmatprep.subr.bf16.mxu0 %v5307_v9  ;;  %v5324_v8 = vcombine.low %v1239_v59, %v1243_v37  ;;  %v5331_v9 = vcombine.high %v1246_v18, %v1250_v52  ;;  %v1274_v32 = vld [vmem:[%s6038_s20 + $0xef0] sm:$0xff] }
 0x344   : > { %v4025_v29 = vpop.f32.mrb[8].mxu0  ;;  %v4189_v30 = vpop.f32.mrb[8].mxu1  ;;  %4493 = vmatprep.subr.bf16.mxu1 %v5309_v10  ;;  %v1278_v37 = vld [vmem:[%s6038_s20 + $0xf10] sm:$0xff] }
 0x345   : > { %v4566_v33 = vmul.f32 %v4529_v17, %v4025_v29  ;;  %v4568_v34 = vmul.f32 %v4537_v20, %v4189_v30  ;;  %v4027_v1 = vpop.f32.mrb[9].mxu0  ;;  %v4191_v35 = vpop.f32.mrb[9].mxu1  ;;  %v1254_v17 = vld [vmem:[%s6038_s20 + $0xe50] sm:$0xff]  ;;  %v1255_v20 = vld [vmem:[%s6038_s20 + $0xe58] sm:$0xff] }
 0x346   : > { %v4567_v38 = vmul.f32 %v4533_v2, %v4027_v1  ;;  %v4569_v3 = vmul.f32 %v4541_v26, %v4191_v35  ;;  %v4029_v40 = vpop.f32.mrb[10].mxu0  ;;  %v4193_v46 = vpop.f32.mrb[10].mxu1  ;;  %4330 = vmatpush1.bf16.msra.mxu0 %v5306_v16  ;;  %v5330_v2 = vcombine.low %v1246_v18, %v1250_v52  ;;  %v5341_v16 = vcombine.high %v1255_v20, %v1259_v43  ;;  %v1267_v29 = vld [vmem:[%s6038_s20 + $0xeb8] sm:$0xff]  ;;  %v1294_v52 = vld [vmem:[%s6038_s20 + $0xf90] sm:$0xff] }
 0x347   : > { %v4616_v56 = vadd.f32 %v4579_v19, %v4566_v33  ;;  %v4618_v14 = vadd.f32 %v4587_v44, %v4568_v34  ;;  %4494 = vmatpush1.bf16.msra.mxu1 %v5308_v27  ;;  %v4030_v41 = vpop.f32.mrb[11].mxu0  ;;  %v4194_v47 = vpop.f32.mrb[11].mxu1  ;;  %4331 = vmatprep.subr.bf16.mxu0 %v5315_v28  ;;  %v1258_v19 = vld [vmem:[%s6038_s20 + $0xe70] sm:$0xff]  ;;  %v1263_v28 = vld [vmem:[%s6038_s20 + $0xe98] sm:$0xff]  ;;  %v5354_v40 = vcombine.low %v1270_v13, %v1274_v32 }
 0x348   : > { %v4617_v49 = vadd.f32 %v4583_v31, %v4567_v38  ;;  %v4619_v22 = vadd.f32 %v4591_v61, %v4569_v3  ;;  %4495 = vmatprep.subr.bf16.mxu1 %v5317_v45  ;;  %v5339_v25 = vcombine.high %v1254_v17, %v1258_v19  ;;  %v1262_v44 = vld [vmem:[%s6038_s20 + $0xe90] sm:$0xff]  ;;  %v5338_v30 = vcombine.low %v1254_v17, %v1258_v19  ;;  %v1271_v33 = vld [vmem:[%s6038_s20 + $0xed8] sm:$0xff] }
 0x349   : > { %v4624_v53 = vmax.f32 %v4616_v56, 0.0  ;;  %v4626_v54 = vmax.f32 %v4618_v14, 0.0  ;;  %v1266_v27 = vld [vmem:[%s6038_s20 + $0xeb0] sm:$0xff]  ;;  %v5340_v31 = vcombine.low %v1255_v20, %v1259_v43  ;;  %v5349_v45 = vcombine.high %v1263_v28, %v1267_v29  ;;  %v1275_v34 = vld [vmem:[%s6038_s20 + $0xef8] sm:$0xff] }
 0x34a   : > { %v4625_v60 = vmax.f32 %v4617_v49, 0.0  ;;  %v4627_v63 = vmax.f32 %v4619_v22, 0.0  ;;  %4332 = vmatpush1.bf16.msra.mxu0 %v5314_v36  ;;  %v5347_v61 = vcombine.high %v1262_v44, %v1266_v27  ;;  %v5346_v1 = vcombine.low %v1262_v44, %v1266_v27  ;;  %v1282_v38 = vld [vmem:[%s6038_s20 + $0xf30] sm:$0xff]  ;;  %v1283_v3 = vld [vmem:[%s6038_s20 + $0xf38] sm:$0xff] }
 0x34b   : > { %4496 = vmatpush1.bf16.msra.mxu1 %v5316_v48  ;;  %4333 = vmatprep.subr.bf16.mxu0 %v5323_v7  ;;  %v5348_v35 = vcombine.low %v1263_v28, %v1267_v29  ;;  %v5355_v36 = vcombine.high %v1270_v13, %v1274_v32  ;;  %v5357_v59 = vcombine.high %v1271_v33, %v1275_v34  ;;  %v1286_v14 = vld [vmem:[%s6038_s20 + $0xf50] sm:$0xff]  ;;  %v1287_v47 = vld [vmem:[%s6038_s20 + $0xf58] sm:$0xff] }
 0x34c   : > { %v5390_v10 = vpack.c.bf16 %v4625_v60, %v4624_v53  ;;  %v5391_v11 = vpack.c.bf16 %v4627_v63, %v4626_v54  ;;  %4497 = vmatprep.subr.bf16.mxu1 %v5325_v51  ;;  %v5356_v46 = vcombine.low %v1271_v33, %v1275_v34  ;;  %v5363_v48 = vcombine.high %v1278_v37, %v1282_v38  ;;  %v1290_v41 = vld [vmem:[%s6038_s20 + $0xf70] sm:$0xff]  ;;  %v1291_v7 = vld [vmem:[%s6038_s20 + $0xf78] sm:$0xff] }
 0x34d   : > { %v5365_v56 = vcombine.high %v1279_v39, %v1283_v3  ;;  %v5362_v49 = vcombine.low %v1278_v37, %v1282_v38  ;;  %v5364_v22 = vcombine.low %v1279_v39, %v1283_v3  ;;  %v5371_v51 = vcombine.high %v1286_v14, %v1290_v41  ;;  %v1298_v53 = vld [vmem:[%s6038_s20 + $0xfb0] sm:$0xff]  ;;  %v1295_v54 = vld [vmem:[%s6038_s20 + $0xf98] sm:$0xff] }
 0x34e   : > { %v4658_v21 = vrot.slane %v5390_v10, %v6687_v62  ;;  %v4665_v23 = vrot.slane %v5391_v11, %v6687_v62  ;;  %4334 = vmatpush1.bf16.msra.mxu0 %v5322_v0  ;;  %v5373_v18 = vcombine.high %v1287_v47, %v1291_v7  ;;  %v5370_v58 = vcombine.low %v1286_v14, %v1290_v41  ;;  %v1303_v10 = vld [vmem:[%s6038_s20 + $0xfd8] sm:$0xff] }
 0x34f   : > { %4498 = vmatpush1.bf16.msra.mxu1 %v5324_v8  ;;  %4335 = vmatprep.subr.bf16.mxu0 %v5331_v9  ;;  %v5372_v60 = vcombine.low %v1287_v47, %v1291_v7  ;;  %v5379_v63 = vcombine.high %v1294_v52, %v1298_v53  ;;  %v5381_v0 = vcombine.high %v1295_v54, %v1299_v57  ;;  %v1302_v8 = vld [vmem:[%s6038_s20 + $0xfd0] sm:$0xff]  ;;  %v1307_v11 = vld [vmem:[%s6038_s20 + $0xff8] sm:$0xff] }
 0x350   : > { %v6695_v26 = vcombine.low %v4658_v21, %v4665_v23  ;;  %4499 = vmatprep.subr.bf16.mxu1 %v5333_v15  ;;  %v1306_v9 = vld [vmem:[%s6038_s20 + $0xff0] sm:$0xff]  ;;  %v5378_v15 = vcombine.low %v1294_v52, %v1298_v53  ;;  %v5380_v17 = vcombine.low %v1295_v54, %v1299_v57  ;;  %v5389_v20 = vcombine.high %v1303_v10, %v1307_v11 }
 0x351   : > { %v5387_v19 = vcombine.high %v1302_v8, %v1306_v9  ;;  %v5386_v43 = vcombine.low %v1302_v8, %v1306_v9  ;;  %v5388_v21 = vcombine.low %v1303_v10, %v1307_v11  ;;  %v4545_v23 = vrot.slane %v6653_v4, %v6313_v55 }
 0x352   : > { %4336 = vmatpush1.bf16.msra.mxu0 %v5330_v2  ;;  %v4553_v2 = vrot.slane %v6653_v4, %v6401_v50  ;;  %v4603_v27 = vrot.slane %v6656_v6, %v6401_v50 }
 0x353   : > { %4500 = vmatpush1.bf16.msra.mxu1 %v5332_v24  ;;  %4337 = vmatprep.subr.bf16.mxu0 %v5339_v25  ;;  %v4549_v24 = vrot.slane %v6653_v4, %v6232_v12  ;;  %v4595_v25 = vrot.slane %v6656_v6, %v6313_v55 }
 0x354   : > { %4501 = vmatprep.subr.bf16.mxu1 %v5341_v16  ;;  %v4557_v16 = vrot.slane %v6653_v4, %v6320_v5 }
 0x356   : > { %4338 = vmatpush1.bf16.msra.mxu0 %v5338_v30 }
 0x357   : > { %4502 = vmatpush1.bf16.msra.mxu1 %v5340_v31  ;;  %4339 = vmatprep.subr.bf16.mxu0 %v5347_v61  ;;  %v4607_v31 = vrot.slane %v6656_v6, %v6320_v5 }
 0x358   : > { %4503 = vmatprep.subr.bf16.mxu1 %v5349_v45 }
 0x35a   : > { %4340 = vmatpush1.bf16.msra.mxu0 %v5346_v1 }
 0x35b   : > { %4504 = vmatpush1.bf16.msra.mxu1 %v5348_v35  ;;  %4341 = vmatprep.subr.bf16.mxu0 %v5355_v36 }
 0x35c   : > { %4505 = vmatprep.subr.bf16.mxu1 %v5357_v59 }
 0x35e   : > { %4342 = vmatpush1.bf16.msra.mxu0 %v5354_v40 }
 0x35f   : > { %4506 = vmatpush1.bf16.msra.mxu1 %v5356_v46  ;;  %4343 = vmatprep.subr.bf16.mxu0 %v5363_v48  ;;  %v4688_v46 = vrot.slane %v6695_v26, %v6687_v62 }
 0x360   : > { %4507 = vmatprep.subr.bf16.mxu1 %v5365_v56 }
 0x362   : > { %4344 = vmatpush1.bf16.msra.mxu0 %v5362_v49 }
 0x363   : > { %4508 = vmatpush1.bf16.msra.mxu1 %v5364_v22  ;;  %4345 = vmatprep.subr.bf16.mxu0 %v5371_v51 }
 0x364   : > { %4509 = vmatprep.subr.bf16.mxu1 %v5373_v18 }
 0x366   : > { %4346 = vmatpush1.bf16.msra.mxu0 %v5370_v58 }
 0x367   : > { %4510 = vmatpush1.bf16.msra.mxu1 %v5372_v60  ;;  %4347 = vmatprep.subr.bf16.mxu0 %v5379_v63 }
 0x368   : > { %4511 = vmatprep.subr.bf16.mxu1 %v5381_v0 }
 0x36a   : > { %4348 = vmatpush1.bf16.msra.mxu0 %v5378_v15 }
 0x36b   : > { %4512 = vmatpush1.bf16.msra.mxu1 %v5380_v17  ;;  %4349 = vmatprep.subr.bf16.mxu0 %v5387_v19 }
 0x36c   : > { %4513 = vmatprep.subr.bf16.mxu1 %v5389_v20 }
 0x36e   : > { %4350 = vmatpush1.bf16.msra.mxu0 %v5386_v43 }
 0x36f   : > { %4514 = vmatpush1.bf16.msra.mxu1 %v5388_v21 }
 0x371   : > { %4352 = vmatmul.mubr.bf16.vlgmr.msra.gmra.mrb[12].mxu0 %v6426_v42 }
 0x372   : > { %4516 = vmatmul.mubr.bf16.vlgmr.msra.gmra.mrb[12].mxu1 %v6426_v42  ;;  %v4599_v42 = vrot.slane %v6656_v6, %v6232_v12 }
 0x444   : > { %v4353_v44 = vpop.f32.mrb[12].mxu0 }
 0x445   : > { %v4570_v28 = vmul.f32 %v4545_v23, %v4353_v44  ;;  %v4517_v29 = vpop.f32.mrb[12].mxu1  ;;  %v4355_v30 = vpop.f32.mrb[13].mxu0 }
 0x446   : > { %v4572_v61 = vmul.f32 %v4553_v2, %v4517_v29  ;;  %v4571_v45 = vmul.f32 %v4549_v24, %v4355_v30  ;;  %v4519_v55 = vpop.f32.mrb[13].mxu1  ;;  %v4357_v13 = vpop.f32.mrb[14].mxu0 }
 0x447   : > { %v4620_v32 = vadd.f32 %v4595_v25, %v4570_v28  ;;  %v4573_v4 = vmul.f32 %v4557_v16, %v4519_v55  ;;  %v4521_v33 = vpop.f32.mrb[14].mxu1  ;;  %v4358_v34 = vpop.f32.mrb[15].mxu0 }
 0x448   : > { %v4622_v1 = vadd.f32 %v4603_v27, %v4572_v61  ;;  %v4621_v50 = vadd.f32 %v4599_v42, %v4571_v45  ;;  %v4522_v35 = vpop.f32.mrb[15].mxu1 }
 0x449   : > { %v4628_v36 = vmax.f32 %v4620_v32, 0.0  ;;  %v4623_v12 = vadd.f32 %v4607_v31, %v4573_v4 }
 0x44a   : > { %v4630_v59 = vmax.f32 %v4622_v1, 0.0  ;;  %v4629_v37 = vmax.f32 %v4621_v50, 0.0 }
 0x44b   : > { %v4631_v38 = vmax.f32 %v4623_v12, 0.0 }
 0x44c   : > { %v5392_v39 = vpack.c.bf16 %v4629_v37, %v4628_v36 }
 0x44d   : > { %v5393_v5 = vpack.c.bf16 %v4631_v38, %v4630_v59 }
 0x44e   : > { %v4672_v6 = vrot.slane %v5392_v39, %v6687_v62 }
 0x44f   : > { %v4679_v3 = vrot.slane %v5393_v5, %v6687_v62 }
 0x451   : > { %v4681_v40 = vcombine.low %v4672_v6, %v4679_v3 }
 0x453   : > { %v4695_v48 = vrot.slane %v4681_v40, %v6687_v62 }
 0x455   : > { %v4696_v56 = vcombine.low %v4688_v46, %v4695_v48 }
 0x457   : > { %4698 = vst [vmem:[%s412_s23] sm:$0xff] %v4696_v56 }
 0x458 PF: > { %s6812_s27 = sld [smem:[#allocation17_spill]]  ;;  %s6813_s8 = sld [smem:[#allocation16_spill]] }
 0x459   : > { %s6814_s26 = sld [smem:[#allocation18_spill]]  ;;  %s6815_s24 = smov %s5746_s25 }
 0x45e   : > { %p22_p9 = scmp.ge.s32.totalorder %s6812_s27, 4   ;;  %s6816_s25 = smov %s6813_s8 }
 0x460   :  { %24 = sbr.rel (!%p22_p9) target bundleno = 12 (0xc), region = 125 }
 0x467   :  { %4719 = vsyncpa [#allocation3], 1 }
 0x468   :  { %4721 = vsyncpa [#allocation3 + $0x1], 1 }
 0x469   :  { %4722 = vsyncpa [#allocation5], 1 }
 0x46a   :  { %4723 = vsyncpa [#allocation8], 1 }
 0x46b   :  { %4725 = vsyncpa [#allocation8 + $0x1], 1 }
 0x46c   :  { %4726 = vsyncpa [#allocation11], 1 }
 0x46d   :  { %4728 = vsyncpa [#allocation11 + $0x1], 1 }

</bundles_post_ra>
